<compile_context>
chip_gen: v6e
topology: v6e:2x2x1
jax: 0.10.0
libtpu: 0.0.40
codegen_flags: <defaults>
</compile_context>

<pallas_src>
import functools
import math

import jax
import jax.numpy as jnp
from jax import lax
from jax.experimental import pallas as pl
from jax.experimental.pallas import tpu as pltpu

KSIZE = 7
PAD = 3          # kernel_size == 7 -> padding 3
TARGET_ROWS = 64  # cap on bt*sub_t: keeps both f32 accumulators vreg-resident


# --------------------------------------------------------------------------
# Kernel 1: lane-dense streaming channel mean + max
# --------------------------------------------------------------------------
def _channel_reduce_kernel(x_ref, o_ref, sum_ref, max_ref, *, c_total):
    # x_ref  : (bt, ct, sub_t, LANES)  native dtype  (one channel chunk)
    # o_ref  : (bt, 2,  sub_t, LANES)  f32           (avg / max; revisited over c)
    # sum_ref/max_ref : (bt, sub_t, LANES) f32 scratch (running sum / max)
    ct = x_ref.shape[1]
    ci = pl.program_id(2)

    @pl.when(ci == 0)
    def _init():
        sum_ref[...] = jnp.zeros(sum_ref.shape, sum_ref.dtype)
        max_ref[...] = jnp.full(max_ref.shape, -jnp.inf, max_ref.dtype)

    # Fused single-pass streaming reduction: one (bt, sub_t, LANES) plane live
    # at a time (contiguous slab load, no relayout), f32 accumulation held in
    # vregs for the whole chunk.
    s = sum_ref[...]
    m = max_ref[...]
    for c in range(ct):                                  # ct is small & static
        plane = x_ref[:, c, :, :].astype(jnp.float32)    # lane-dense plane
        s = s + plane
        m = jnp.maximum(m, plane)
    sum_ref[...] = s
    max_ref[...] = m

    @pl.when(ci == pl.num_programs(2) - 1)
    def _finalize():
        o_ref[:, 0, :, :] = sum_ref[...] * (1.0 / c_total)   # channel mean
        o_ref[:, 1, :, :] = max_ref[...]                     # channel max


# --------------------------------------------------------------------------
# Kernel 2: 7x7 (2 -> 1) conv + sigmoid on the reduced maps
# --------------------------------------------------------------------------
def _conv7x7_sigmoid_kernel(r_ref, w_ref, o_ref, pad_ref):
    # r_ref  : (bt, 2, H, W) f32        (avg / max maps)
    # w_ref  : (2*7*7,)      f32, SMEM  (scalar taps)
    # o_ref  : (bt, 1, H, W)            (output, x dtype)
    # pad_ref: (2, bt, H+6, W+6) f32 scratch (zero-padded avg / max)
    Bt = r_ref.shape[0]
    H = r_ref.shape[2]
    W = r_ref.shape[3]
    Hp = H + 2 * PAD
    Wp = W + 2 * PAD

    # Zero only the halo strips; the interior is fully overwritten below.
    pad_ref[:, :, :PAD, :] = jnp.zeros((2, Bt, PAD, Wp), jnp.float32)
    pad_ref[:, :, PAD + H:, :] = jnp.zeros((2, Bt, PAD, Wp), jnp.float32)
    pad_ref[:, :, :, :PAD] = jnp.zeros((2, Bt, Hp, PAD), jnp.float32)
    pad_ref[:, :, :, PAD + W:] = jnp.zeros((2, Bt, Hp, PAD), jnp.float32)
    pad_ref[0, :, PAD:PAD + H, PAD:PAD + W] = r_ref[:, 0, :, :]
    pad_ref[1, :, PAD:PAD + H, PAD:PAD + W] = r_ref[:, 1, :, :]

    # 7x7 2->1 conv as shifted MACs; the lane-axis (kj) shift is hoisted out of
    # the 98-tap loop (14 lane-offset loads, sublane-only slices inside).
    acc = jnp.zeros((Bt, H, W), jnp.float32)
    for f in range(2):                               # "concat" channel: avg, max
        for kj in range(KSIZE):
            col = pad_ref[f, :, :, kj:kj + W]        # (Bt, Hp, W), one lane shift
            for ki in range(KSIZE):
                wgt = w_ref[f * KSIZE * KSIZE + ki * KSIZE + kj]   # SMEM scalar
                acc = acc + wgt * col[:, ki:ki + H, :]
    o_ref[:, 0, :, :] = jax.nn.sigmoid(acc).astype(o_ref.dtype)


# --------------------------------------------------------------------------
# Tile-picking helpers (all pure-Python on static shapes)
# --------------------------------------------------------------------------
def _divisors(n):
    ds, d = [], 1
    while d * d <= n:
        if n % d == 0:
            ds.append(d)
            if d != n // d:
                ds.append(n // d)
        d += 1
    return sorted(ds)


def _lane_occ(lanes):
    return lanes / (128.0 * ((lanes + 127) // 128))


def _sub_occ(sub):
    return sub / (8.0 * ((sub + 7) // 8))


def _pick_hw_factorization(hw):
    """Factor HW = SUB * LANES (free row-major reshape) for best vreg occupancy."""
    if hw % 128 == 0:
        return hw // 128, 128
    best_key, best = None, (1, hw)
    for lanes in _divisors(hw):
        sub = hw // lanes
        key = (_lane_occ(lanes) * _sub_occ(sub), -abs(lanes - 256))
        if best_key is None or key > best_key:
            best_key, best = key, (sub, lanes)
    return best


def _pick_spatial_tile(sub_total):
    """sub_t must divide SUB and be a multiple of 8 (or the full SUB)."""
    if sub_total <= TARGET_ROWS:
        return sub_total
    cands = [k for k in range(8, TARGET_ROWS + 1, 8) if sub_total % k == 0]
    return max(cands) if cands else sub_total


def _pick_batch_tile(n, sub_t):
    cap = max(1, TARGET_ROWS // sub_t)
    best = 1
    for k in range(1, n + 1):
        if n % k == 0 and k <= cap:
            best = k
    return best


def _pick_channel_tile(c, slab_bytes, budget=4 << 20, max_unroll=64):
    cap = max(1, min(max_unroll, budget // max(slab_bytes, 1)))
    best = 1
    for k in range(1, c + 1):
        if c % k == 0 and k <= cap:
            best = k
    return best


def _pick_conv_batch_tile(n, per_image_bytes, budget=2 << 20):
    cap = max(1, budget // max(per_image_bytes, 1))
    best = 1
    for k in range(1, n + 1):
        if n % k == 0 and k <= cap and (n // k >= 2 or n == 1):
            best = k
    return best


# --------------------------------------------------------------------------
# Wrapper
# --------------------------------------------------------------------------
@jax.jit
def spatial_attention(x, conv_weight):
    """x: (N, C, H, W); conv_weight: (1, 2, 7, 7). Returns (N, 1, H, W)."""
    N, C, H, W = x.shape
    HW = H * W
    itemsize = jnp.dtype(x.dtype).itemsize

    # ---- Kernel 1: lane-dense channel mean + max --------------------------
    SUB, LANES = _pick_hw_factorization(HW)
    x4 = x.reshape(N, C, SUB, LANES)          # free metadata reshape (contiguous)

    sub_t = _pick_spatial_tile(SUB)
    bt = _pick_batch_tile(N, sub_t)
    # Keep >=2 parallel grid steps (dual-TC v7x) only when it is free; on
    # single-TC v5e/v6e this costs at most one extra grid step.
    if (N // bt) * (SUB // sub_t) < 2 and bt % 2 == 0:
        bt //= 2
    ct = _pick_channel_tile(C, bt * sub_t * LANES * itemsize)

    grid = (N // bt, SUB // sub_t, C // ct)

    in_block = bt * ct * sub_t * LANES * itemsize
    out_block = bt * 2 * sub_t * LANES * 4
    scratch_b = 2 * bt * sub_t * LANES * 4
    vmem_limit = int(min(32 << 20,
                         max(8 << 20,
                             4 * (in_block + out_block) + scratch_b + (2 << 20))))

    red = pl.pallas_call(
        functools.partial(_channel_reduce_kernel, c_total=C),
        out_shape=jax.ShapeDtypeStruct((N, 2, SUB, LANES), jnp.float32),
        grid=grid,
        in_specs=[
            pl.BlockSpec((bt, ct, sub_t, LANES), lambda n, s, c: (n, c, s, 0)),
        ],
        out_specs=pl.BlockSpec((bt, 2, sub_t, LANES), lambda n, s, c: (n, 0, s, 0)),
        scratch_shapes=[
            pltpu.VMEM((bt, sub_t, LANES), jnp.float32),   # running channel sum
            pltpu.VMEM((bt, sub_t, LANES), jnp.float32),   # running channel max
        ],
        compiler_params=pltpu.CompilerParams(
            dimension_semantics=("parallel", "parallel", "arbitrary"),
            vmem_limit_bytes=vmem_limit),
    )(x4)

    red = red.reshape(N, 2, H, W)             # free metadata reshape

    # ---- Kernel 2: 7x7 conv + sigmoid --------------------------------------
    w_flat = conv_weight.astype(jnp.float32).reshape(-1)   # (98,)
    Hp, Wp = H + 2 * PAD, W + 2 * PAD
    per_image = 2 * H * W * 4 + H * W * itemsize + 2 * Hp * Wp * 4
    bt2 = _pick_conv_batch_tile(N, per_image)

    rin = bt2 * 2 * H * W * 4
    rout = bt2 * H * W * itemsize
    pad_b = 2 * bt2 * Hp * Wp * 4
    vmem_limit2 = int(min(32 << 20,
                          max(8 << 20, 2 * (rin + rout) + pad_b + (2 << 20))))

    out = pl.pallas_call(
        _conv7x7_sigmoid_kernel,
        out_shape=jax.ShapeDtypeStruct((N, 1, H, W), x.dtype),
        grid=(N // bt2,),
        in_specs=[
            pl.BlockSpec((bt2, 2, H, W), lambda n: (n, 0, 0, 0)),
            pl.BlockSpec(memory_space=pltpu.MemorySpace.SMEM),
        ],
        out_specs=pl.BlockSpec((bt2, 1, H, W), lambda n: (n, 0, 0, 0)),
        scratch_shapes=[
            pltpu.VMEM((2, bt2, Hp, Wp), jnp.float32),     # zero-padded avg / max
        ],
        compiler_params=pltpu.CompilerParams(
            dimension_semantics=("parallel",),
            vmem_limit_bytes=vmem_limit2),
    )(red, w_flat)
    return out


# --------------------------------------------------------------------------
# Reference + test
# --------------------------------------------------------------------------
def _reference(x, conv_weight):
    avg = jnp.mean(x, axis=1, keepdims=True)
    mx = jnp.max(x, axis=1, keepdims=True)
    cat = jnp.concatenate([avg, mx], axis=1)
    y = lax.conv_general_dilated(
        cat, conv_weight,
        window_strides=(1, 1),
        padding=((PAD, PAD), (PAD, PAD)),
        dimension_numbers=("NCHW", "OIHW", "NCHW"),
    )
    return jax.nn.sigmoid(y)


if __name__ == "__main__":
    key = jax.random.PRNGKey(0)
    kx, kw = jax.random.split(key)

    N, C, H, W = 2, 4, 16, 16
    x = jax.random.normal(kx, (N, C, H, W), dtype=jnp.float32)

    # Kaiming-uniform-ish init for conv1: weight shape (1, 2, 7, 7)
    fan_in = 2 * KSIZE * KSIZE
    bound = 1.0 / math.sqrt(fan_in)
    conv_weight = jax.random.uniform(
        kw, (1, 2, KSIZE, KSIZE), dtype=jnp.float32, minval=-bound, maxval=bound)

    out = spatial_attention(x, conv_weight)
    out = jax.block_until_ready(out)

    ref = _reference(x, conv_weight)
    assert out.shape == (N, 1, H, W)
    assert jnp.allclose(out, ref, atol=1e-5, rtol=1e-5), "mismatch vs reference"

    print("KERNEL_OK")
</pallas_src>

<mosaic_0001>
module attributes {stable_mosaic.version = 11 : i64} {
  func.func @_channel_reduce_kernel(%arg0: i32, %arg1: i32, %arg2: i32, %arg3: memref<1x4x2x128xf32, #tpu.memory_space<vmem>>, %arg4: memref<1x2x2x128xf32, #tpu.memory_space<vmem>>, %arg5: memref<1x2x128xf32, #tpu.memory_space<vmem>>, %arg6: memref<1x2x128xf32, #tpu.memory_space<vmem>>) attributes {dimension_semantics = [#tpu.dimension_semantics<parallel>, #tpu.dimension_semantics<parallel>, #tpu.dimension_semantics<arbitrary>], iteration_bounds = array<i64: 2, 1, 1>, scalar_prefetch = 0 : i64, scratch_operands = 2 : i64, tpu.core_type = #tpu.core_type<tc>, window_params = [{transform_indices = @transform_0, window_bounds = array<i64: 1, 4, 2, 128>}, {transform_indices = @transform_1, window_bounds = array<i64: 1, 2, 2, 128>}]} {
    %c0_i32 = arith.constant 0 : i32
    %0 = arith.cmpi eq, %arg2, %c0_i32 : i32
    %1 = arith.extui %0 : i1 to i32
    %c0_i32_0 = arith.constant 0 : i32
    %2 = arith.cmpi ne, %1, %c0_i32_0 : i32
    scf.if %2 {
      %cst = arith.constant 0.000000e+00 : f32
      %26 = vector.broadcast %cst : f32 to vector<1x2x128xf32>
      %c0_27 = arith.constant 0 : index
      %c0_28 = arith.constant 0 : index
      %c0_29 = arith.constant 0 : index
      %27 = vector.load %arg5[%c0_27, %c0_28, %c0_29] : memref<1x2x128xf32, #tpu.memory_space<vmem>>, vector<1x2x128xf32>
      tpu.vector_store %arg5[%c0_27, %c0_28, %c0_29], %26 {strides = array<i32>} : memref<1x2x128xf32, #tpu.memory_space<vmem>>, vector<1x2x128xf32>,
      %cst_30 = arith.constant 0xFF800000 : f32
      %28 = vector.broadcast %cst_30 : f32 to vector<1x2x128xf32>
      %c0_31 = arith.constant 0 : index
      %c0_32 = arith.constant 0 : index
      %c0_33 = arith.constant 0 : index
      %29 = vector.load %arg6[%c0_31, %c0_32, %c0_33] : memref<1x2x128xf32, #tpu.memory_space<vmem>>, vector<1x2x128xf32>
      tpu.vector_store %arg6[%c0_31, %c0_32, %c0_33], %28 {strides = array<i32>} : memref<1x2x128xf32, #tpu.memory_space<vmem>>, vector<1x2x128xf32>,
    } else {
    }
    %c0 = arith.constant 0 : index
    %c0_1 = arith.constant 0 : index
    %c0_2 = arith.constant 0 : index
    %3 = vector.load %arg5[%c0, %c0_1, %c0_2] : memref<1x2x128xf32, #tpu.memory_space<vmem>>, vector<1x2x128xf32>
    %c0_3 = arith.constant 0 : index
    %c0_4 = arith.constant 0 : index
    %c0_5 = arith.constant 0 : index
    %4 = vector.load %arg6[%c0_3, %c0_4, %c0_5] : memref<1x2x128xf32, #tpu.memory_space<vmem>>, vector<1x2x128xf32>
    %c0_6 = arith.constant 0 : index
    %c0_7 = arith.constant 0 : index
    %c0_8 = arith.constant 0 : index
    %c0_9 = arith.constant 0 : index
    %5 = vector.load %arg3[%c0_6, %c0_7, %c0_8, %c0_9] : memref<1x4x2x128xf32, #tpu.memory_space<vmem>>, vector<1x1x2x128xf32>
    %6 = vector.shape_cast %5 : vector<1x1x2x128xf32> to vector<1x2x128xf32>
    %7 = arith.addf %3, %6 : vector<1x2x128xf32>
    %8 = arith.maximumf %4, %6 : vector<1x2x128xf32>
    %c0_10 = arith.constant 0 : index
    %c1 = arith.constant 1 : index
    %c0_11 = arith.constant 0 : index
    %c0_12 = arith.constant 0 : index
    %9 = vector.load %arg3[%c0_10, %c1, %c0_11, %c0_12] : memref<1x4x2x128xf32, #tpu.memory_space<vmem>>, vector<1x1x2x128xf32>
    %10 = vector.shape_cast %9 : vector<1x1x2x128xf32> to vector<1x2x128xf32>
    %11 = arith.addf %7, %10 : vector<1x2x128xf32>
    %12 = arith.maximumf %8, %10 : vector<1x2x128xf32>
    %c0_13 = arith.constant 0 : index
    %c2 = arith.constant 2 : index
    %c0_14 = arith.constant 0 : index
    %c0_15 = arith.constant 0 : index
    %13 = vector.load %arg3[%c0_13, %c2, %c0_14, %c0_15] : memref<1x4x2x128xf32, #tpu.memory_space<vmem>>, vector<1x1x2x128xf32>
    %14 = vector.shape_cast %13 : vector<1x1x2x128xf32> to vector<1x2x128xf32>
    %15 = arith.addf %11, %14 : vector<1x2x128xf32>
    %16 = arith.maximumf %12, %14 : vector<1x2x128xf32>
    %c0_16 = arith.constant 0 : index
    %c3 = arith.constant 3 : index
    %c0_17 = arith.constant 0 : index
    %c0_18 = arith.constant 0 : index
    %17 = vector.load %arg3[%c0_16, %c3, %c0_17, %c0_18] : memref<1x4x2x128xf32, #tpu.memory_space<vmem>>, vector<1x1x2x128xf32>
    %18 = vector.shape_cast %17 : vector<1x1x2x128xf32> to vector<1x2x128xf32>
    %19 = arith.addf %15, %18 : vector<1x2x128xf32>
    %20 = arith.maximumf %16, %18 : vector<1x2x128xf32>
    %c0_19 = arith.constant 0 : index
    %c0_20 = arith.constant 0 : index
    %c0_21 = arith.constant 0 : index
    %21 = vector.load %arg5[%c0_19, %c0_20, %c0_21] : memref<1x2x128xf32, #tpu.memory_space<vmem>>, vector<1x2x128xf32>
    tpu.vector_store %arg5[%c0_19, %c0_20, %c0_21], %19 {strides = array<i32>} : memref<1x2x128xf32, #tpu.memory_space<vmem>>, vector<1x2x128xf32>,
    %c0_22 = arith.constant 0 : index
    %c0_23 = arith.constant 0 : index
    %c0_24 = arith.constant 0 : index
    %22 = vector.load %arg6[%c0_22, %c0_23, %c0_24] : memref<1x2x128xf32, #tpu.memory_space<vmem>>, vector<1x2x128xf32>
    tpu.vector_store %arg6[%c0_22, %c0_23, %c0_24], %20 {strides = array<i32>} : memref<1x2x128xf32, #tpu.memory_space<vmem>>, vector<1x2x128xf32>,
    %c0_i32_25 = arith.constant 0 : i32
    %23 = arith.cmpi eq, %arg2, %c0_i32_25 : i32
    %24 = arith.extui %23 : i1 to i32
    %c0_i32_26 = arith.constant 0 : i32
    %25 = arith.cmpi ne, %24, %c0_i32_26 : i32
    scf.if %25 {
      %c0_27 = arith.constant 0 : index
      %c0_28 = arith.constant 0 : index
      %c0_29 = arith.constant 0 : index
      %26 = vector.load %arg5[%c0_27, %c0_28, %c0_29] : memref<1x2x128xf32, #tpu.memory_space<vmem>>, vector<1x2x128xf32>
      %cst = arith.constant 2.500000e-01 : f32
      %27 = vector.broadcast %cst : f32 to vector<1x2x128xf32>
      %28 = arith.mulf %26, %27 : vector<1x2x128xf32>
      %c0_30 = arith.constant 0 : index
      %c0_31 = arith.constant 0 : index
      %c0_32 = arith.constant 0 : index
      %c0_33 = arith.constant 0 : index
      %29 = vector.load %arg4[%c0_30, %c0_31, %c0_32, %c0_33] : memref<1x2x2x128xf32, #tpu.memory_space<vmem>>, vector<1x1x2x128xf32>
      %30 = vector.shape_cast %29 : vector<1x1x2x128xf32> to vector<1x2x128xf32>
      %31 = vector.shape_cast %28 : vector<1x2x128xf32> to vector<1x1x2x128xf32>
      tpu.vector_store %arg4[%c0_30, %c0_31, %c0_32, %c0_33], %31 {strides = array<i32>} : memref<1x2x2x128xf32, #tpu.memory_space<vmem>>, vector<1x1x2x128xf32>,
      %c0_34 = arith.constant 0 : index
      %c0_35 = arith.constant 0 : index
      %c0_36 = arith.constant 0 : index
      %32 = vector.load %arg6[%c0_34, %c0_35, %c0_36] : memref<1x2x128xf32, #tpu.memory_space<vmem>>, vector<1x2x128xf32>
      %c0_37 = arith.constant 0 : index
      %c1_38 = arith.constant 1 : index
      %c0_39 = arith.constant 0 : index
      %c0_40 = arith.constant 0 : index
      %33 = vector.load %arg4[%c0_37, %c1_38, %c0_39, %c0_40] : memref<1x2x2x128xf32, #tpu.memory_space<vmem>>, vector<1x1x2x128xf32>
      %34 = vector.shape_cast %33 : vector<1x1x2x128xf32> to vector<1x2x128xf32>
      %35 = vector.shape_cast %32 : vector<1x2x128xf32> to vector<1x1x2x128xf32>
      tpu.vector_store %arg4[%c0_37, %c1_38, %c0_39, %c0_40], %35 {strides = array<i32>} : memref<1x2x2x128xf32, #tpu.memory_space<vmem>>, vector<1x1x2x128xf32>,
    } else {
    }
    return
  }
  func.func @transform_0(%arg0: i32, %arg1: i32, %arg2: i32) -> (i32, i32, i32, i32) {
    %c0_i32 = arith.constant 0 : i32
    %c0_i32_0 = arith.constant 0 : i32
    return %arg0, %arg2, %arg1, %c0_i32 : i32, i32, i32, i32
  }
  func.func @transform_1(%arg0: i32, %arg1: i32, %arg2: i32) -> (i32, i32, i32, i32) {
    %c0_i32 = arith.constant 0 : i32
    %c0_i32_0 = arith.constant 0 : i32
    %c0_i32_1 = arith.constant 0 : i32
    return %arg0, %c0_i32, %arg1, %c0_i32_0 : i32, i32, i32, i32
  }
}

module attributes {stable_mosaic.version = 11 : i64} {
  func.func @_conv7x7_sigmoid_kernel(%arg0: i32, %arg1: memref<1x2x16x16xf32, #tpu.memory_space<vmem>>, %arg2: memref<98xf32, #tpu.memory_space<smem>>, %arg3: memref<1x1x16x16xf32, #tpu.memory_space<vmem>>, %arg4: memref<2x1x22x22xf32, #tpu.memory_space<vmem>>) attributes {dimension_semantics = [#tpu.dimension_semantics<parallel>], iteration_bounds = array<i64: 2>, scalar_prefetch = 0 : i64, scratch_operands = 1 : i64, tpu.core_type = #tpu.core_type<tc>, window_params = [{transform_indices = @transform_0, window_bounds = array<i64: 1, 2, 16, 16>}, {transform_indices = @transform_1, window_bounds = array<i64: 98>}, {transform_indices = @transform_2, window_bounds = array<i64: 1, 1, 16, 16>}]} {
    %cst = arith.constant 0.000000e+00 : f32
    %0 = vector.broadcast %cst : f32 to vector<2x1x3x22xf32>
    %c0 = arith.constant 0 : index
    %c0_0 = arith.constant 0 : index
    %c0_1 = arith.constant 0 : index
    %c0_2 = arith.constant 0 : index
    %1 = vector.load %arg4[%c0, %c0_0, %c0_1, %c0_2] : memref<2x1x22x22xf32, #tpu.memory_space<vmem>>, vector<2x1x3x22xf32>
    tpu.vector_store %arg4[%c0, %c0_0, %c0_1, %c0_2], %0 {strides = array<i32>} : memref<2x1x22x22xf32, #tpu.memory_space<vmem>>, vector<2x1x3x22xf32>,
    %cst_3 = arith.constant 0.000000e+00 : f32
    %2 = vector.broadcast %cst_3 : f32 to vector<2x1x3x22xf32>
    %c0_4 = arith.constant 0 : index
    %c0_5 = arith.constant 0 : index
    %c19 = arith.constant 19 : index
    %c0_6 = arith.constant 0 : index
    %3 = vector.load %arg4[%c0_4, %c0_5, %c19, %c0_6] : memref<2x1x22x22xf32, #tpu.memory_space<vmem>>, vector<2x1x3x22xf32>
    tpu.vector_store %arg4[%c0_4, %c0_5, %c19, %c0_6], %2 {strides = array<i32>} : memref<2x1x22x22xf32, #tpu.memory_space<vmem>>, vector<2x1x3x22xf32>,
    %cst_7 = arith.constant 0.000000e+00 : f32
    %4 = vector.broadcast %cst_7 : f32 to vector<2x1x22x3xf32>
    %c0_8 = arith.constant 0 : index
    %c0_9 = arith.constant 0 : index
    %c0_10 = arith.constant 0 : index
    %c0_11 = arith.constant 0 : index
    %5 = vector.load %arg4[%c0_8, %c0_9, %c0_10, %c0_11] : memref<2x1x22x22xf32, #tpu.memory_space<vmem>>, vector<2x1x22x3xf32>
    tpu.vector_store %arg4[%c0_8, %c0_9, %c0_10, %c0_11], %4 {strides = array<i32>} : memref<2x1x22x22xf32, #tpu.memory_space<vmem>>, vector<2x1x22x3xf32>,
    %cst_12 = arith.constant 0.000000e+00 : f32
    %6 = vector.broadcast %cst_12 : f32 to vector<2x1x22x3xf32>
    %c0_13 = arith.constant 0 : index
    %c0_14 = arith.constant 0 : index
    %c0_15 = arith.constant 0 : index
    %c19_16 = arith.constant 19 : index
    %7 = vector.load %arg4[%c0_13, %c0_14, %c0_15, %c19_16] : memref<2x1x22x22xf32, #tpu.memory_space<vmem>>, vector<2x1x22x3xf32>
    tpu.vector_store %arg4[%c0_13, %c0_14, %c0_15, %c19_16], %6 {strides = array<i32>} : memref<2x1x22x22xf32, #tpu.memory_space<vmem>>, vector<2x1x22x3xf32>,
    %c0_17 = arith.constant 0 : index
    %c0_18 = arith.constant 0 : index
    %c0_19 = arith.constant 0 : index
    %c0_20 = arith.constant 0 : index
    %8 = vector.load %arg1[%c0_17, %c0_18, %c0_19, %c0_20] : memref<1x2x16x16xf32, #tpu.memory_space<vmem>>, vector<1x1x16x16xf32>
    %9 = vector.shape_cast %8 : vector<1x1x16x16xf32> to vector<1x16x16xf32>
    %c0_21 = arith.constant 0 : index
    %c0_22 = arith.constant 0 : index
    %c3 = arith.constant 3 : index
    %c3_23 = arith.constant 3 : index
    %10 = vector.load %arg4[%c0_21, %c0_22, %c3, %c3_23] : memref<2x1x22x22xf32, #tpu.memory_space<vmem>>, vector<1x1x16x16xf32>
    %11 = vector.shape_cast %10 : vector<1x1x16x16xf32> to vector<1x16x16xf32>
    %12 = vector.shape_cast %9 : vector<1x16x16xf32> to vector<1x1x16x16xf32>
    tpu.vector_store %arg4[%c0_21, %c0_22, %c3, %c3_23], %12 {strides = array<i32>} : memref<2x1x22x22xf32, #tpu.memory_space<vmem>>, vector<1x1x16x16xf32>,
    %c0_24 = arith.constant 0 : index
    %c1 = arith.constant 1 : index
    %c0_25 = arith.constant 0 : index
    %c0_26 = arith.constant 0 : index
    %13 = vector.load %arg1[%c0_24, %c1, %c0_25, %c0_26] : memref<1x2x16x16xf32, #tpu.memory_space<vmem>>, vector<1x1x16x16xf32>
    %14 = vector.shape_cast %13 : vector<1x1x16x16xf32> to vector<1x16x16xf32>
    %c1_27 = arith.constant 1 : index
    %c0_28 = arith.constant 0 : index
    %c3_29 = arith.constant 3 : index
    %c3_30 = arith.constant 3 : index
    %15 = vector.load %arg4[%c1_27, %c0_28, %c3_29, %c3_30] : memref<2x1x22x22xf32, #tpu.memory_space<vmem>>, vector<1x1x16x16xf32>
    %16 = vector.shape_cast %15 : vector<1x1x16x16xf32> to vector<1x16x16xf32>
    %17 = vector.shape_cast %14 : vector<1x16x16xf32> to vector<1x1x16x16xf32>
    tpu.vector_store %arg4[%c1_27, %c0_28, %c3_29, %c3_30], %17 {strides = array<i32>} : memref<2x1x22x22xf32, #tpu.memory_space<vmem>>, vector<1x1x16x16xf32>,
    %cst_31 = arith.constant 0.000000e+00 : f32
    %18 = vector.broadcast %cst_31 : f32 to vector<1x16x16xf32>
    %c0_32 = arith.constant 0 : index
    %c0_33 = arith.constant 0 : index
    %c0_34 = arith.constant 0 : index
    %c0_35 = arith.constant 0 : index
    %19 = vector.load %arg4[%c0_32, %c0_33, %c0_34, %c0_35] : memref<2x1x22x22xf32, #tpu.memory_space<vmem>>, vector<1x1x22x16xf32>
    %20 = vector.shape_cast %19 : vector<1x1x22x16xf32> to vector<1x22x16xf32>
    %c0_36 = arith.constant 0 : index
    %21 = memref.load %arg2[%c0_36] : memref<98xf32, #tpu.memory_space<smem>>
    %22 = vector.extract_strided_slice %20 {offsets = [0, 0, 0], sizes = [1, 16, 16], strides = [1, 1, 1]} : vector<1x22x16xf32> to vector<1x16x16xf32>
    %23 = vector.broadcast %21 : f32 to vector<1x16x16xf32>
    %24 = arith.mulf %23, %22 : vector<1x16x16xf32>
    %25 = arith.addf %18, %24 : vector<1x16x16xf32>
    %c7 = arith.constant 7 : index
    %26 = memref.load %arg2[%c7] : memref<98xf32, #tpu.memory_space<smem>>
    %27 = vector.extract_strided_slice %20 {offsets = [0, 1, 0], sizes = [1, 16, 16], strides = [1, 1, 1]} : vector<1x22x16xf32> to vector<1x16x16xf32>
    %28 = vector.broadcast %26 : f32 to vector<1x16x16xf32>
    %29 = arith.mulf %28, %27 : vector<1x16x16xf32>
    %30 = arith.addf %25, %29 : vector<1x16x16xf32>
    %c14 = arith.constant 14 : index
    %31 = memref.load %arg2[%c14] : memref<98xf32, #tpu.memory_space<smem>>
    %32 = vector.extract_strided_slice %20 {offsets = [0, 2, 0], sizes = [1, 16, 16], strides = [1, 1, 1]} : vector<1x22x16xf32> to vector<1x16x16xf32>
    %33 = vector.broadcast %31 : f32 to vector<1x16x16xf32>
    %34 = arith.mulf %33, %32 : vector<1x16x16xf32>
    %35 = arith.addf %30, %34 : vector<1x16x16xf32>
    %c21 = arith.constant 21 : index
    %36 = memref.load %arg2[%c21] : memref<98xf32, #tpu.memory_space<smem>>
    %37 = vector.extract_strided_slice %20 {offsets = [0, 3, 0], sizes = [1, 16, 16], strides = [1, 1, 1]} : vector<1x22x16xf32> to vector<1x16x16xf32>
    %38 = vector.broadcast %36 : f32 to vector<1x16x16xf32>
    %39 = arith.mulf %38, %37 : vector<1x16x16xf32>
    %40 = arith.addf %35, %39 : vector<1x16x16xf32>
    %c28 = arith.constant 28 : index
    %41 = memref.load %arg2[%c28] : memref<98xf32, #tpu.memory_space<smem>>
    %42 = vector.extract_strided_slice %20 {offsets = [0, 4, 0], sizes = [1, 16, 16], strides = [1, 1, 1]} : vector<1x22x16xf32> to vector<1x16x16xf32>
    %43 = vector.broadcast %41 : f32 to vector<1x16x16xf32>
    %44 = arith.mulf %43, %42 : vector<1x16x16xf32>
    %45 = arith.addf %40, %44 : vector<1x16x16xf32>
    %c35 = arith.constant 35 : index
    %46 = memref.load %arg2[%c35] : memref<98xf32, #tpu.memory_space<smem>>
    %47 = vector.extract_strided_slice %20 {offsets = [0, 5, 0], sizes = [1, 16, 16], strides = [1, 1, 1]} : vector<1x22x16xf32> to vector<1x16x16xf32>
    %48 = vector.broadcast %46 : f32 to vector<1x16x16xf32>
    %49 = arith.mulf %48, %47 : vector<1x16x16xf32>
    %50 = arith.addf %45, %49 : vector<1x16x16xf32>
    %c42 = arith.constant 42 : index
    %51 = memref.load %arg2[%c42] : memref<98xf32, #tpu.memory_space<smem>>
    %52 = vector.extract_strided_slice %20 {offsets = [0, 6, 0], sizes = [1, 16, 16], strides = [1, 1, 1]} : vector<1x22x16xf32> to vector<1x16x16xf32>
    %53 = vector.broadcast %51 : f32 to vector<1x16x16xf32>
    %54 = arith.mulf %53, %52 : vector<1x16x16xf32>
    %55 = arith.addf %50, %54 : vector<1x16x16xf32>
    %c0_37 = arith.constant 0 : index
    %c0_38 = arith.constant 0 : index
    %c0_39 = arith.constant 0 : index
    %c1_40 = arith.constant 1 : index
    %56 = vector.load %arg4[%c0_37, %c0_38, %c0_39, %c1_40] : memref<2x1x22x22xf32, #tpu.memory_space<vmem>>, vector<1x1x22x16xf32>
    %57 = vector.shape_cast %56 : vector<1x1x22x16xf32> to vector<1x22x16xf32>
    %c1_41 = arith.constant 1 : index
    %58 = memref.load %arg2[%c1_41] : memref<98xf32, #tpu.memory_space<smem>>
    %59 = vector.extract_strided_slice %57 {offsets = [0, 0, 0], sizes = [1, 16, 16], strides = [1, 1, 1]} : vector<1x22x16xf32> to vector<1x16x16xf32>
    %60 = vector.broadcast %58 : f32 to vector<1x16x16xf32>
    %61 = arith.mulf %60, %59 : vector<1x16x16xf32>
    %62 = arith.addf %55, %61 : vector<1x16x16xf32>
    %c8 = arith.constant 8 : index
    %63 = memref.load %arg2[%c8] : memref<98xf32, #tpu.memory_space<smem>>
    %64 = vector.extract_strided_slice %57 {offsets = [0, 1, 0], sizes = [1, 16, 16], strides = [1, 1, 1]} : vector<1x22x16xf32> to vector<1x16x16xf32>
    %65 = vector.broadcast %63 : f32 to vector<1x16x16xf32>
    %66 = arith.mulf %65, %64 : vector<1x16x16xf32>
    %67 = arith.addf %62, %66 : vector<1x16x16xf32>
    %c15 = arith.constant 15 : index
    %68 = memref.load %arg2[%c15] : memref<98xf32, #tpu.memory_space<smem>>
    %69 = vector.extract_strided_slice %57 {offsets = [0, 2, 0], sizes = [1, 16, 16], strides = [1, 1, 1]} : vector<1x22x16xf32> to vector<1x16x16xf32>
    %70 = vector.broadcast %68 : f32 to vector<1x16x16xf32>
    %71 = arith.mulf %70, %69 : vector<1x16x16xf32>
    %72 = arith.addf %67, %71 : vector<1x16x16xf32>
    %c22 = arith.constant 22 : index
    %73 = memref.load %arg2[%c22] : memref<98xf32, #tpu.memory_space<smem>>
    %74 = vector.extract_strided_slice %57 {offsets = [0, 3, 0], sizes = [1, 16, 16], strides = [1, 1, 1]} : vector<1x22x16xf32> to vector<1x16x16xf32>
    %75 = vector.broadcast %73 : f32 to vector<1x16x16xf32>
    %76 = arith.mulf %75, %74 : vector<1x16x16xf32>
    %77 = arith.addf %72, %76 : vector<1x16x16xf32>
    %c29 = arith.constant 29 : index
    %78 = memref.load %arg2[%c29] : memref<98xf32, #tpu.memory_space<smem>>
    %79 = vector.extract_strided_slice %57 {offsets = [0, 4, 0], sizes = [1, 16, 16], strides = [1, 1, 1]} : vector<1x22x16xf32> to vector<1x16x16xf32>
    %80 = vector.broadcast %78 : f32 to vector<1x16x16xf32>
    %81 = arith.mulf %80, %79 : vector<1x16x16xf32>
    %82 = arith.addf %77, %81 : vector<1x16x16xf32>
    %c36 = arith.constant 36 : index
    %83 = memref.load %arg2[%c36] : memref<98xf32, #tpu.memory_space<smem>>
    %84 = vector.extract_strided_slice %57 {offsets = [0, 5, 0], sizes = [1, 16, 16], strides = [1, 1, 1]} : vector<1x22x16xf32> to vector<1x16x16xf32>
    %85 = vector.broadcast %83 : f32 to vector<1x16x16xf32>
    %86 = arith.mulf %85, %84 : vector<1x16x16xf32>
    %87 = arith.addf %82, %86 : vector<1x16x16xf32>
    %c43 = arith.constant 43 : index
    %88 = memref.load %arg2[%c43] : memref<98xf32, #tpu.memory_space<smem>>
    %89 = vector.extract_strided_slice %57 {offsets = [0, 6, 0], sizes = [1, 16, 16], strides = [1, 1, 1]} : vector<1x22x16xf32> to vector<1x16x16xf32>
    %90 = vector.broadcast %88 : f32 to vector<1x16x16xf32>
    %91 = arith.mulf %90, %89 : vector<1x16x16xf32>
    %92 = arith.addf %87, %91 : vector<1x16x16xf32>
    %c0_42 = arith.constant 0 : index
    %c0_43 = arith.constant 0 : index
    %c0_44 = arith.constant 0 : index
    %c2 = arith.constant 2 : index
    %93 = vector.load %arg4[%c0_42, %c0_43, %c0_44, %c2] : memref<2x1x22x22xf32, #tpu.memory_space<vmem>>, vector<1x1x22x16xf32>
    %94 = vector.shape_cast %93 : vector<1x1x22x16xf32> to vector<1x22x16xf32>
    %c2_45 = arith.constant 2 : index
    %95 = memref.load %arg2[%c2_45] : memref<98xf32, #tpu.memory_space<smem>>
    %96 = vector.extract_strided_slice %94 {offsets = [0, 0, 0], sizes = [1, 16, 16], strides = [1, 1, 1]} : vector<1x22x16xf32> to vector<1x16x16xf32>
    %97 = vector.broadcast %95 : f32 to vector<1x16x16xf32>
    %98 = arith.mulf %97, %96 : vector<1x16x16xf32>
    %99 = arith.addf %92, %98 : vector<1x16x16xf32>
    %c9 = arith.constant 9 : index
    %100 = memref.load %arg2[%c9] : memref<98xf32, #tpu.memory_space<smem>>
    %101 = vector.extract_strided_slice %94 {offsets = [0, 1, 0], sizes = [1, 16, 16], strides = [1, 1, 1]} : vector<1x22x16xf32> to vector<1x16x16xf32>
    %102 = vector.broadcast %100 : f32 to vector<1x16x16xf32>
    %103 = arith.mulf %102, %101 : vector<1x16x16xf32>
    %104 = arith.addf %99, %103 : vector<1x16x16xf32>
    %c16 = arith.constant 16 : index
    %105 = memref.load %arg2[%c16] : memref<98xf32, #tpu.memory_space<smem>>
    %106 = vector.extract_strided_slice %94 {offsets = [0, 2, 0], sizes = [1, 16, 16], strides = [1, 1, 1]} : vector<1x22x16xf32> to vector<1x16x16xf32>
    %107 = vector.broadcast %105 : f32 to vector<1x16x16xf32>
    %108 = arith.mulf %107, %106 : vector<1x16x16xf32>
    %109 = arith.addf %104, %108 : vector<1x16x16xf32>
    %c23 = arith.constant 23 : index
    %110 = memref.load %arg2[%c23] : memref<98xf32, #tpu.memory_space<smem>>
    %111 = vector.extract_strided_slice %94 {offsets = [0, 3, 0], sizes = [1, 16, 16], strides = [1, 1, 1]} : vector<1x22x16xf32> to vector<1x16x16xf32>
    %112 = vector.broadcast %110 : f32 to vector<1x16x16xf32>
    %113 = arith.mulf %112, %111 : vector<1x16x16xf32>
    %114 = arith.addf %109, %113 : vector<1x16x16xf32>
    %c30 = arith.constant 30 : index
    %115 = memref.load %arg2[%c30] : memref<98xf32, #tpu.memory_space<smem>>
    %116 = vector.extract_strided_slice %94 {offsets = [0, 4, 0], sizes = [1, 16, 16], strides = [1, 1, 1]} : vector<1x22x16xf32> to vector<1x16x16xf32>
    %117 = vector.broadcast %115 : f32 to vector<1x16x16xf32>
    %118 = arith.mulf %117, %116 : vector<1x16x16xf32>
    %119 = arith.addf %114, %118 : vector<1x16x16xf32>
    %c37 = arith.constant 37 : index
    %120 = memref.load %arg2[%c37] : memref<98xf32, #tpu.memory_space<smem>>
    %121 = vector.extract_strided_slice %94 {offsets = [0, 5, 0], sizes = [1, 16, 16], strides = [1, 1, 1]} : vector<1x22x16xf32> to vector<1x16x16xf32>
    %122 = vector.broadcast %120 : f32 to vector<1x16x16xf32>
    %123 = arith.mulf %122, %121 : vector<1x16x16xf32>
    %124 = arith.addf %119, %123 : vector<1x16x16xf32>
    %c44 = arith.constant 44 : index
    %125 = memref.load %arg2[%c44] : memref<98xf32, #tpu.memory_space<smem>>
    %126 = vector.extract_strided_slice %94 {offsets = [0, 6, 0], sizes = [1, 16, 16], strides = [1, 1, 1]} : vector<1x22x16xf32> to vector<1x16x16xf32>
    %127 = vector.broadcast %125 : f32 to vector<1x16x16xf32>
    %128 = arith.mulf %127, %126 : vector<1x16x16xf32>
    %129 = arith.addf %124, %128 : vector<1x16x16xf32>
    %c0_46 = arith.constant 0 : index
    %c0_47 = arith.constant 0 : index
    %c0_48 = arith.constant 0 : index
    %c3_49 = arith.constant 3 : index
    %130 = vector.load %arg4[%c0_46, %c0_47, %c0_48, %c3_49] : memref<2x1x22x22xf32, #tpu.memory_space<vmem>>, vector<1x1x22x16xf32>
    %131 = vector.shape_cast %130 : vector<1x1x22x16xf32> to vector<1x22x16xf32>
    %c3_50 = arith.constant 3 : index
    %132 = memref.load %arg2[%c3_50] : memref<98xf32, #tpu.memory_space<smem>>
    %133 = vector.extract_strided_slice %131 {offsets = [0, 0, 0], sizes = [1, 16, 16], strides = [1, 1, 1]} : vector<1x22x16xf32> to vector<1x16x16xf32>
    %134 = vector.broadcast %132 : f32 to vector<1x16x16xf32>
    %135 = arith.mulf %134, %133 : vector<1x16x16xf32>
    %136 = arith.addf %129, %135 : vector<1x16x16xf32>
    %c10 = arith.constant 10 : index
    %137 = memref.load %arg2[%c10] : memref<98xf32, #tpu.memory_space<smem>>
    %138 = vector.extract_strided_slice %131 {offsets = [0, 1, 0], sizes = [1, 16, 16], strides = [1, 1, 1]} : vector<1x22x16xf32> to vector<1x16x16xf32>
    %139 = vector.broadcast %137 : f32 to vector<1x16x16xf32>
    %140 = arith.mulf %139, %138 : vector<1x16x16xf32>
    %141 = arith.addf %136, %140 : vector<1x16x16xf32>
    %c17 = arith.constant 17 : index
    %142 = memref.load %arg2[%c17] : memref<98xf32, #tpu.memory_space<smem>>
    %143 = vector.extract_strided_slice %131 {offsets = [0, 2, 0], sizes = [1, 16, 16], strides = [1, 1, 1]} : vector<1x22x16xf32> to vector<1x16x16xf32>
    %144 = vector.broadcast %142 : f32 to vector<1x16x16xf32>
    %145 = arith.mulf %144, %143 : vector<1x16x16xf32>
    %146 = arith.addf %141, %145 : vector<1x16x16xf32>
    %c24 = arith.constant 24 : index
    %147 = memref.load %arg2[%c24] : memref<98xf32, #tpu.memory_space<smem>>
    %148 = vector.extract_strided_slice %131 {offsets = [0, 3, 0], sizes = [1, 16, 16], strides = [1, 1, 1]} : vector<1x22x16xf32> to vector<1x16x16xf32>
    %149 = vector.broadcast %147 : f32 to vector<1x16x16xf32>
    %150 = arith.mulf %149, %148 : vector<1x16x16xf32>
    %151 = arith.addf %146, %150 : vector<1x16x16xf32>
    %c31 = arith.constant 31 : index
    %152 = memref.load %arg2[%c31] : memref<98xf32, #tpu.memory_space<smem>>
    %153 = vector.extract_strided_slice %131 {offsets = [0, 4, 0], sizes = [1, 16, 16], strides = [1, 1, 1]} : vector<1x22x16xf32> to vector<1x16x16xf32>
    %154 = vector.broadcast %152 : f32 to vector<1x16x16xf32>
    %155 = arith.mulf %154, %153 : vector<1x16x16xf32>
    %156 = arith.addf %151, %155 : vector<1x16x16xf32>
    %c38 = arith.constant 38 : index
    %157 = memref.load %arg2[%c38] : memref<98xf32, #tpu.memory_space<smem>>
    %158 = vector.extract_strided_slice %131 {offsets = [0, 5, 0], sizes = [1, 16, 16], strides = [1, 1, 1]} : vector<1x22x16xf32> to vector<1x16x16xf32>
    %159 = vector.broadcast %157 : f32 to vector<1x16x16xf32>
    %160 = arith.mulf %159, %158 : vector<1x16x16xf32>
    %161 = arith.addf %156, %160 : vector<1x16x16xf32>
    %c45 = arith.constant 45 : index
    %162 = memref.load %arg2[%c45] : memref<98xf32, #tpu.memory_space<smem>>
    %163 = vector.extract_strided_slice %131 {offsets = [0, 6, 0], sizes = [1, 16, 16], strides = [1, 1, 1]} : vector<1x22x16xf32> to vector<1x16x16xf32>
    %164 = vector.broadcast %162 : f32 to vector<1x16x16xf32>
    %165 = arith.mulf %164, %163 : vector<1x16x16xf32>
    %166 = arith.addf %161, %165 : vector<1x16x16xf32>
    %c0_51 = arith.constant 0 : index
    %c0_52 = arith.constant 0 : index
    %c0_53 = arith.constant 0 : index
    %c4 = arith.constant 4 : index
    %167 = vector.load %arg4[%c0_51, %c0_52, %c0_53, %c4] : memref<2x1x22x22xf32, #tpu.memory_space<vmem>>, vector<1x1x22x16xf32>
    %168 = vector.shape_cast %167 : vector<1x1x22x16xf32> to vector<1x22x16xf32>
    %c4_54 = arith.constant 4 : index
    %169 = memref.load %arg2[%c4_54] : memref<98xf32, #tpu.memory_space<smem>>
    %170 = vector.extract_strided_slice %168 {offsets = [0, 0, 0], sizes = [1, 16, 16], strides = [1, 1, 1]} : vector<1x22x16xf32> to vector<1x16x16xf32>
    %171 = vector.broadcast %169 : f32 to vector<1x16x16xf32>
    %172 = arith.mulf %171, %170 : vector<1x16x16xf32>
    %173 = arith.addf %166, %172 : vector<1x16x16xf32>
    %c11 = arith.constant 11 : index
    %174 = memref.load %arg2[%c11] : memref<98xf32, #tpu.memory_space<smem>>
    %175 = vector.extract_strided_slice %168 {offsets = [0, 1, 0], sizes = [1, 16, 16], strides = [1, 1, 1]} : vector<1x22x16xf32> to vector<1x16x16xf32>
    %176 = vector.broadcast %174 : f32 to vector<1x16x16xf32>
    %177 = arith.mulf %176, %175 : vector<1x16x16xf32>
    %178 = arith.addf %173, %177 : vector<1x16x16xf32>
    %c18 = arith.constant 18 : index
    %179 = memref.load %arg2[%c18] : memref<98xf32, #tpu.memory_space<smem>>
    %180 = vector.extract_strided_slice %168 {offsets = [0, 2, 0], sizes = [1, 16, 16], strides = [1, 1, 1]} : vector<1x22x16xf32> to vector<1x16x16xf32>
    %181 = vector.broadcast %179 : f32 to vector<1x16x16xf32>
    %182 = arith.mulf %181, %180 : vector<1x16x16xf32>
    %183 = arith.addf %178, %182 : vector<1x16x16xf32>
    %c25 = arith.constant 25 : index
    %184 = memref.load %arg2[%c25] : memref<98xf32, #tpu.memory_space<smem>>
    %185 = vector.extract_strided_slice %168 {offsets = [0, 3, 0], sizes = [1, 16, 16], strides = [1, 1, 1]} : vector<1x22x16xf32> to vector<1x16x16xf32>
    %186 = vector.broadcast %184 : f32 to vector<1x16x16xf32>
    %187 = arith.mulf %186, %185 : vector<1x16x16xf32>
    %188 = arith.addf %183, %187 : vector<1x16x16xf32>
    %c32 = arith.constant 32 : index
    %189 = memref.load %arg2[%c32] : memref<98xf32, #tpu.memory_space<smem>>
    %190 = vector.extract_strided_slice %168 {offsets = [0, 4, 0], sizes = [1, 16, 16], strides = [1, 1, 1]} : vector<1x22x16xf32> to vector<1x16x16xf32>
    %191 = vector.broadcast %189 : f32 to vector<1x16x16xf32>
    %192 = arith.mulf %191, %190 : vector<1x16x16xf32>
    %193 = arith.addf %188, %192 : vector<1x16x16xf32>
    %c39 = arith.constant 39 : index
    %194 = memref.load %arg2[%c39] : memref<98xf32, #tpu.memory_space<smem>>
    %195 = vector.extract_strided_slice %168 {offsets = [0, 5, 0], sizes = [1, 16, 16], strides = [1, 1, 1]} : vector<1x22x16xf32> to vector<1x16x16xf32>
    %196 = vector.broadcast %194 : f32 to vector<1x16x16xf32>
    %197 = arith.mulf %196, %195 : vector<1x16x16xf32>
    %198 = arith.addf %193, %197 : vector<1x16x16xf32>
    %c46 = arith.constant 46 : index
    %199 = memref.load %arg2[%c46] : memref<98xf32, #tpu.memory_space<smem>>
    %200 = vector.extract_strided_slice %168 {offsets = [0, 6, 0], sizes = [1, 16, 16], strides = [1, 1, 1]} : vector<1x22x16xf32> to vector<1x16x16xf32>
    %201 = vector.broadcast %199 : f32 to vector<1x16x16xf32>
    %202 = arith.mulf %201, %200 : vector<1x16x16xf32>
    %203 = arith.addf %198, %202 : vector<1x16x16xf32>
    %c0_55 = arith.constant 0 : index
    %c0_56 = arith.constant 0 : index
    %c0_57 = arith.constant 0 : index
    %c5 = arith.constant 5 : index
    %204 = vector.load %arg4[%c0_55, %c0_56, %c0_57, %c5] : memref<2x1x22x22xf32, #tpu.memory_space<vmem>>, vector<1x1x22x16xf32>
    %205 = vector.shape_cast %204 : vector<1x1x22x16xf32> to vector<1x22x16xf32>
    %c5_58 = arith.constant 5 : index
    %206 = memref.load %arg2[%c5_58] : memref<98xf32, #tpu.memory_space<smem>>
    %207 = vector.extract_strided_slice %205 {offsets = [0, 0, 0], sizes = [1, 16, 16], strides = [1, 1, 1]} : vector<1x22x16xf32> to vector<1x16x16xf32>
    %208 = vector.broadcast %206 : f32 to vector<1x16x16xf32>
    %209 = arith.mulf %208, %207 : vector<1x16x16xf32>
    %210 = arith.addf %203, %209 : vector<1x16x16xf32>
    %c12 = arith.constant 12 : index
    %211 = memref.load %arg2[%c12] : memref<98xf32, #tpu.memory_space<smem>>
    %212 = vector.extract_strided_slice %205 {offsets = [0, 1, 0], sizes = [1, 16, 16], strides = [1, 1, 1]} : vector<1x22x16xf32> to vector<1x16x16xf32>
    %213 = vector.broadcast %211 : f32 to vector<1x16x16xf32>
    %214 = arith.mulf %213, %212 : vector<1x16x16xf32>
    %215 = arith.addf %210, %214 : vector<1x16x16xf32>
    %c19_59 = arith.constant 19 : index
    %216 = memref.load %arg2[%c19_59] : memref<98xf32, #tpu.memory_space<smem>>
    %217 = vector.extract_strided_slice %205 {offsets = [0, 2, 0], sizes = [1, 16, 16], strides = [1, 1, 1]} : vector<1x22x16xf32> to vector<1x16x16xf32>
    %218 = vector.broadcast %216 : f32 to vector<1x16x16xf32>
    %219 = arith.mulf %218, %217 : vector<1x16x16xf32>
    %220 = arith.addf %215, %219 : vector<1x16x16xf32>
    %c26 = arith.constant 26 : index
    %221 = memref.load %arg2[%c26] : memref<98xf32, #tpu.memory_space<smem>>
    %222 = vector.extract_strided_slice %205 {offsets = [0, 3, 0], sizes = [1, 16, 16], strides = [1, 1, 1]} : vector<1x22x16xf32> to vector<1x16x16xf32>
    %223 = vector.broadcast %221 : f32 to vector<1x16x16xf32>
    %224 = arith.mulf %223, %222 : vector<1x16x16xf32>
    %225 = arith.addf %220, %224 : vector<1x16x16xf32>
    %c33 = arith.constant 33 : index
    %226 = memref.load %arg2[%c33] : memref<98xf32, #tpu.memory_space<smem>>
    %227 = vector.extract_strided_slice %205 {offsets = [0, 4, 0], sizes = [1, 16, 16], strides = [1, 1, 1]} : vector<1x22x16xf32> to vector<1x16x16xf32>
    %228 = vector.broadcast %226 : f32 to vector<1x16x16xf32>
    %229 = arith.mulf %228, %227 : vector<1x16x16xf32>
    %230 = arith.addf %225, %229 : vector<1x16x16xf32>
    %c40 = arith.constant 40 : index
    %231 = memref.load %arg2[%c40] : memref<98xf32, #tpu.memory_space<smem>>
    %232 = vector.extract_strided_slice %205 {offsets = [0, 5, 0], sizes = [1, 16, 16], strides = [1, 1, 1]} : vector<1x22x16xf32> to vector<1x16x16xf32>
    %233 = vector.broadcast %231 : f32 to vector<1x16x16xf32>
    %234 = arith.mulf %233, %232 : vector<1x16x16xf32>
    %235 = arith.addf %230, %234 : vector<1x16x16xf32>
    %c47 = arith.constant 47 : index
    %236 = memref.load %arg2[%c47] : memref<98xf32, #tpu.memory_space<smem>>
    %237 = vector.extract_strided_slice %205 {offsets = [0, 6, 0], sizes = [1, 16, 16], strides = [1, 1, 1]} : vector<1x22x16xf32> to vector<1x16x16xf32>
    %238 = vector.broadcast %236 : f32 to vector<1x16x16xf32>
    %239 = arith.mulf %238, %237 : vector<1x16x16xf32>
    %240 = arith.addf %235, %239 : vector<1x16x16xf32>
    %c0_60 = arith.constant 0 : index
    %c0_61 = arith.constant 0 : index
    %c0_62 = arith.constant 0 : index
    %c6 = arith.constant 6 : index
    %241 = vector.load %arg4[%c0_60, %c0_61, %c0_62, %c6] : memref<2x1x22x22xf32, #tpu.memory_space<vmem>>, vector<1x1x22x16xf32>
    %242 = vector.shape_cast %241 : vector<1x1x22x16xf32> to vector<1x22x16xf32>
    %c6_63 = arith.constant 6 : index
    %243 = memref.load %arg2[%c6_63] : memref<98xf32, #tpu.memory_space<smem>>
    %244 = vector.extract_strided_slice %242 {offsets = [0, 0, 0], sizes = [1, 16, 16], strides = [1, 1, 1]} : vector<1x22x16xf32> to vector<1x16x16xf32>
    %245 = vector.broadcast %243 : f32 to vector<1x16x16xf32>
    %246 = arith.mulf %245, %244 : vector<1x16x16xf32>
    %247 = arith.addf %240, %246 : vector<1x16x16xf32>
    %c13 = arith.constant 13 : index
    %248 = memref.load %arg2[%c13] : memref<98xf32, #tpu.memory_space<smem>>
    %249 = vector.extract_strided_slice %242 {offsets = [0, 1, 0], sizes = [1, 16, 16], strides = [1, 1, 1]} : vector<1x22x16xf32> to vector<1x16x16xf32>
    %250 = vector.broadcast %248 : f32 to vector<1x16x16xf32>
    %251 = arith.mulf %250, %249 : vector<1x16x16xf32>
    %252 = arith.addf %247, %251 : vector<1x16x16xf32>
    %c20 = arith.constant 20 : index
    %253 = memref.load %arg2[%c20] : memref<98xf32, #tpu.memory_space<smem>>
    %254 = vector.extract_strided_slice %242 {offsets = [0, 2, 0], sizes = [1, 16, 16], strides = [1, 1, 1]} : vector<1x22x16xf32> to vector<1x16x16xf32>
    %255 = vector.broadcast %253 : f32 to vector<1x16x16xf32>
    %256 = arith.mulf %255, %254 : vector<1x16x16xf32>
    %257 = arith.addf %252, %256 : vector<1x16x16xf32>
    %c27 = arith.constant 27 : index
    %258 = memref.load %arg2[%c27] : memref<98xf32, #tpu.memory_space<smem>>
    %259 = vector.extract_strided_slice %242 {offsets = [0, 3, 0], sizes = [1, 16, 16], strides = [1, 1, 1]} : vector<1x22x16xf32> to vector<1x16x16xf32>
    %260 = vector.broadcast %258 : f32 to vector<1x16x16xf32>
    %261 = arith.mulf %260, %259 : vector<1x16x16xf32>
    %262 = arith.addf %257, %261 : vector<1x16x16xf32>
    %c34 = arith.constant 34 : index
    %263 = memref.load %arg2[%c34] : memref<98xf32, #tpu.memory_space<smem>>
    %264 = vector.extract_strided_slice %242 {offsets = [0, 4, 0], sizes = [1, 16, 16], strides = [1, 1, 1]} : vector<1x22x16xf32> to vector<1x16x16xf32>
    %265 = vector.broadcast %263 : f32 to vector<1x16x16xf32>
    %266 = arith.mulf %265, %264 : vector<1x16x16xf32>
    %267 = arith.addf %262, %266 : vector<1x16x16xf32>
    %c41 = arith.constant 41 : index
    %268 = memref.load %arg2[%c41] : memref<98xf32, #tpu.memory_space<smem>>
    %269 = vector.extract_strided_slice %242 {offsets = [0, 5, 0], sizes = [1, 16, 16], strides = [1, 1, 1]} : vector<1x22x16xf32> to vector<1x16x16xf32>
    %270 = vector.broadcast %268 : f32 to vector<1x16x16xf32>
    %271 = arith.mulf %270, %269 : vector<1x16x16xf32>
    %272 = arith.addf %267, %271 : vector<1x16x16xf32>
    %c48 = arith.constant 48 : index
    %273 = memref.load %arg2[%c48] : memref<98xf32, #tpu.memory_space<smem>>
    %274 = vector.extract_strided_slice %242 {offsets = [0, 6, 0], sizes = [1, 16, 16], strides = [1, 1, 1]} : vector<1x22x16xf32> to vector<1x16x16xf32>
    %275 = vector.broadcast %273 : f32 to vector<1x16x16xf32>
    %276 = arith.mulf %275, %274 : vector<1x16x16xf32>
    %277 = arith.addf %272, %276 : vector<1x16x16xf32>
    %c1_64 = arith.constant 1 : index
    %c0_65 = arith.constant 0 : index
    %c0_66 = arith.constant 0 : index
    %c0_67 = arith.constant 0 : index
    %278 = vector.load %arg4[%c1_64, %c0_65, %c0_66, %c0_67] : memref<2x1x22x22xf32, #tpu.memory_space<vmem>>, vector<1x1x22x16xf32>
    %279 = vector.shape_cast %278 : vector<1x1x22x16xf32> to vector<1x22x16xf32>
    %c49 = arith.constant 49 : index
    %280 = memref.load %arg2[%c49] : memref<98xf32, #tpu.memory_space<smem>>
    %281 = vector.extract_strided_slice %279 {offsets = [0, 0, 0], sizes = [1, 16, 16], strides = [1, 1, 1]} : vector<1x22x16xf32> to vector<1x16x16xf32>
    %282 = vector.broadcast %280 : f32 to vector<1x16x16xf32>
    %283 = arith.mulf %282, %281 : vector<1x16x16xf32>
    %284 = arith.addf %277, %283 : vector<1x16x16xf32>
    %c56 = arith.constant 56 : index
    %285 = memref.load %arg2[%c56] : memref<98xf32, #tpu.memory_space<smem>>
    %286 = vector.extract_strided_slice %279 {offsets = [0, 1, 0], sizes = [1, 16, 16], strides = [1, 1, 1]} : vector<1x22x16xf32> to vector<1x16x16xf32>
    %287 = vector.broadcast %285 : f32 to vector<1x16x16xf32>
    %288 = arith.mulf %287, %286 : vector<1x16x16xf32>
    %289 = arith.addf %284, %288 : vector<1x16x16xf32>
    %c63 = arith.constant 63 : index
    %290 = memref.load %arg2[%c63] : memref<98xf32, #tpu.memory_space<smem>>
    %291 = vector.extract_strided_slice %279 {offsets = [0, 2, 0], sizes = [1, 16, 16], strides = [1, 1, 1]} : vector<1x22x16xf32> to vector<1x16x16xf32>
    %292 = vector.broadcast %290 : f32 to vector<1x16x16xf32>
    %293 = arith.mulf %292, %291 : vector<1x16x16xf32>
    %294 = arith.addf %289, %293 : vector<1x16x16xf32>
    %c70 = arith.constant 70 : index
    %295 = memref.load %arg2[%c70] : memref<98xf32, #tpu.memory_space<smem>>
    %296 = vector.extract_strided_slice %279 {offsets = [0, 3, 0], sizes = [1, 16, 16], strides = [1, 1, 1]} : vector<1x22x16xf32> to vector<1x16x16xf32>
    %297 = vector.broadcast %295 : f32 to vector<1x16x16xf32>
    %298 = arith.mulf %297, %296 : vector<1x16x16xf32>
    %299 = arith.addf %294, %298 : vector<1x16x16xf32>
    %c77 = arith.constant 77 : index
    %300 = memref.load %arg2[%c77] : memref<98xf32, #tpu.memory_space<smem>>
    %301 = vector.extract_strided_slice %279 {offsets = [0, 4, 0], sizes = [1, 16, 16], strides = [1, 1, 1]} : vector<1x22x16xf32> to vector<1x16x16xf32>
    %302 = vector.broadcast %300 : f32 to vector<1x16x16xf32>
    %303 = arith.mulf %302, %301 : vector<1x16x16xf32>
    %304 = arith.addf %299, %303 : vector<1x16x16xf32>
    %c84 = arith.constant 84 : index
    %305 = memref.load %arg2[%c84] : memref<98xf32, #tpu.memory_space<smem>>
    %306 = vector.extract_strided_slice %279 {offsets = [0, 5, 0], sizes = [1, 16, 16], strides = [1, 1, 1]} : vector<1x22x16xf32> to vector<1x16x16xf32>
    %307 = vector.broadcast %305 : f32 to vector<1x16x16xf32>
    %308 = arith.mulf %307, %306 : vector<1x16x16xf32>
    %309 = arith.addf %304, %308 : vector<1x16x16xf32>
    %c91 = arith.constant 91 : index
    %310 = memref.load %arg2[%c91] : memref<98xf32, #tpu.memory_space<smem>>
    %311 = vector.extract_strided_slice %279 {offsets = [0, 6, 0], sizes = [1, 16, 16], strides = [1, 1, 1]} : vector<1x22x16xf32> to vector<1x16x16xf32>
    %312 = vector.broadcast %310 : f32 to vector<1x16x16xf32>
    %313 = arith.mulf %312, %311 : vector<1x16x16xf32>
    %314 = arith.addf %309, %313 : vector<1x16x16xf32>
    %c1_68 = arith.constant 1 : index
    %c0_69 = arith.constant 0 : index
    %c0_70 = arith.constant 0 : index
    %c1_71 = arith.constant 1 : index
    %315 = vector.load %arg4[%c1_68, %c0_69, %c0_70, %c1_71] : memref<2x1x22x22xf32, #tpu.memory_space<vmem>>, vector<1x1x22x16xf32>
    %316 = vector.shape_cast %315 : vector<1x1x22x16xf32> to vector<1x22x16xf32>
    %c50 = arith.constant 50 : index
    %317 = memref.load %arg2[%c50] : memref<98xf32, #tpu.memory_space<smem>>
    %318 = vector.extract_strided_slice %316 {offsets = [0, 0, 0], sizes = [1, 16, 16], strides = [1, 1, 1]} : vector<1x22x16xf32> to vector<1x16x16xf32>
    %319 = vector.broadcast %317 : f32 to vector<1x16x16xf32>
    %320 = arith.mulf %319, %318 : vector<1x16x16xf32>
    %321 = arith.addf %314, %320 : vector<1x16x16xf32>
    %c57 = arith.constant 57 : index
    %322 = memref.load %arg2[%c57] : memref<98xf32, #tpu.memory_space<smem>>
    %323 = vector.extract_strided_slice %316 {offsets = [0, 1, 0], sizes = [1, 16, 16], strides = [1, 1, 1]} : vector<1x22x16xf32> to vector<1x16x16xf32>
    %324 = vector.broadcast %322 : f32 to vector<1x16x16xf32>
    %325 = arith.mulf %324, %323 : vector<1x16x16xf32>
    %326 = arith.addf %321, %325 : vector<1x16x16xf32>
    %c64 = arith.constant 64 : index
    %327 = memref.load %arg2[%c64] : memref<98xf32, #tpu.memory_space<smem>>
    %328 = vector.extract_strided_slice %316 {offsets = [0, 2, 0], sizes = [1, 16, 16], strides = [1, 1, 1]} : vector<1x22x16xf32> to vector<1x16x16xf32>
    %329 = vector.broadcast %327 : f32 to vector<1x16x16xf32>
    %330 = arith.mulf %329, %328 : vector<1x16x16xf32>
    %331 = arith.addf %326, %330 : vector<1x16x16xf32>
    %c71 = arith.constant 71 : index
    %332 = memref.load %arg2[%c71] : memref<98xf32, #tpu.memory_space<smem>>
    %333 = vector.extract_strided_slice %316 {offsets = [0, 3, 0], sizes = [1, 16, 16], strides = [1, 1, 1]} : vector<1x22x16xf32> to vector<1x16x16xf32>
    %334 = vector.broadcast %332 : f32 to vector<1x16x16xf32>
    %335 = arith.mulf %334, %333 : vector<1x16x16xf32>
    %336 = arith.addf %331, %335 : vector<1x16x16xf32>
    %c78 = arith.constant 78 : index
    %337 = memref.load %arg2[%c78] : memref<98xf32, #tpu.memory_space<smem>>
    %338 = vector.extract_strided_slice %316 {offsets = [0, 4, 0], sizes = [1, 16, 16], strides = [1, 1, 1]} : vector<1x22x16xf32> to vector<1x16x16xf32>
    %339 = vector.broadcast %337 : f32 to vector<1x16x16xf32>
    %340 = arith.mulf %339, %338 : vector<1x16x16xf32>
    %341 = arith.addf %336, %340 : vector<1x16x16xf32>
    %c85 = arith.constant 85 : index
    %342 = memref.load %arg2[%c85] : memref<98xf32, #tpu.memory_space<smem>>
    %343 = vector.extract_strided_slice %316 {offsets = [0, 5, 0], sizes = [1, 16, 16], strides = [1, 1, 1]} : vector<1x22x16xf32> to vector<1x16x16xf32>
    %344 = vector.broadcast %342 : f32 to vector<1x16x16xf32>
    %345 = arith.mulf %344, %343 : vector<1x16x16xf32>
    %346 = arith.addf %341, %345 : vector<1x16x16xf32>
    %c92 = arith.constant 92 : index
    %347 = memref.load %arg2[%c92] : memref<98xf32, #tpu.memory_space<smem>>
    %348 = vector.extract_strided_slice %316 {offsets = [0, 6, 0], sizes = [1, 16, 16], strides = [1, 1, 1]} : vector<1x22x16xf32> to vector<1x16x16xf32>
    %349 = vector.broadcast %347 : f32 to vector<1x16x16xf32>
    %350 = arith.mulf %349, %348 : vector<1x16x16xf32>
    %351 = arith.addf %346, %350 : vector<1x16x16xf32>
    %c1_72 = arith.constant 1 : index
    %c0_73 = arith.constant 0 : index
    %c0_74 = arith.constant 0 : index
    %c2_75 = arith.constant 2 : index
    %352 = vector.load %arg4[%c1_72, %c0_73, %c0_74, %c2_75] : memref<2x1x22x22xf32, #tpu.memory_space<vmem>>, vector<1x1x22x16xf32>
    %353 = vector.shape_cast %352 : vector<1x1x22x16xf32> to vector<1x22x16xf32>
    %c51 = arith.constant 51 : index
    %354 = memref.load %arg2[%c51] : memref<98xf32, #tpu.memory_space<smem>>
    %355 = vector.extract_strided_slice %353 {offsets = [0, 0, 0], sizes = [1, 16, 16], strides = [1, 1, 1]} : vector<1x22x16xf32> to vector<1x16x16xf32>
    %356 = vector.broadcast %354 : f32 to vector<1x16x16xf32>
    %357 = arith.mulf %356, %355 : vector<1x16x16xf32>
    %358 = arith.addf %351, %357 : vector<1x16x16xf32>
    %c58 = arith.constant 58 : index
    %359 = memref.load %arg2[%c58] : memref<98xf32, #tpu.memory_space<smem>>
    %360 = vector.extract_strided_slice %353 {offsets = [0, 1, 0], sizes = [1, 16, 16], strides = [1, 1, 1]} : vector<1x22x16xf32> to vector<1x16x16xf32>
    %361 = vector.broadcast %359 : f32 to vector<1x16x16xf32>
    %362 = arith.mulf %361, %360 : vector<1x16x16xf32>
    %363 = arith.addf %358, %362 : vector<1x16x16xf32>
    %c65 = arith.constant 65 : index
    %364 = memref.load %arg2[%c65] : memref<98xf32, #tpu.memory_space<smem>>
    %365 = vector.extract_strided_slice %353 {offsets = [0, 2, 0], sizes = [1, 16, 16], strides = [1, 1, 1]} : vector<1x22x16xf32> to vector<1x16x16xf32>
    %366 = vector.broadcast %364 : f32 to vector<1x16x16xf32>
    %367 = arith.mulf %366, %365 : vector<1x16x16xf32>
    %368 = arith.addf %363, %367 : vector<1x16x16xf32>
    %c72 = arith.constant 72 : index
    %369 = memref.load %arg2[%c72] : memref<98xf32, #tpu.memory_space<smem>>
    %370 = vector.extract_strided_slice %353 {offsets = [0, 3, 0], sizes = [1, 16, 16], strides = [1, 1, 1]} : vector<1x22x16xf32> to vector<1x16x16xf32>
    %371 = vector.broadcast %369 : f32 to vector<1x16x16xf32>
    %372 = arith.mulf %371, %370 : vector<1x16x16xf32>
    %373 = arith.addf %368, %372 : vector<1x16x16xf32>
    %c79 = arith.constant 79 : index
    %374 = memref.load %arg2[%c79] : memref<98xf32, #tpu.memory_space<smem>>
    %375 = vector.extract_strided_slice %353 {offsets = [0, 4, 0], sizes = [1, 16, 16], strides = [1, 1, 1]} : vector<1x22x16xf32> to vector<1x16x16xf32>
    %376 = vector.broadcast %374 : f32 to vector<1x16x16xf32>
    %377 = arith.mulf %376, %375 : vector<1x16x16xf32>
    %378 = arith.addf %373, %377 : vector<1x16x16xf32>
    %c86 = arith.constant 86 : index
    %379 = memref.load %arg2[%c86] : memref<98xf32, #tpu.memory_space<smem>>
    %380 = vector.extract_strided_slice %353 {offsets = [0, 5, 0], sizes = [1, 16, 16], strides = [1, 1, 1]} : vector<1x22x16xf32> to vector<1x16x16xf32>
    %381 = vector.broadcast %379 : f32 to vector<1x16x16xf32>
    %382 = arith.mulf %381, %380 : vector<1x16x16xf32>
    %383 = arith.addf %378, %382 : vector<1x16x16xf32>
    %c93 = arith.constant 93 : index
    %384 = memref.load %arg2[%c93] : memref<98xf32, #tpu.memory_space<smem>>
    %385 = vector.extract_strided_slice %353 {offsets = [0, 6, 0], sizes = [1, 16, 16], strides = [1, 1, 1]} : vector<1x22x16xf32> to vector<1x16x16xf32>
    %386 = vector.broadcast %384 : f32 to vector<1x16x16xf32>
    %387 = arith.mulf %386, %385 : vector<1x16x16xf32>
    %388 = arith.addf %383, %387 : vector<1x16x16xf32>
    %c1_76 = arith.constant 1 : index
    %c0_77 = arith.constant 0 : index
    %c0_78 = arith.constant 0 : index
    %c3_79 = arith.constant 3 : index
    %389 = vector.load %arg4[%c1_76, %c0_77, %c0_78, %c3_79] : memref<2x1x22x22xf32, #tpu.memory_space<vmem>>, vector<1x1x22x16xf32>
    %390 = vector.shape_cast %389 : vector<1x1x22x16xf32> to vector<1x22x16xf32>
    %c52 = arith.constant 52 : index
    %391 = memref.load %arg2[%c52] : memref<98xf32, #tpu.memory_space<smem>>
    %392 = vector.extract_strided_slice %390 {offsets = [0, 0, 0], sizes = [1, 16, 16], strides = [1, 1, 1]} : vector<1x22x16xf32> to vector<1x16x16xf32>
    %393 = vector.broadcast %391 : f32 to vector<1x16x16xf32>
    %394 = arith.mulf %393, %392 : vector<1x16x16xf32>
    %395 = arith.addf %388, %394 : vector<1x16x16xf32>
    %c59 = arith.constant 59 : index
    %396 = memref.load %arg2[%c59] : memref<98xf32, #tpu.memory_space<smem>>
    %397 = vector.extract_strided_slice %390 {offsets = [0, 1, 0], sizes = [1, 16, 16], strides = [1, 1, 1]} : vector<1x22x16xf32> to vector<1x16x16xf32>
    %398 = vector.broadcast %396 : f32 to vector<1x16x16xf32>
    %399 = arith.mulf %398, %397 : vector<1x16x16xf32>
    %400 = arith.addf %395, %399 : vector<1x16x16xf32>
    %c66 = arith.constant 66 : index
    %401 = memref.load %arg2[%c66] : memref<98xf32, #tpu.memory_space<smem>>
    %402 = vector.extract_strided_slice %390 {offsets = [0, 2, 0], sizes = [1, 16, 16], strides = [1, 1, 1]} : vector<1x22x16xf32> to vector<1x16x16xf32>
    %403 = vector.broadcast %401 : f32 to vector<1x16x16xf32>
    %404 = arith.mulf %403, %402 : vector<1x16x16xf32>
    %405 = arith.addf %400, %404 : vector<1x16x16xf32>
    %c73 = arith.constant 73 : index
    %406 = memref.load %arg2[%c73] : memref<98xf32, #tpu.memory_space<smem>>
    %407 = vector.extract_strided_slice %390 {offsets = [0, 3, 0], sizes = [1, 16, 16], strides = [1, 1, 1]} : vector<1x22x16xf32> to vector<1x16x16xf32>
    %408 = vector.broadcast %406 : f32 to vector<1x16x16xf32>
    %409 = arith.mulf %408, %407 : vector<1x16x16xf32>
    %410 = arith.addf %405, %409 : vector<1x16x16xf32>
    %c80 = arith.constant 80 : index
    %411 = memref.load %arg2[%c80] : memref<98xf32, #tpu.memory_space<smem>>
    %412 = vector.extract_strided_slice %390 {offsets = [0, 4, 0], sizes = [1, 16, 16], strides = [1, 1, 1]} : vector<1x22x16xf32> to vector<1x16x16xf32>
    %413 = vector.broadcast %411 : f32 to vector<1x16x16xf32>
    %414 = arith.mulf %413, %412 : vector<1x16x16xf32>
    %415 = arith.addf %410, %414 : vector<1x16x16xf32>
    %c87 = arith.constant 87 : index
    %416 = memref.load %arg2[%c87] : memref<98xf32, #tpu.memory_space<smem>>
    %417 = vector.extract_strided_slice %390 {offsets = [0, 5, 0], sizes = [1, 16, 16], strides = [1, 1, 1]} : vector<1x22x16xf32> to vector<1x16x16xf32>
    %418 = vector.broadcast %416 : f32 to vector<1x16x16xf32>
    %419 = arith.mulf %418, %417 : vector<1x16x16xf32>
    %420 = arith.addf %415, %419 : vector<1x16x16xf32>
    %c94 = arith.constant 94 : index
    %421 = memref.load %arg2[%c94] : memref<98xf32, #tpu.memory_space<smem>>
    %422 = vector.extract_strided_slice %390 {offsets = [0, 6, 0], sizes = [1, 16, 16], strides = [1, 1, 1]} : vector<1x22x16xf32> to vector<1x16x16xf32>
    %423 = vector.broadcast %421 : f32 to vector<1x16x16xf32>
    %424 = arith.mulf %423, %422 : vector<1x16x16xf32>
    %425 = arith.addf %420, %424 : vector<1x16x16xf32>
    %c1_80 = arith.constant 1 : index
    %c0_81 = arith.constant 0 : index
    %c0_82 = arith.constant 0 : index
    %c4_83 = arith.constant 4 : index
    %426 = vector.load %arg4[%c1_80, %c0_81, %c0_82, %c4_83] : memref<2x1x22x22xf32, #tpu.memory_space<vmem>>, vector<1x1x22x16xf32>
    %427 = vector.shape_cast %426 : vector<1x1x22x16xf32> to vector<1x22x16xf32>
    %c53 = arith.constant 53 : index
    %428 = memref.load %arg2[%c53] : memref<98xf32, #tpu.memory_space<smem>>
    %429 = vector.extract_strided_slice %427 {offsets = [0, 0, 0], sizes = [1, 16, 16], strides = [1, 1, 1]} : vector<1x22x16xf32> to vector<1x16x16xf32>
    %430 = vector.broadcast %428 : f32 to vector<1x16x16xf32>
    %431 = arith.mulf %430, %429 : vector<1x16x16xf32>
    %432 = arith.addf %425, %431 : vector<1x16x16xf32>
    %c60 = arith.constant 60 : index
    %433 = memref.load %arg2[%c60] : memref<98xf32, #tpu.memory_space<smem>>
    %434 = vector.extract_strided_slice %427 {offsets = [0, 1, 0], sizes = [1, 16, 16], strides = [1, 1, 1]} : vector<1x22x16xf32> to vector<1x16x16xf32>
    %435 = vector.broadcast %433 : f32 to vector<1x16x16xf32>
    %436 = arith.mulf %435, %434 : vector<1x16x16xf32>
    %437 = arith.addf %432, %436 : vector<1x16x16xf32>
    %c67 = arith.constant 67 : index
    %438 = memref.load %arg2[%c67] : memref<98xf32, #tpu.memory_space<smem>>
    %439 = vector.extract_strided_slice %427 {offsets = [0, 2, 0], sizes = [1, 16, 16], strides = [1, 1, 1]} : vector<1x22x16xf32> to vector<1x16x16xf32>
    %440 = vector.broadcast %438 : f32 to vector<1x16x16xf32>
    %441 = arith.mulf %440, %439 : vector<1x16x16xf32>
    %442 = arith.addf %437, %441 : vector<1x16x16xf32>
    %c74 = arith.constant 74 : index
    %443 = memref.load %arg2[%c74] : memref<98xf32, #tpu.memory_space<smem>>
    %444 = vector.extract_strided_slice %427 {offsets = [0, 3, 0], sizes = [1, 16, 16], strides = [1, 1, 1]} : vector<1x22x16xf32> to vector<1x16x16xf32>
    %445 = vector.broadcast %443 : f32 to vector<1x16x16xf32>
    %446 = arith.mulf %445, %444 : vector<1x16x16xf32>
    %447 = arith.addf %442, %446 : vector<1x16x16xf32>
    %c81 = arith.constant 81 : index
    %448 = memref.load %arg2[%c81] : memref<98xf32, #tpu.memory_space<smem>>
    %449 = vector.extract_strided_slice %427 {offsets = [0, 4, 0], sizes = [1, 16, 16], strides = [1, 1, 1]} : vector<1x22x16xf32> to vector<1x16x16xf32>
    %450 = vector.broadcast %448 : f32 to vector<1x16x16xf32>
    %451 = arith.mulf %450, %449 : vector<1x16x16xf32>
    %452 = arith.addf %447, %451 : vector<1x16x16xf32>
    %c88 = arith.constant 88 : index
    %453 = memref.load %arg2[%c88] : memref<98xf32, #tpu.memory_space<smem>>
    %454 = vector.extract_strided_slice %427 {offsets = [0, 5, 0], sizes = [1, 16, 16], strides = [1, 1, 1]} : vector<1x22x16xf32> to vector<1x16x16xf32>
    %455 = vector.broadcast %453 : f32 to vector<1x16x16xf32>
    %456 = arith.mulf %455, %454 : vector<1x16x16xf32>
    %457 = arith.addf %452, %456 : vector<1x16x16xf32>
    %c95 = arith.constant 95 : index
    %458 = memref.load %arg2[%c95] : memref<98xf32, #tpu.memory_space<smem>>
    %459 = vector.extract_strided_slice %427 {offsets = [0, 6, 0], sizes = [1, 16, 16], strides = [1, 1, 1]} : vector<1x22x16xf32> to vector<1x16x16xf32>
    %460 = vector.broadcast %458 : f32 to vector<1x16x16xf32>
    %461 = arith.mulf %460, %459 : vector<1x16x16xf32>
    %462 = arith.addf %457, %461 : vector<1x16x16xf32>
    %c1_84 = arith.constant 1 : index
    %c0_85 = arith.constant 0 : index
    %c0_86 = arith.constant 0 : index
    %c5_87 = arith.constant 5 : index
    %463 = vector.load %arg4[%c1_84, %c0_85, %c0_86, %c5_87] : memref<2x1x22x22xf32, #tpu.memory_space<vmem>>, vector<1x1x22x16xf32>
    %464 = vector.shape_cast %463 : vector<1x1x22x16xf32> to vector<1x22x16xf32>
    %c54 = arith.constant 54 : index
    %465 = memref.load %arg2[%c54] : memref<98xf32, #tpu.memory_space<smem>>
    %466 = vector.extract_strided_slice %464 {offsets = [0, 0, 0], sizes = [1, 16, 16], strides = [1, 1, 1]} : vector<1x22x16xf32> to vector<1x16x16xf32>
    %467 = vector.broadcast %465 : f32 to vector<1x16x16xf32>
    %468 = arith.mulf %467, %466 : vector<1x16x16xf32>
    %469 = arith.addf %462, %468 : vector<1x16x16xf32>
    %c61 = arith.constant 61 : index
    %470 = memref.load %arg2[%c61] : memref<98xf32, #tpu.memory_space<smem>>
    %471 = vector.extract_strided_slice %464 {offsets = [0, 1, 0], sizes = [1, 16, 16], strides = [1, 1, 1]} : vector<1x22x16xf32> to vector<1x16x16xf32>
    %472 = vector.broadcast %470 : f32 to vector<1x16x16xf32>
    %473 = arith.mulf %472, %471 : vector<1x16x16xf32>
    %474 = arith.addf %469, %473 : vector<1x16x16xf32>
    %c68 = arith.constant 68 : index
    %475 = memref.load %arg2[%c68] : memref<98xf32, #tpu.memory_space<smem>>
    %476 = vector.extract_strided_slice %464 {offsets = [0, 2, 0], sizes = [1, 16, 16], strides = [1, 1, 1]} : vector<1x22x16xf32> to vector<1x16x16xf32>
    %477 = vector.broadcast %475 : f32 to vector<1x16x16xf32>
    %478 = arith.mulf %477, %476 : vector<1x16x16xf32>
    %479 = arith.addf %474, %478 : vector<1x16x16xf32>
    %c75 = arith.constant 75 : index
    %480 = memref.load %arg2[%c75] : memref<98xf32, #tpu.memory_space<smem>>
    %481 = vector.extract_strided_slice %464 {offsets = [0, 3, 0], sizes = [1, 16, 16], strides = [1, 1, 1]} : vector<1x22x16xf32> to vector<1x16x16xf32>
    %482 = vector.broadcast %480 : f32 to vector<1x16x16xf32>
    %483 = arith.mulf %482, %481 : vector<1x16x16xf32>
    %484 = arith.addf %479, %483 : vector<1x16x16xf32>
    %c82 = arith.constant 82 : index
    %485 = memref.load %arg2[%c82] : memref<98xf32, #tpu.memory_space<smem>>
    %486 = vector.extract_strided_slice %464 {offsets = [0, 4, 0], sizes = [1, 16, 16], strides = [1, 1, 1]} : vector<1x22x16xf32> to vector<1x16x16xf32>
    %487 = vector.broadcast %485 : f32 to vector<1x16x16xf32>
    %488 = arith.mulf %487, %486 : vector<1x16x16xf32>
    %489 = arith.addf %484, %488 : vector<1x16x16xf32>
    %c89 = arith.constant 89 : index
    %490 = memref.load %arg2[%c89] : memref<98xf32, #tpu.memory_space<smem>>
    %491 = vector.extract_strided_slice %464 {offsets = [0, 5, 0], sizes = [1, 16, 16], strides = [1, 1, 1]} : vector<1x22x16xf32> to vector<1x16x16xf32>
    %492 = vector.broadcast %490 : f32 to vector<1x16x16xf32>
    %493 = arith.mulf %492, %491 : vector<1x16x16xf32>
    %494 = arith.addf %489, %493 : vector<1x16x16xf32>
    %c96 = arith.constant 96 : index
    %495 = memref.load %arg2[%c96] : memref<98xf32, #tpu.memory_space<smem>>
    %496 = vector.extract_strided_slice %464 {offsets = [0, 6, 0], sizes = [1, 16, 16], strides = [1, 1, 1]} : vector<1x22x16xf32> to vector<1x16x16xf32>
    %497 = vector.broadcast %495 : f32 to vector<1x16x16xf32>
    %498 = arith.mulf %497, %496 : vector<1x16x16xf32>
    %499 = arith.addf %494, %498 : vector<1x16x16xf32>
    %c1_88 = arith.constant 1 : index
    %c0_89 = arith.constant 0 : index
    %c0_90 = arith.constant 0 : index
    %c6_91 = arith.constant 6 : index
    %500 = vector.load %arg4[%c1_88, %c0_89, %c0_90, %c6_91] : memref<2x1x22x22xf32, #tpu.memory_space<vmem>>, vector<1x1x22x16xf32>
    %501 = vector.shape_cast %500 : vector<1x1x22x16xf32> to vector<1x22x16xf32>
    %c55 = arith.constant 55 : index
    %502 = memref.load %arg2[%c55] : memref<98xf32, #tpu.memory_space<smem>>
    %503 = vector.extract_strided_slice %501 {offsets = [0, 0, 0], sizes = [1, 16, 16], strides = [1, 1, 1]} : vector<1x22x16xf32> to vector<1x16x16xf32>
    %504 = vector.broadcast %502 : f32 to vector<1x16x16xf32>
    %505 = arith.mulf %504, %503 : vector<1x16x16xf32>
    %506 = arith.addf %499, %505 : vector<1x16x16xf32>
    %c62 = arith.constant 62 : index
    %507 = memref.load %arg2[%c62] : memref<98xf32, #tpu.memory_space<smem>>
    %508 = vector.extract_strided_slice %501 {offsets = [0, 1, 0], sizes = [1, 16, 16], strides = [1, 1, 1]} : vector<1x22x16xf32> to vector<1x16x16xf32>
    %509 = vector.broadcast %507 : f32 to vector<1x16x16xf32>
    %510 = arith.mulf %509, %508 : vector<1x16x16xf32>
    %511 = arith.addf %506, %510 : vector<1x16x16xf32>
    %c69 = arith.constant 69 : index
    %512 = memref.load %arg2[%c69] : memref<98xf32, #tpu.memory_space<smem>>
    %513 = vector.extract_strided_slice %501 {offsets = [0, 2, 0], sizes = [1, 16, 16], strides = [1, 1, 1]} : vector<1x22x16xf32> to vector<1x16x16xf32>
    %514 = vector.broadcast %512 : f32 to vector<1x16x16xf32>
    %515 = arith.mulf %514, %513 : vector<1x16x16xf32>
    %516 = arith.addf %511, %515 : vector<1x16x16xf32>
    %c76 = arith.constant 76 : index
    %517 = memref.load %arg2[%c76] : memref<98xf32, #tpu.memory_space<smem>>
    %518 = vector.extract_strided_slice %501 {offsets = [0, 3, 0], sizes = [1, 16, 16], strides = [1, 1, 1]} : vector<1x22x16xf32> to vector<1x16x16xf32>
    %519 = vector.broadcast %517 : f32 to vector<1x16x16xf32>
    %520 = arith.mulf %519, %518 : vector<1x16x16xf32>
    %521 = arith.addf %516, %520 : vector<1x16x16xf32>
    %c83 = arith.constant 83 : index
    %522 = memref.load %arg2[%c83] : memref<98xf32, #tpu.memory_space<smem>>
    %523 = vector.extract_strided_slice %501 {offsets = [0, 4, 0], sizes = [1, 16, 16], strides = [1, 1, 1]} : vector<1x22x16xf32> to vector<1x16x16xf32>
    %524 = vector.broadcast %522 : f32 to vector<1x16x16xf32>
    %525 = arith.mulf %524, %523 : vector<1x16x16xf32>
    %526 = arith.addf %521, %525 : vector<1x16x16xf32>
    %c90 = arith.constant 90 : index
    %527 = memref.load %arg2[%c90] : memref<98xf32, #tpu.memory_space<smem>>
    %528 = vector.extract_strided_slice %501 {offsets = [0, 5, 0], sizes = [1, 16, 16], strides = [1, 1, 1]} : vector<1x22x16xf32> to vector<1x16x16xf32>
    %529 = vector.broadcast %527 : f32 to vector<1x16x16xf32>
    %530 = arith.mulf %529, %528 : vector<1x16x16xf32>
    %531 = arith.addf %526, %530 : vector<1x16x16xf32>
    %c97 = arith.constant 97 : index
    %532 = memref.load %arg2[%c97] : memref<98xf32, #tpu.memory_space<smem>>
    %533 = vector.extract_strided_slice %501 {offsets = [0, 6, 0], sizes = [1, 16, 16], strides = [1, 1, 1]} : vector<1x22x16xf32> to vector<1x16x16xf32>
    %534 = vector.broadcast %532 : f32 to vector<1x16x16xf32>
    %535 = arith.mulf %534, %533 : vector<1x16x16xf32>
    %536 = arith.addf %531, %535 : vector<1x16x16xf32>
    %537 = arith.negf %536 : vector<1x16x16xf32>
    %538 = math.exp %537 : vector<1x16x16xf32>
    %cst_92 = arith.constant 1.000000e+00 : f32
    %539 = vector.broadcast %cst_92 : f32 to vector<1x16x16xf32>
    %540 = arith.addf %539, %538 : vector<1x16x16xf32>
    %541 = arith.divf %539, %540 : vector<1x16x16xf32>
    %c0_93 = arith.constant 0 : index
    %c0_94 = arith.constant 0 : index
    %c0_95 = arith.constant 0 : index
    %c0_96 = arith.constant 0 : index
    %542 = vector.load %arg3[%c0_93, %c0_94, %c0_95, %c0_96] : memref<1x1x16x16xf32, #tpu.memory_space<vmem>>, vector<1x1x16x16xf32>
    %543 = vector.shape_cast %542 : vector<1x1x16x16xf32> to vector<1x16x16xf32>
    %544 = vector.shape_cast %541 : vector<1x16x16xf32> to vector<1x1x16x16xf32>
    tpu.vector_store %arg3[%c0_93, %c0_94, %c0_95, %c0_96], %544 {strides = array<i32>} : memref<1x1x16x16xf32, #tpu.memory_space<vmem>>, vector<1x1x16x16xf32>,
    return
  }
  func.func @transform_0(%arg0: i32) -> (i32, i32, i32, i32) {
    %c0_i32 = arith.constant 0 : i32
    %c0_i32_0 = arith.constant 0 : i32
    %c0_i32_1 = arith.constant 0 : i32
    %c0_i32_2 = arith.constant 0 : i32
    return %arg0, %c0_i32, %c0_i32_0, %c0_i32_1 : i32, i32, i32, i32
  }
  func.func @transform_1(%arg0: i32) -> i32 {
    %c0_i32 = arith.constant 0 : i32
    %c0_i32_0 = arith.constant 0 : i32
    return %c0_i32 : i32
  }
  func.func @transform_2(%arg0: i32) -> (i32, i32, i32, i32) {
    %c0_i32 = arith.constant 0 : i32
    %c0_i32_0 = arith.constant 0 : i32
    %c0_i32_1 = arith.constant 0 : i32
    %c0_i32_2 = arith.constant 0 : i32
    return %arg0, %c0_i32, %c0_i32_0, %c0_i32_1 : i32, i32, i32, i32
  }
}

</mosaic_0001>

<bundles_post_ra>
// kernel: spatial_attention.2
= control target key start
LH: loop header
LB: loop body
LE: loop exit
PB: predicated region body
PF: predicated region fallthrough
CT: control target
= control target key end

     0   :  { %s373_s6 = smov 0   ;;  %s375_s7 = smov 0   ;;  %s406_s0 = inlined_call_operand.vmem [shape: f32[2,4,2,128], index: 0, kind: input, shape index: {}]   ;;  %s407_s1 = inlined_call_operand.vmem [shape: f32[2,2,2,128], index: 1, kind: output, shape index: {}]  }
   0x1   :  { %s377_s8 = smov 0  }
   0x2 LB: > { %s30_s9 = sadd.s32 1, %s355_s7  ;;  %p298_p0 = scmp.ge.s32.totalorder %s359_s8, 1  ;;  %s359_s8 = sphi %s377_s8, %s11_s8   ;;  %s355_s7 = sphi %s375_s7, %s409_s7   ;;  %s351_s6 = sphi %s373_s6, %s408_s6  }
   0x3   : > { %p32_p1 = scmp.ge.s32.totalorder %s30_s9, 2  ;;  %p120_p2 = scmp.lt.s32.totalorder %s359_s8, 3 }
   0x5   : > { %s411_s9 = smov (%p32_p1, %s30_s9), 0  ;;  %p121_p3 = pnand %p298_p0, %p120_p2 }
   0x6   : > { %p151_p4 = scmp.lt.s32.totalorder (!%p121_p3), %s351_s6, 1 }
   0x7   : > { %124 = sbr.rel (%p121_p3) target bundleno = 40 (0x28), region = 24 }
   0xc   : > { %v361_v0 = vmov 0.0   ;;  %v362_v1 = vmov -inf   ;;  %s413_s6 = smov (!%p151_p4, %s351_s6), 1 }
   0xd   : > { %175 = vst [vmem:[#allocation2] sm:$0x3] %v361_v0  ;;  %176 = vst [vmem:[#allocation3] sm:$0x3] %v362_v1  ;;  %s309_s10 = sshll.u32 %s413_s6, 3  ;;  %s310_s14 = sshll.u32 %s413_s6, 2 }
   0xe   : > { %s161_s13 = scalar_lea.vmem %s406_s0, %s309_s10  ;;  %s170_s17 = scalar_lea.vmem %s407_s1, %s310_s14 }
   0xf   : > { %v179_v2 = vld [vmem:[%s161_s13] sm:$0x3]  ;;  %v303_v4 = vld [vmem:[%s161_s13 + $0x2] sm:$0x3]  ;;  %v304_v8 = vld [vmem:[%s161_s13 + $0x4] sm:$0x3] }
  0x10   : > { %v305_v11 = vld [vmem:[%s161_s13 + $0x6] sm:$0x3] }
  0x14   : > { %v177_v3 = vld [vmem:[#allocation2] sm:$0x3]  ;;  %v178_v5 = vld [vmem:[#allocation3] sm:$0x3] }
  0x15   : > { %v180_v6 = vadd.f32 %v179_v2, %v177_v3  ;;  %v181_v7 = vmax.f32 %v178_v5, %v179_v2 }
  0x17   : > { %v184_v9 = vadd.f32 %v303_v4, %v180_v6  ;;  %v185_v10 = vmax.f32 %v181_v7, %v303_v4 }
  0x19   : > { %v188_v12 = vadd.f32 %v304_v8, %v184_v9  ;;  %v189_v13 = vmax.f32 %v185_v10, %v304_v8 }
  0x1b   : > { %v192_v14 = vadd.f32 %v305_v11, %v188_v12  ;;  %v193_v15 = vmax.f32 %v189_v13, %v305_v11 }
  0x1d   : > { %194 = vst [vmem:[#allocation2] sm:$0x3] %v192_v14  ;;  %195 = vst [vmem:[#allocation3] sm:$0x3] %v193_v15 }
  0x24   : > { %v199_v16 = vld [vmem:[#allocation2] sm:$0x3]  ;;  %v202_v17 = vld [vmem:[#allocation3] sm:$0x3] }
  0x25   : > { %v200_v18 = vmul.f32 0.25, %v199_v16  ;;  %306 = vst [vmem:[%s170_s17 + $0x2] sm:$0x3] %v202_v17 }
  0x27   : > { %201 = vst [vmem:[%s170_s17] sm:$0x3] %v200_v18 }
  0x28 PF: > { %s11_s8 = sadd.s32 1, %s359_s8   ;;  %s408_s6 = smov %s355_s7 }
  0x29   : > { %p8_p5 = scmp.ge.s32.totalorder %s11_s8, 4   ;;  %s409_s7 = smov %s411_s9 }
  0x2b   :  { %10 = sbr.rel (!%p8_p5) target bundleno = 2 (0x2), region = 66 }

// kernel: spatial_attention.3
= control target key start
LH: loop header
LB: loop body
LE: loop exit
PB: predicated region body
PF: predicated region fallthrough
CT: control target
= control target key end

     0   :  { %7 = vsyncpa [#allocation5], 0  ;;  %s3824_s0 = inlined_call_operand.vmem [shape: f32[2,2,16,16], index: 0, kind: input, shape index: {}]   ;;  %s3825_s1 = inlined_call_operand.vmem [shape: f32[98], index: 1, kind: input, shape index: {}]   ;;  %s3826_s2 = inlined_call_operand.hbm [shape: f32[2,1,16,16], index: 2, kind: output, shape index: {}]  }
   0x1   :  { %8 = vsyncpa [#allocation4], 0 }
   0x2   :  { %10 = vsyncpa [#allocation4 + $0x1], 0  ;;  %s2514_s9 = smov 0   ;;  %s2516_s10 = smov 0  }
   0x3   :  { %s2518_s11 = smov 0   ;;  %s2520_s12 = smov 0  }
   0x4 LB: > { %s2535_s13 = sadd.s32 4294967295, %s2485_s12   ;;  %s2215_s14 = sadd.s32 4294967294, %s2485_s12   ;;  %s2485_s12 = sphi %s2520_s12, %s3833_s12   ;;  %s2481_s11 = sphi %s2518_s11, %s3832_s11   ;;  %s2477_s10 = sphi %s2516_s10, %s3831_s10   ;;  %s2473_s9 = sphi %s2514_s9, %s3830_s9  }
   0x5   : > { %s2539_s15 = sadd.s32 1, %s2485_s12   ;;  %s70_s16 = sadd.s32 1, %s2481_s11 }
   0x6   : > { %s67_s17 = ssub.s32 %s2485_s12, %s2539_s15  ;;  %p80_p0 = scmp.ne.s32.totalorder %s2481_s11, %s2477_s10 }
   0x7   : > { %p68_p1 = scmp.eq.s32.totalorder %s67_s17, 0  ;;  %p81_p2 = scmp.eq.s32.totalorder %s2535_s13, 1 }
   0x8   : > { %p86_p3 = scmp.ne.s32.totalorder %s2477_s10, %s2473_s9  ;;  %p87_p4 = scmp.eq.s32.totalorder %s2215_s14, 1 }
   0x9   : > { %s2550_s18 = scalar_select %p68_p1, %s2481_s11, %s70_s16  }
   0xa   : > { %p2552_p5 = por %p81_p2, %p80_p0  ;;  %p2556_p6 = por %p87_p4, %p86_p3 }
   0xb   : > { %p2216_p7 = scmp.ge.s32.totalorder %s2485_s12, 1  ;;  %p94_p8 = scmp.lt.s32.totalorder %s2485_s12, 3 }
   0xc   : > { %p2346_p9 = scmp.eq.s32.totalorder %s2535_s13, 0  ;;  %s107_s24 = sshll.u32 %s3825_s1, 4  ;;  %s108_s24 = int_to_ptr.vmem [resolvable:$true] %s107_s24 }
   0xd   : > { %p2563_p10 = pnand %p2216_p7, %p94_p8  ;;  %s2406_s25 = scalar_lea.vmem %s108_s24, 16 }
   0xe   : > { %p2407_p13 = scmp.ne.s32.totalorder %s108_s24, %s2406_s25  ;;  %p2414_p3 = scmp.lt.s32.totalorder %s108_s24, %s108_s24 }
   0xf   : > { %p2338_p11 = pneg %p2563_p10  ;;  %p2415_p4 = scmp.lt.s32.totalorder %s2406_s25, %s2406_s25 }
  0x11   : > { %p2339_p12 = pnand %p2346_p9, %p2338_p11  ;;  %p2416_p7 = por %p2415_p4, %p2414_p3 }
  0x13   : > { %p2408_p0 = pneg %p2339_p12 }
  0x15   : > { %p2409_p1 = pnand %p2408_p0, %p2407_p13 }
  0x17   : > { %p2410_p2 = pneg %p2409_p1 }
  0x19   : > { %p2417_p8 = pnand %p2416_p7, %p2410_p2 }
  0x1b   : > { %2420 = shalt.err (!%p2417_p8)
}
  0x1c   : > { %s2487_s26 = smov [#allocation3]   ;;  %128 = sbr.rel (%p2563_p10) target bundleno = 667 (0x29b), region = 28 }
  0x1d   : > { %2341 = dma.vmem_to_smem (!%p2339_p12), %s108_s24, 16, %s2487_s26, [#allocation5]  }
  0x21   : > { %2464 = dma.done.wait (%p2346_p9), [#allocation5], 16  }
  0x22   : > { %2466 = vsyncadd (%p2346_p9), [#allocation5], 4294967280 }
  0x23   : > { %134 = sfence }
  0x24   : > { %p151_p11 = scmp.lt.s32.totalorder %s2535_s13, 1  ;;  %vm156_vm0 = vcmask 174080   ;;  %vm161_vm1 = vcmask 23552   ;;  %vm169_vm2 = vcmask 179352   ;;  %v2488_v0 = vmov 0.0   ;;  %s2489_s4 = smov 3  }
  0x25   : > { %157 = vst.msk [vmem:[#allocation2] sm:$0x7] %vm156_vm0, %v2488_v0  ;;  %158 = vst.msk [vmem:[#allocation2 + $0x18] sm:$0x7] %vm156_vm0, %v2488_v0  ;;  %vm164_vm3 = vcmask 21504   ;;  %vm172_vm4 = vcmask 177304  }
  0x26   : > { %163 = vst.msk [vmem:[#allocation2 + $0x8] sm:$0xff] %vm161_vm1, %v2488_v0  ;;  %167 = vst.msk [vmem:[#allocation2 + $0x20] sm:$0xff] %vm161_vm1, %v2488_v0  ;;  %s152_s27 = scalar_select %p151_p11, %s2535_s13, 1  ;;  %vm187_vm5 = vcmask 154648   ;;  %vm221_vm6 = vcmask 1046528   ;;  %vm239_vm7 = vcmask 1045504  }
  0x27   : > { %159 = vst.msk [vmem:[#allocation2 + $0x13] sm:$0x7] %vm156_vm0, %v2488_v0  ;;  %160 = vst.msk [vmem:[#allocation2 + $0x2b] sm:$0x7] %vm156_vm0, %v2488_v0  ;;  %s2232_s5 = sld [smem:[#allocation3 + $0x1]]  ;;  %s2490_s14 = smov 127  }
  0x28   : > { %162 = vst.msk [vmem:[#allocation2] sm:$0xff] %vm161_vm1, %v2488_v0  ;;  %166 = vst.msk [vmem:[#allocation2 + $0x18] sm:$0xff] %vm161_vm1, %v2488_v0  ;;  %s2330_s28 = sshll.u32 %s152_s27, 5  ;;  %s2239_s6 = sld [smem:[#allocation3 + $0x2]]  ;;  %vm257_vm8 = vcmask 1044480   ;;  %vm275_vm9 = vcmask 1043456  }
  0x29   : > { %171 = vst.msk [vmem:[#allocation2 + $0x8] sm:$0xff] %vm169_vm2, %v2488_v0  ;;  %175 = vst.msk [vmem:[#allocation2 + $0x20] sm:$0xff] %vm169_vm2, %v2488_v0  ;;  %s155_s3 = scalar_lea.vmem %s3824_s0, %s2330_s28  ;;  %s2246_s7 = sld [smem:[#allocation3 + $0x3]]  ;;  %vm293_vm10 = vcmask 1042432   ;;  %vm311_vm11 = vcmask 1041408   ;;  %vm2124_vm12 = vcmask 130048  }
  0x2a   : > { %165 = vst.msk [vmem:[#allocation2 + $0x10] sm:$0x3f] %vm164_vm3, %v2488_v0  ;;  %168 = vst.msk [vmem:[#allocation2 + $0x28] sm:$0x3f] %vm164_vm3, %v2488_v0  ;;  %v177_v1 = vld [vmem:[%s155_s3] sm:$0xff]  ;;  %v2224_v2 = vld [vmem:[%s155_s3 + $0x10] sm:$0xff] }
  0x2b   : > { %170 = vst.msk [vmem:[#allocation2] sm:$0xff] %vm169_vm2, %v2488_v0  ;;  %174 = vst.msk [vmem:[#allocation2 + $0x18] sm:$0xff] %vm169_vm2, %v2488_v0  ;;  %181 = vrot.lane.b32.xlu0 %v177_v1, %s2489_s4  ;;  %195 = vrot.lane.b32.xlu1 %v2224_v2, %s2489_s4  ;;  %v178_v3 = vld [vmem:[%s155_s3 + $0x8] sm:$0xff]  ;;  %v2225_v4 = vld [vmem:[%s155_s3 + $0x18] sm:$0xff]  ;;  %s2592_s8 = sld [smem:[#allocation3 + $0x4]]  ;;  %s2491_s21 = smov 126  }
  0x2c   : > { %173 = vst.msk [vmem:[#allocation2 + $0x10] sm:$0x3f] %vm172_vm4, %v2488_v0  ;;  %176 = vst.msk [vmem:[#allocation2 + $0x28] sm:$0x3f] %vm172_vm4, %v2488_v0  ;;  %s2233_s16 = sld [smem:[#allocation3 + $0x8]]  ;;  %s2492_s23 = smov 125  }
  0x2d   : > { %v322_v9 = vstv %s2232_s5  ;;  %s2599_s17 = sld [smem:[#allocation3 + $0x5]]  ;;  %s2493_s25 = smov 124  }
  0x2e   : > { %v462_v12 = vstv %s2239_s6  ;;  %s2234_s22 = sld [smem:[#allocation3 + $0xf]]  ;;  %s2494_s27 = smov 123  }
  0x2f   : > { %183 = vrot.lane.b32.xlu0 %v178_v3, %s2489_s4  ;;  %197 = vrot.lane.b32.xlu1 %v2225_v4, %s2489_s4  ;;  %v602_v16 = vstv %s2246_s7  ;;  %s2235_s24 = sld [smem:[#allocation3 + $0x16]] }
  0x30   : > { %s2236_s26 = sld [smem:[#allocation3 + $0x1d]] }
  0x31   : > { %v742_v19 = vstv %s2592_s8  ;;  %s2237_s28 = sld [smem:[#allocation3 + $0x24]] }
  0x32   : > { %v336_v22 = vstv %s2233_s16  ;;  %s2238_s29 = sld [smem:[#allocation3 + $0x2b]] }
  0x33   : > { %v882_v23 = vstv %s2599_s17  ;;  %s2240_s30 = sld [smem:[#allocation3 + $0x9]] }
  0x34   : > { %v357_v29 = vstv %s2234_s22  ;;  %s2241_s3 = sld [smem:[#allocation3 + $0x10]] }
  0x35   : > { %v378_v35 = vstv %s2235_s24  ;;  %s2242_s4 = sld [smem:[#allocation3 + $0x17]] }
  0x36   : > { %v399_v44 = vstv %s2236_s26  ;;  %s2243_s5 = sld [smem:[#allocation3 + $0x1e]] }
  0x37   : > { %v420_v53 = vstv %s2237_s28  ;;  %s2244_s6 = sld [smem:[#allocation3 + $0x25]] }
  0x38   : > { %v441_v0 = vstv %s2238_s29  ;;  %s2245_s7 = sld [smem:[#allocation3 + $0x2c]] }
  0x39   : > { %s2247_s8 = sld [smem:[#allocation3 + $0xa]] }
  0x3a   : > { %s2248_s16 = sld [smem:[#allocation3 + $0x11]] }
  0x3b   : > { %s2249_s17 = sld [smem:[#allocation3 + $0x18]] }
  0x3c   : > { %s2250_s22 = sld [smem:[#allocation3 + $0x1f]] }
  0x3d   : > { %s2251_s24 = sld [smem:[#allocation3 + $0x26]] }
  0x3e   : > { %s2252_s26 = sld [smem:[#allocation3 + $0x2d]] }
  0x3f   : > { %s2254_s28 = sld [smem:[#allocation3 + $0xb]] }
  0x40   : > { %s2255_s29 = sld [smem:[#allocation3 + $0x12]] }
  0x9d   : > { %v182_v5 = vpop.permute.xlu0 %181  ;;  %v196_v6 = vpop.permute.xlu1 %195 }
  0x9e   : > { %188 = vst.msk [vmem:[#allocation2 + $0x3] sm:$0xff] %vm187_vm5, %v182_v5  ;;  %202 = vst.msk [vmem:[#allocation2 + $0x1b] sm:$0xff] %vm187_vm5, %v196_v6 }
  0xa1   : > { %v184_v7 = vpop.permute.xlu0 %183  ;;  %v198_v8 = vpop.permute.xlu1 %197 }
  0xa2   : > { %189 = vst.msk [vmem:[#allocation2 + $0xb] sm:$0xff] %vm187_vm5, %v184_v7  ;;  %203 = vst.msk [vmem:[#allocation2 + $0x23] sm:$0xff] %vm187_vm5, %v198_v8  ;;  %v476_v7 = vstv %s2240_s30  ;;  %s2256_s30 = sld [smem:[#allocation3 + $0x19]] }
  0xa5   : > { %v2589_v10 = vld [vmem:[#allocation2] sm:$0xff] }
  0xa6   : > { %v323_v11 = vmul.f32 %v322_v9, %v2589_v10  ;;  %v463_v14 = vmul.f32 %v462_v12, %v2589_v10  ;;  %v603_v17 = vmul.f32 %v602_v16, %v2589_v10  ;;  %v743_v20 = vmul.f32 %v742_v19, %v2589_v10 }
  0xa7   : > { %v337_v26 = vmul.f32 %v336_v22, %v2589_v10  ;;  %v883_v27 = vmul.f32 %v882_v23, %v2589_v10  ;;  %v358_v34 = vmul.f32 %v357_v29, %v2589_v10  ;;  %v379_v43 = vmul.f32 %v378_v35, %v2589_v10 }
  0xa8   : > { %327 = vrot.lane.b32.xlu0 %v323_v11, %s2490_s14  ;;  %v400_v51 = vmul.f32 %v399_v44, %v2589_v10  ;;  %v421_v61 = vmul.f32 %v420_v53, %v2589_v10  ;;  %v442_v6 = vmul.f32 %v441_v0, %v2589_v10 }
  0xa9   : > { %v2595_v13 = vld [vmem:[#allocation2 + $0x8] sm:$0xff]  ;;  %v2612_v25 = vld [vmem:[#allocation2 + $0x10] sm:$0x3f]  ;;  %v343_v33 = vrot.slane %v337_v26, 1  ;;  %v364_v42 = vrot.slane %v358_v34, 2  ;;  %v385_v52 = vrot.slane %v379_v43, 3 }
  0xaa   : > { %v324_v15 = vmul.f32 %v322_v9, %v2595_v13  ;;  %v464_v18 = vmul.f32 %v462_v12, %v2595_v13  ;;  %v604_v21 = vmul.f32 %v602_v16, %v2595_v13  ;;  %v338_v24 = vmul.f32 %v336_v22, %v2595_v13 }
  0xab   : > { %v744_v28 = vmul.f32 %v742_v19, %v2595_v13  ;;  %v359_v31 = vmul.f32 %v357_v29, %v2595_v13  ;;  %v339_v32 = vmul.f32 %v336_v22, %v2612_v25  ;;  %v884_v36 = vmul.f32 %v882_v23, %v2595_v13 }
  0xac   : > { %467 = vrot.lane.b32.xlu0 %v463_v14, %s2491_s21  ;;  %329 = vrot.lane.b32.xlu1 %v324_v15, %s2490_s14  ;;  %v344_v30 = vrot.slane %v338_v24, 1  ;;  %v380_v37 = vmul.f32 %v378_v35, %v2595_v13  ;;  %v360_v41 = vmul.f32 %v357_v29, %v2612_v25  ;;  %v401_v45 = vmul.f32 %v399_v44, %v2595_v13 }
  0xad   : > { %v365_v39 = vrot.slane %v359_v31, 2  ;;  %v346_v40 = vrot.slane %v339_v32, 1  ;;  %v381_v46 = vmul.f32 %v378_v35, %v2612_v25  ;;  %v422_v55 = vmul.f32 %v420_v53, %v2595_v13 }
  0xae   : > { %v345_v38 = vsel %vm221_vm6, %v343_v33, %v344_v30  ;;  %v386_v49 = vrot.slane %v380_v37, 3  ;;  %v367_v50 = vrot.slane %v360_v41, 2  ;;  %v407_v54 = vrot.slane %v401_v45, 4 }
  0xaf   : > { %v366_v47 = vsel %vm239_vm7, %v364_v42, %v365_v39  ;;  %v347_v48 = vsel %vm221_vm6, %v344_v30, %v346_v40  ;;  %v388_v58 = vrot.slane %v381_v46, 3  ;;  %v402_v59 = vmul.f32 %v399_v44, %v2612_v25 }
  0xb0   : > { %607 = vrot.lane.b32.xlu0 %v603_v17, %s2492_s23  ;;  %469 = vrot.lane.b32.xlu1 %v464_v18, %s2491_s21  ;;  %v387_v56 = vsel %vm257_vm8, %v385_v52, %v386_v49  ;;  %v368_v57 = vsel %vm239_vm7, %v365_v39, %v367_v50  ;;  %v406_v60 = vrot.slane %v400_v51, 4  ;;  %v428_v63 = vrot.slane %v422_v55, 5 }
  0xb1   : > { %v389_v1 = vsel %vm257_vm8, %v386_v49, %v388_v58  ;;  %v409_v2 = vrot.slane %v402_v59, 4  ;;  %v443_v3 = vmul.f32 %v441_v0, %v2595_v13  ;;  %v423_v4 = vmul.f32 %v420_v53, %v2612_v25 }
  0xb2   : > { %v408_v62 = vsel %vm275_vm9, %v406_v60, %v407_v54  ;;  %v427_v5 = vrot.slane %v421_v61, 5  ;;  %v478_v9 = vmul.f32 %v476_v7, %v2595_v13  ;;  %v444_v15 = vmul.f32 %v441_v0, %v2612_v25 }
  0xb3   : > { %v410_v11 = vsel %vm275_vm9, %v407_v54, %v409_v2  ;;  %v449_v12 = vrot.slane %v443_v3, 6  ;;  %v430_v14 = vrot.slane %v423_v4, 5  ;;  %v477_v16 = vmul.f32 %v476_v7, %v2589_v10 }
  0xb4   : > { %747 = vrot.lane.b32.xlu0 %v743_v20, %s2493_s25  ;;  %609 = vrot.lane.b32.xlu1 %v604_v21, %s2492_s23  ;;  %v429_v8 = vsel %vm293_vm10, %v427_v5, %v428_v63  ;;  %v448_v17 = vrot.slane %v442_v6, 6  ;;  %v497_v18 = vstv %s2241_s3  ;;  %v484_v19 = vrot.slane %v478_v9, 1  ;;  %s2257_s3 = sld [smem:[#allocation3 + $0x20]] }
  0xb5   : > { %v499_v20 = vmul.f32 %v497_v18, %v2595_v13  ;;  %v431_v22 = vsel %vm293_vm10, %v428_v63, %v430_v14  ;;  %v451_v23 = vrot.slane %v444_v15, 6  ;;  %v479_v24 = vmul.f32 %v476_v7, %v2612_v25 }
  0xb6   : > { %v450_v21 = vsel %vm311_vm11, %v448_v17, %v449_v12  ;;  %v483_v26 = vrot.slane %v477_v16, 1  ;;  %v518_v30 = vstv %s2242_s4  ;;  %v500_v34 = vmul.f32 %v497_v18, %v2612_v25  ;;  %s2258_s4 = sld [smem:[#allocation3 + $0x27]] }
  0xb7   : > { %v505_v29 = vrot.slane %v499_v20, 2  ;;  %v452_v31 = vsel %vm311_vm11, %v449_v12, %v451_v23  ;;  %v486_v32 = vrot.slane %v479_v24, 1  ;;  %v520_v33 = vmul.f32 %v518_v30, %v2595_v13 }
  0xb8   : > { %887 = vrot.lane.b32.xlu0 %v883_v27, %s2494_s27  ;;  %749 = vrot.lane.b32.xlu1 %v744_v28, %s2493_s25  ;;  %v498_v27 = vmul.f32 %v497_v18, %v2589_v10  ;;  %v485_v28 = vsel %vm221_vm6, %v483_v26, %v484_v19  ;;  %v539_v37 = vstv %s2243_s5  ;;  %v507_v42 = vrot.slane %v500_v34, 2  ;;  %s2259_s5 = sld [smem:[#allocation3 + $0x2e]] }
  0xb9   : > { %v541_v39 = vmul.f32 %v539_v37, %v2595_v13  ;;  %v487_v40 = vsel %vm221_vm6, %v484_v19, %v486_v32  ;;  %v526_v41 = vrot.slane %v520_v33, 3  ;;  %v521_v43 = vmul.f32 %v518_v30, %v2612_v25 }
  0xba   : > { %v504_v35 = vrot.slane %v498_v27, 2  ;;  %v540_v44 = vmul.f32 %v539_v37, %v2589_v10  ;;  %v560_v46 = vstv %s2244_s6  ;;  %v508_v50 = vsel %vm239_vm7, %v505_v29, %v507_v42  ;;  %s2261_s6 = sld [smem:[#allocation3 + $0xc]] }
  0xbb   : > { %v528_v51 = vrot.slane %v521_v43, 3  ;;  %v542_v52 = vmul.f32 %v539_v37, %v2612_v25  ;;  %v561_v54 = vmul.f32 %v560_v46, %v2589_v10  ;;  %v563_v61 = vmul.f32 %v560_v46, %v2612_v25 }
  0xbc   : > { %348 = vrot.lane.b32.xlu0 %v345_v38, %s2490_s14  ;;  %889 = vrot.lane.b32.xlu1 %v884_v36, %s2494_s27  ;;  %v519_v36 = vmul.f32 %v518_v30, %v2589_v10  ;;  %v506_v38 = vsel %vm239_vm7, %v504_v35, %v505_v29  ;;  %v546_v53 = vrot.slane %v540_v44, 4  ;;  %v616_v0 = vstv %s2247_s8  ;;  %s2263_s8 = sld [smem:[#allocation3 + $0x1a]] }
  0xbd   : > { %v529_v58 = vsel %vm257_vm8, %v526_v41, %v528_v51  ;;  %v549_v59 = vrot.slane %v542_v52, 4  ;;  %v618_v2 = vmul.f32 %v616_v0, %v2595_v13  ;;  %v570_v5 = vrot.slane %v563_v61, 5 }
  0xbe   : > { %v525_v45 = vrot.slane %v519_v36, 3  ;;  %v617_v7 = vmul.f32 %v616_v0, %v2589_v10  ;;  %v637_v9 = vstv %s2248_s16  ;;  %v619_v17 = vmul.f32 %v616_v0, %v2612_v25  ;;  %s2264_s16 = sld [smem:[#allocation3 + $0x21]] }
  0xbf   : > { %v639_v12 = vmul.f32 %v637_v9, %v2595_v13  ;;  %v638_v19 = vmul.f32 %v637_v9, %v2589_v10  ;;  %v640_v27 = vmul.f32 %v637_v9, %v2612_v25  ;;  %v679_v30 = vstv %s2250_s22  ;;  %s2807_s22 = sld [smem:[#allocation3 + $0x2f]] }
  0xc0   : > { %369 = vrot.lane.b32.xlu0 %v366_v47, %s2490_s14  ;;  %350 = vrot.lane.b32.xlu1 %v347_v48, %s2490_s14  ;;  %v547_v47 = vrot.slane %v541_v39, 4  ;;  %v562_v48 = vmul.f32 %v560_v46, %v2595_v13  ;;  %v527_v49 = vsel %vm257_vm8, %v525_v45, %v526_v41  ;;  %v623_v18 = vrot.slane %v617_v7, 1 }
  0xc1   : > { %v626_v24 = vrot.slane %v619_v17, 1  ;;  %v681_v32 = vmul.f32 %v679_v30, %v2595_v13  ;;  %v647_v35 = vrot.slane %v640_v27, 2  ;;  %v680_v37 = vmul.f32 %v679_v30, %v2589_v10 }
  0xc2   : > { %v548_v55 = vsel %vm275_vm9, %v546_v53, %v547_v47  ;;  %v550_v3 = vsel %vm275_vm9, %v547_v47, %v549_v59  ;;  %v700_v39 = vstv %s2251_s24  ;;  %v682_v45 = vmul.f32 %v679_v30, %v2612_v25  ;;  %s2809_s24 = sld [smem:[#allocation3]] }
  0xc3   : > { %v702_v41 = vmul.f32 %v700_v39, %v2595_v13  ;;  %v686_v46 = vrot.slane %v680_v37, 4  ;;  %v701_v47 = vmul.f32 %v700_v39, %v2589_v10 }
  0xc4   : > { %390 = vrot.lane.b32.xlu0 %v387_v56, %s2490_s14  ;;  %371 = vrot.lane.b32.xlu1 %v368_v57, %s2490_s14  ;;  %v568_v56 = vrot.slane %v562_v48, 5  ;;  %v581_v57 = vstv %s2245_s7  ;;  %v689_v52 = vrot.slane %v682_v45, 4  ;;  %s2262_s7 = sld [smem:[#allocation3 + $0x13]] }
  0xc5   : > { %v583_v60 = vmul.f32 %v581_v57, %v2595_v13  ;;  %v582_v63 = vmul.f32 %v581_v57, %v2589_v10  ;;  %v584_v6 = vmul.f32 %v581_v57, %v2612_v25  ;;  %v756_v57 = vstv %s2254_s28  ;;  %s2818_s28 = sld [smem:[#allocation3 + $0xe]] }
  0xc6   : > { %v571_v15 = vsel %vm293_vm10, %v568_v56, %v570_v5  ;;  %v758_v59 = vmul.f32 %v756_v57, %v2595_v13  ;;  %v757_v0 = vmul.f32 %v756_v57, %v2589_v10 }
  0xc7   : > { %v589_v4 = vrot.slane %v583_v60, 6  ;;  %v591_v16 = vrot.slane %v584_v6, 6 }
  0xc8   : > { %411 = vrot.lane.b32.xlu0 %v408_v62, %s2490_s14  ;;  %392 = vrot.lane.b32.xlu1 %v389_v1, %s2490_s14  ;;  %v567_v62 = vrot.slane %v561_v54, 5  ;;  %v703_v54 = vmul.f32 %v700_v39, %v2612_v25  ;;  %v763_v9 = vrot.slane %v757_v0, 1 }
  0xc9   : > { %v592_v23 = vsel %vm311_vm11, %v589_v4, %v591_v16 }
  0xca   : > { %v569_v1 = vsel %vm293_vm10, %v567_v62, %v568_v56  ;;  %v710_v62 = vrot.slane %v703_v54, 5 }
  0xcc   : > { %432 = vrot.lane.b32.xlu0 %v429_v8, %s2490_s14  ;;  %413 = vrot.lane.b32.xlu1 %v410_v11, %s2490_s14  ;;  %v588_v8 = vrot.slane %v582_v63, 6  ;;  %v624_v11 = vrot.slane %v618_v2, 1  ;;  %v777_v2 = vstv %s2255_s29  ;;  %s2820_s29 = sld [smem:[#allocation3 + $0x15]] }
  0xce   : > { %v590_v14 = vsel %vm311_vm11, %v588_v8, %v589_v4  ;;  %v625_v20 = vsel %vm221_vm6, %v623_v18, %v624_v11  ;;  %v627_v33 = vsel %vm221_vm6, %v624_v11, %v626_v24  ;;  %v779_v4 = vmul.f32 %v777_v2, %v2595_v13 }
  0xcf   : > { %v759_v8 = vmul.f32 %v756_v57, %v2612_v25  ;;  %v778_v11 = vmul.f32 %v777_v2, %v2589_v10 }
  0xd0   : > { %453 = vrot.lane.b32.xlu0 %v450_v21, %s2490_s14  ;;  %434 = vrot.lane.b32.xlu1 %v431_v22, %s2490_s14  ;;  %v645_v21 = vrot.slane %v639_v12, 2  ;;  %v658_v22 = vstv %s2249_s17  ;;  %s2265_s17 = sld [smem:[#allocation3 + $0x28]] }
  0xd1   : > { %v660_v26 = vmul.f32 %v658_v22, %v2595_v13  ;;  %v659_v29 = vmul.f32 %v658_v22, %v2589_v10  ;;  %v661_v36 = vmul.f32 %v658_v22, %v2612_v25  ;;  %v766_v17 = vrot.slane %v759_v8, 1 }
  0xd2   : > { %v648_v43 = vsel %vm239_vm7, %v645_v21, %v647_v35  ;;  %v819_v22 = vstv %s2257_s3  ;;  %s2832_s3 = sld [smem:[#allocation3 + $0x23]] }
  0xd3   : > { %v666_v34 = vrot.slane %v660_v26, 3  ;;  %v668_v44 = vrot.slane %v661_v36, 3  ;;  %v821_v24 = vmul.f32 %v819_v22, %v2595_v13  ;;  %v820_v30 = vmul.f32 %v819_v22, %v2589_v10 }
  0xd4   : > { %488 = vrot.lane.b32.xlu0 %v485_v28, %s2491_s21  ;;  %455 = vrot.lane.b32.xlu1 %v452_v31, %s2490_s14  ;;  %v644_v28 = vrot.slane %v638_v19, 2  ;;  %v780_v19 = vmul.f32 %v777_v2, %v2612_v25 }
  0xd5   : > { %v669_v51 = vsel %vm257_vm8, %v666_v34, %v668_v44  ;;  %v826_v39 = vrot.slane %v820_v30, 4 }
  0xd6   : > { %v646_v31 = vsel %vm239_vm7, %v644_v28, %v645_v21  ;;  %v787_v28 = vrot.slane %v780_v19, 2 }
  0xd8   : > { %509 = vrot.lane.b32.xlu0 %v506_v38, %s2491_s21  ;;  %490 = vrot.lane.b32.xlu1 %v487_v40, %s2491_s21  ;;  %v665_v38 = vrot.slane %v659_v29, 3  ;;  %v687_v40 = vrot.slane %v681_v32, 4  ;;  %v840_v32 = vstv %s2258_s4  ;;  %s2268_s4 = sld [smem:[#allocation3 + $0xd]] }
  0xda   : > { %v667_v42 = vsel %vm257_vm8, %v665_v38, %v666_v34  ;;  %v688_v48 = vsel %vm275_vm9, %v686_v46, %v687_v40  ;;  %v690_v60 = vsel %vm275_vm9, %v687_v40, %v689_v52  ;;  %v842_v34 = vmul.f32 %v840_v32, %v2595_v13 }
  0xdb   : > { %v822_v38 = vmul.f32 %v819_v22, %v2612_v25  ;;  %v841_v40 = vmul.f32 %v840_v32, %v2589_v10 }
  0xdc   : > { %530 = vrot.lane.b32.xlu0 %v527_v49, %s2491_s21  ;;  %511 = vrot.lane.b32.xlu1 %v508_v50, %s2491_s21  ;;  %v708_v49 = vrot.slane %v702_v41, 5  ;;  %v721_v50 = vstv %s2252_s26  ;;  %s2813_s26 = sld [smem:[#allocation3 + $0x7]] }
  0xdd   : > { %v723_v53 = vmul.f32 %v721_v50, %v2595_v13  ;;  %v722_v56 = vmul.f32 %v721_v50, %v2589_v10  ;;  %v724_v63 = vmul.f32 %v721_v50, %v2612_v25  ;;  %v829_v45 = vrot.slane %v822_v38, 4 }
  0xde   : > { %v711_v6 = vsel %vm293_vm10, %v708_v49, %v710_v62  ;;  %v896_v50 = vstv %s2261_s6  ;;  %s2848_s6 = sld [smem:[#allocation3 + $0x6]] }
  0xdf   : > { %v729_v61 = vrot.slane %v723_v53, 6  ;;  %v731_v7 = vrot.slane %v724_v63, 6  ;;  %v898_v52 = vmul.f32 %v896_v50, %v2595_v13  ;;  %v897_v57 = vmul.f32 %v896_v50, %v2589_v10 }
  0xe0   : > { %551 = vrot.lane.b32.xlu0 %v548_v55, %s2491_s21  ;;  %532 = vrot.lane.b32.xlu1 %v529_v58, %s2491_s21  ;;  %v707_v55 = vrot.slane %v701_v47, 5  ;;  %v843_v47 = vmul.f32 %v840_v32, %v2612_v25 }
  0xe1   : > { %v732_v16 = vsel %vm311_vm11, %v729_v61, %v731_v7  ;;  %v903_v2 = vrot.slane %v897_v57, 1  ;;  %v938_v7 = vstv %s2263_s8  ;;  %s2855_s8 = sld [smem:[#allocation3 + $0x1b]] }
  0xe2   : > { %v709_v58 = vsel %vm293_vm10, %v707_v55, %v708_v49  ;;  %v850_v55 = vrot.slane %v843_v47, 5 }
  0xe4   : > { %572 = vrot.lane.b32.xlu0 %v569_v1, %s2491_s21  ;;  %553 = vrot.lane.b32.xlu1 %v550_v3, %s2491_s21  ;;  %v728_v1 = vrot.slane %v722_v56, 6  ;;  %v764_v3 = vrot.slane %v758_v59, 1  ;;  %v917_v59 = vstv %s2262_s7  ;;  %s2852_s7 = sld [smem:[#allocation3 + $0x14]] }
  0xe6   : > { %v730_v5 = vsel %vm311_vm11, %v728_v1, %v729_v61  ;;  %v765_v12 = vsel %vm221_vm6, %v763_v9, %v764_v3  ;;  %v767_v26 = vsel %vm221_vm6, %v764_v3, %v766_v17  ;;  %v919_v61 = vmul.f32 %v917_v59, %v2595_v13 }
  0xe7   : > { %v899_v1 = vmul.f32 %v896_v50, %v2612_v25  ;;  %v918_v3 = vmul.f32 %v917_v59, %v2589_v10 }
  0xe8   : > { %593 = vrot.lane.b32.xlu0 %v590_v14, %s2491_s21  ;;  %574 = vrot.lane.b32.xlu1 %v571_v15, %s2491_s21  ;;  %v785_v14 = vrot.slane %v779_v4, 2  ;;  %v798_v15 = vstv %s2256_s30  ;;  %s2827_s30 = sld [smem:[#allocation3 + $0x1c]] }
  0xe9   : > { %v800_v18 = vmul.f32 %v798_v15, %v2595_v13  ;;  %v799_v21 = vmul.f32 %v798_v15, %v2589_v10  ;;  %v801_v29 = vmul.f32 %v798_v15, %v2612_v25  ;;  %v906_v9 = vrot.slane %v899_v1, 1 }
  0xea   : > { %v788_v36 = vsel %vm239_vm7, %v785_v14, %v787_v28  ;;  %v939_v15 = vmul.f32 %v938_v7, %v2589_v10  ;;  %v980_v28 = vstv %s2265_s17  ;;  %s2866_s17 = sld [smem:[#allocation3 + $0x29]] }
  0xeb   : > { %v806_v27 = vrot.slane %v800_v18, 3  ;;  %v808_v37 = vrot.slane %v801_v29, 3  ;;  %v982_v32 = vmul.f32 %v980_v28, %v2595_v13  ;;  %v981_v38 = vmul.f32 %v980_v28, %v2589_v10 }
  0xec   : > { %628 = vrot.lane.b32.xlu0 %v625_v20, %s2492_s23  ;;  %595 = vrot.lane.b32.xlu1 %v592_v23, %s2491_s21  ;;  %v784_v20 = vrot.slane %v778_v11, 2  ;;  %v940_v11 = vmul.f32 %v938_v7, %v2595_v13  ;;  %v983_v47 = vmul.f32 %v980_v28, %v2612_v25 }
  0xed   : > { %v809_v44 = vsel %vm257_vm8, %v806_v27, %v808_v37 }
  0xee   : > { %v786_v23 = vsel %vm239_vm7, %v784_v20, %v785_v14  ;;  %v924_v14 = vrot.slane %v918_v3, 2  ;;  %v946_v22 = vrot.slane %v940_v11, 3  ;;  %v1022_v3 = vstv %s2848_s6  ;;  %s3166_s6 = sld [smem:[#allocation3 + $0x3a]] }
  0xf0   : > { %649 = vrot.lane.b32.xlu0 %v646_v31, %s2492_s23  ;;  %630 = vrot.lane.b32.xlu1 %v627_v33, %s2492_s23  ;;  %v805_v31 = vrot.slane %v799_v21, 3  ;;  %v827_v33 = vrot.slane %v821_v24, 4  ;;  %v941_v24 = vmul.f32 %v938_v7, %v2612_v25  ;;  %v2891_v7 = vstv %s2827_s30  ;;  %s3069_s30 = sld [smem:[#allocation3 + $0x47]] }
  0xf2   : > { %v807_v35 = vsel %vm257_vm8, %v805_v31, %v806_v27  ;;  %v828_v41 = vsel %vm275_vm9, %v826_v39, %v827_v33  ;;  %v830_v53 = vsel %vm275_vm9, %v827_v33, %v829_v45  ;;  %v945_v27 = vrot.slane %v939_v15, 3 }
  0xf4   : > { %670 = vrot.lane.b32.xlu0 %v667_v42, %s2492_s23  ;;  %651 = vrot.lane.b32.xlu1 %v648_v43, %s2492_s23  ;;  %v848_v42 = vrot.slane %v842_v34, 5  ;;  %v861_v43 = vstv %s2259_s5  ;;  %v947_v33 = vsel %vm257_vm8, %v945_v27, %v946_v22  ;;  %s2837_s5 = sld [smem:[#allocation3 + $0x2a]]  ;;  %v2922_v27 = vstv %s2866_s17 }
  0xf5   : > { %v863_v46 = vmul.f32 %v861_v43, %v2595_v13  ;;  %v862_v49 = vmul.f32 %v861_v43, %v2589_v10  ;;  %v864_v56 = vmul.f32 %v861_v43, %v2612_v25  ;;  %v1001_v43 = vstv %s2807_s22  ;;  %s2870_s22 = sld [smem:[#allocation3 + $0x30]] }
  0xf6   : > { %v851_v63 = vsel %vm293_vm10, %v848_v42, %v850_v55  ;;  %v990_v55 = vrot.slane %v983_v47, 5  ;;  %s3211_s17 = sld [smem:[#allocation3 + $0x4f]] }
  0xf7   : > { %v869_v54 = vrot.slane %v863_v46, 6  ;;  %v871_v0 = vrot.slane %v864_v56, 6  ;;  %v1003_v46 = vmul.f32 %v1001_v43, %v2595_v13  ;;  %v1004_v56 = vmul.f32 %v1001_v43, %v2612_v25 }
  0xf8   : > { %691 = vrot.lane.b32.xlu0 %v688_v48, %s2492_s23  ;;  %672 = vrot.lane.b32.xlu1 %v669_v51, %s2492_s23  ;;  %v847_v48 = vrot.slane %v841_v40, 5 }
  0xf9   : > { %v872_v8 = vsel %vm311_vm11, %v869_v54, %v871_v0 }
  0xfa   : > { %v849_v51 = vsel %vm293_vm10, %v847_v48, %v848_v42  ;;  %v988_v42 = vrot.slane %v982_v32, 5  ;;  %v987_v48 = vrot.slane %v981_v38, 5  ;;  %v2900_v11 = vstv %s2837_s5  ;;  %s3130_s5 = sld [smem:[#allocation3 + $0x5c]] }
  0xfc   : > { %712 = vrot.lane.b32.xlu0 %v709_v58, %s2492_s23  ;;  %693 = vrot.lane.b32.xlu1 %v690_v60, %s2492_s23  ;;  %v868_v58 = vrot.slane %v862_v49, 6  ;;  %v904_v60 = vrot.slane %v898_v52, 1  ;;  %v1002_v49 = vmul.f32 %v1001_v43, %v2589_v10  ;;  %v989_v52 = vsel %vm293_vm10, %v987_v48, %v988_v42 }
  0xfe   : > { %v870_v62 = vsel %vm311_vm11, %v868_v58, %v869_v54  ;;  %v907_v21 = vsel %vm221_vm6, %v904_v60, %v906_v9  ;;  %v1009_v54 = vrot.slane %v1003_v46, 6  ;;  %v1008_v57 = vrot.slane %v1002_v49, 6 }
  0xff   : > { %v1036_v58 = vstv %s2268_s4  ;;  %v2897_v9 = vstv %s2832_s3  ;;  %s3090_s3 = sld [smem:[#allocation3 + $0x4e]] }
 0x100   : > { %733 = vrot.lane.b32.xlu0 %v730_v5, %s2492_s23  ;;  %714 = vrot.lane.b32.xlu1 %v711_v6, %s2492_s23  ;;  %v905_v5 = vsel %vm221_vm6, %v903_v2, %v904_v60  ;;  %v925_v6 = vrot.slane %v919_v61, 2  ;;  %v214_v60 = vstv %s2813_s26  ;;  %v2875_v61 = vstv %s2818_s28  ;;  %s2495_s26 = smov 122   ;;  %s3027_s28 = sld [smem:[#allocation3 + $0x32]] }
 0x101   : > { %v2882_v0 = vmul.f32 %v1036_v58, %v2595_v13  ;;  %v1010_v1 = vsel %vm311_vm11, %v1008_v57, %v1009_v54  ;;  %v991_v2 = vsel %vm293_vm10, %v988_v42, %v990_v55  ;;  %v2905_v15 = vmul.f32 %v214_v60, %v2595_v13  ;;  %s3113_s4 = sld [smem:[#allocation3 + $0x55]] }
 0x102   : > { %v926_v19 = vsel %vm239_vm7, %v924_v14, %v925_v6  ;;  %v1078_v14 = vstv %s2855_s8  ;;  %v215_v28 = vmul.f32 %v214_v60, %v2589_v10  ;;  %v2929_v32 = vmul.f32 %v2875_v61, %v2595_v13  ;;  %s2290_s8 = sld [smem:[#allocation3 + $0x41]] }
 0x103   : > { %v223_v38 = vrot.slane %v2905_v15, 1  ;;  %v1080_v48 = vmul.f32 %v1078_v14, %v2595_v13  ;;  %v2965_v57 = vmul.f32 %v2891_v7, %v2589_v10 }
 0x104   : > { %768 = vrot.lane.b32.xlu0 %v765_v12, %s2493_s25  ;;  %735 = vrot.lane.b32.xlu1 %v732_v16, %s2492_s23  ;;  %v920_v12 = vmul.f32 %v917_v59, %v2612_v25  ;;  %v959_v16 = vstv %s2264_s16  ;;  %s2862_s16 = sld [smem:[#allocation3 + $0x22]]  ;;  %v208_v59 = vstv %s2809_s24 }
 0x105   : > { %v961_v20 = vmul.f32 %v959_v16, %v2595_v13  ;;  %s3020_s24 = sld [smem:[#allocation3 + $0x39]] }
 0x107   : > { %v967_v31 = vrot.slane %v961_v20, 4  ;;  %v1023_v20 = vmul.f32 %v1022_v3, %v2589_v10 }
 0x108   : > { %789 = vrot.lane.b32.xlu0 %v786_v23, %s2493_s25  ;;  %770 = vrot.lane.b32.xlu1 %v767_v26, %s2493_s25  ;;  %v927_v23 = vrot.slane %v920_v12, 2  ;;  %v960_v26 = vmul.f32 %v959_v16, %v2589_v10  ;;  %v1057_v12 = vstv %s2852_s7  ;;  %s3172_s7 = sld [smem:[#allocation3 + $0x33]] }
 0x109   : > { %v1060_v49 = vmul.f32 %v1057_v12, %v2612_v25 }
 0x10a   : > { %v928_v34 = vsel %vm239_vm7, %v925_v6, %v927_v23  ;;  %v966_v37 = vrot.slane %v960_v26, 4  ;;  %v2888_v6 = vstv %s2820_s29  ;;  %v1039_v26 = vmul.f32 %v1036_v58, %v2612_v25  ;;  %s3039_s29 = sld [smem:[#allocation3 + $0x40]] }
 0x10b   : > { %v2958_v55 = vmul.f32 %v2888_v6, %v2595_v13 }
 0x10c   : > { %810 = vrot.lane.b32.xlu0 %v807_v35, %s2493_s25  ;;  %791 = vrot.lane.b32.xlu1 %v788_v36, %s2493_s25  ;;  %v948_v35 = vrot.slane %v941_v24, 3  ;;  %v962_v36 = vmul.f32 %v959_v16, %v2612_v25  ;;  %v2918_v24 = vmul.f32 %v1057_v12, %v2595_v13  ;;  %v1046_v47 = vrot.slane %v1039_v26, 1 }
 0x10d   : > { %v2983_v26 = vmul.f32 %v2891_v7, %v2595_v13 }
 0x10e   : > { %v969_v45 = vrot.slane %v962_v36, 4  ;;  %v1058_v36 = vmul.f32 %v1057_v12, %v2589_v10  ;;  %v1065_v46 = vrot.slane %v2918_v24, 2  ;;  %v259_v24 = vrot.slane %v2958_v55, 3 }
 0x110   : > { %831 = vrot.lane.b32.xlu0 %v828_v41, %s2493_s25  ;;  %812 = vrot.lane.b32.xlu1 %v809_v44, %s2493_s25  ;;  %v968_v41 = vsel %vm275_vm9, %v966_v37, %v967_v31  ;;  %v949_v44 = vsel %vm257_vm8, %v946_v22, %v948_v35  ;;  %v2914_v22 = vstv %s2862_s16  ;;  %v2938_v35 = vmul.f32 %v2888_v6, %v2589_v10  ;;  %s2291_s16 = sld [smem:[#allocation3 + $0x48]] }
 0x111   : > { %v2942_v37 = vstv %s2870_s22  ;;  %s3215_s22 = sld [smem:[#allocation3 + $0x56]] }
 0x114   : > { %852 = vrot.lane.b32.xlu0 %v849_v51, %s2493_s25  ;;  %833 = vrot.lane.b32.xlu1 %v830_v53, %s2493_s25  ;;  %v970_v53 = vsel %vm275_vm9, %v967_v31, %v969_v45  ;;  %v233_v31 = vmul.f32 %v2875_v61, %v2589_v10  ;;  %v1024_v45 = vmul.f32 %v1022_v3, %v2595_v13 }
 0x118   : > { %873 = vrot.lane.b32.xlu0 %v870_v62, %s2493_s25  ;;  %854 = vrot.lane.b32.xlu1 %v851_v63, %s2493_s25 }
 0x11a   : > { %v2792_v4 = vpop.permute.xlu0 %327 }
 0x11c   : > { %908 = vrot.lane.b32.xlu0 %v905_v5, %s2494_s27  ;;  %875 = vrot.lane.b32.xlu1 %v872_v8, %s2493_s25  ;;  %v1011_v5 = vrot.slane %v1004_v56, 6  ;;  %v1037_v8 = vmul.f32 %v1036_v58, %v2589_v10  ;;  %v258_v56 = vrot.slane %v2938_v35, 3  ;;  %v1064_v58 = vrot.slane %v1058_v36, 2 }
 0x11e   : > { %v2801_v17 = vpop.permute.xlu1 %329  ;;  %v2803_v18 = vpop.permute.xlu0 %467  ;;  %v1012_v23 = vsel %vm311_vm11, %v1009_v54, %v1011_v5  ;;  %v241_v54 = vrot.slane %v2929_v32, 2  ;;  %v2975_v5 = vmul.f32 %v2914_v22, %v2595_v13  ;;  %v1066_v12 = vsel %vm239_vm7, %v1064_v58, %v1065_v46  ;;  %v2402_v32 = vld [vmem:[#allocation2 + $0x10] sm:$0x3f] }
 0x11f   : > { %v3024_v58 = vmul.f32 %v2897_v9, %v2595_v13 }
 0x120   : > { %929 = vrot.lane.b32.xlu0 %v926_v19, %s2494_s27  ;;  %910 = vrot.lane.b32.xlu1 %v907_v21, %s2494_s27  ;;  %v1044_v21 = vrot.slane %v2882_v0, 1 }
 0x122   : > { %v2822_v29 = vpop.permute.xlu1 %469  ;;  %v2824_v30 = vpop.permute.xlu0 %607  ;;  %v1047_v15 = vsel %vm221_vm6, %v1044_v21, %v1046_v47 }
 0x124   : > { %950 = vrot.lane.b32.xlu0 %v947_v33, %s2494_s27  ;;  %931 = vrot.lane.b32.xlu1 %v928_v34, %s2494_s27  ;;  %v1043_v33 = vrot.slane %v1037_v8, 1  ;;  %v209_v34 = vmul.f32 %v208_v59, %v2589_v10  ;;  %v1081_v8 = vmul.f32 %v1078_v14, %v2612_v25 }
 0x126   : > { %v2839_v39 = vpop.permute.xlu1 %609  ;;  %v2841_v40 = vpop.permute.xlu0 %747 }
 0x128   : > { %971 = vrot.lane.b32.xlu0 %v968_v41, %s2494_s27  ;;  %952 = vrot.lane.b32.xlu1 %v949_v44, %s2494_s27  ;;  %v217_v41 = vmul.f32 %v214_v60, %v2612_v25  ;;  %v1045_v44 = vsel %vm221_vm6, %v1043_v33, %v1044_v21  ;;  %v1079_v60 = vmul.f32 %v1078_v14, %v2589_v10 }
 0x129   : > { %v1100_v14 = vmul.f32 %v2914_v22, %v2589_v10  ;;  %v2996_v33 = vmul.f32 %v2897_v9, %v2589_v10  ;;  %v3011_v10 = vmul.f32 %v2922_v27, %v2595_v13 }
 0x12a   : > { %v2857_v50 = vpop.permute.xlu1 %749  ;;  %v2859_v51 = vpop.permute.xlu0 %887  ;;  %v1085_v35 = vrot.slane %v1079_v60, 3 }
 0x12c   : > { %992 = vrot.lane.b32.xlu0 %v989_v52, %s2494_s27  ;;  %973 = vrot.lane.b32.xlu1 %v970_v53, %s2494_s27  ;;  %v222_v52 = vrot.slane %v215_v28, 1  ;;  %v240_v53 = vrot.slane %v233_v31, 2  ;;  %v235_v28 = vmul.f32 %v2875_v61, %v2612_v25  ;;  %v210_v61 = vmul.f32 %v208_v59, %v2595_v13 }
 0x12d   : > { %v1102_v59 = vmul.f32 %v2914_v22, %v2612_v25  ;;  %v2400_v22 = vld [vmem:[#allocation2] sm:$0xff] }
 0x12e   : > { %v2877_v62 = vpop.permute.xlu1 %889  ;;  %v2879_v63 = vpop.permute.xlu0 %348  ;;  %v224_v0 = vsel %vm221_vm6, %v222_v52, %v223_v38  ;;  %v242_v21 = vsel %vm239_vm7, %v240_v53, %v241_v54  ;;  %v253_v52 = vmul.f32 %v2888_v6, %v2612_v25  ;;  %v1106_v53 = vrot.slane %v1100_v14, 4 }
 0x12f   : > { %v229_v31 = vadd.f32 %v224_v0, %v209_v34  ;;  %v1107_v34 = vrot.slane %v2975_v5, 4  ;;  %v260_v6 = vsel %vm257_vm8, %v258_v56, %v259_v24  ;;  %v277_v0 = vrot.slane %v2983_v26, 4 }
 0x130   : > { %1013 = vrot.lane.b32.xlu0 %v1010_v1, %s2494_s27  ;;  %994 = vrot.lane.b32.xlu1 %v991_v2, %s2494_s27  ;;  %v225_v1 = vrot.slane %v217_v41, 1  ;;  %v1123_v56 = vmul.f32 %v2922_v27, %v2612_v25  ;;  %v294_v26 = vrot.slane %v2996_v33, 5  ;;  %v261_v14 = vrot.slane %v253_v52, 3 }
 0x131   : > { %v295_v33 = vrot.slane %v3024_v58, 5  ;;  %v305_v58 = vmul.f32 %v2400_v22, %v2900_v11 }
 0x132   : > { %v2907_v16 = vpop.permute.xlu1 %350  ;;  %v2909_v19 = vpop.permute.xlu0 %369  ;;  %v226_v36 = vsel %vm221_vm6, %v223_v38, %v225_v1  ;;  %v276_v38 = vrot.slane %v2965_v57, 4  ;;  %v1121_v57 = vmul.f32 %v2400_v22, %v2922_v27 }
 0x133   : > { %v230_v60 = vadd.f32 %v226_v36, %v210_v61  ;;  %v1142_v36 = vmul.f32 %v2400_v22, %v2942_v37 }
 0x134   : > { %1027 = vrot.lane.b32.xlu0 %v1023_v20, %s2495_s26  ;;  %1015 = vrot.lane.b32.xlu1 %v1012_v23, %s2494_s27  ;;  %v1086_v20 = vrot.slane %v1080_v48, 3  ;;  %v1067_v23 = vrot.slane %v1060_v49, 2  ;;  %v243_v49 = vrot.slane %v235_v28, 2  ;;  %v1127_v61 = vrot.slane %v1121_v57, 5 }
 0x135   : > { %v278_v27 = vsel %vm275_vm9, %v276_v38, %v277_v0  ;;  %v3071_v38 = vld [vmem:[#allocation2 + $0x18] sm:$0xff]  ;;  %v1148_v57 = vrot.slane %v1142_v36, 6 }
 0x136   : > { %v2946_v42 = vpop.permute.xlu1 %371  ;;  %v2948_v43 = vpop.permute.xlu0 %390  ;;  %v1087_v47 = vsel %vm257_vm8, %v1085_v35, %v1086_v20  ;;  %v1068_v48 = vsel %vm239_vm7, %v1065_v46, %v1067_v23  ;;  %v247_v46 = vadd.f32 %v242_v21, %v229_v31  ;;  %v2401_v23 = vld [vmem:[#allocation2 + $0x8] sm:$0xff]  ;;  %v271_v31 = vmul.f32 %v2891_v7, %v2612_v25 }
 0x137   : > { %v3043_v28 = vmul.f32 %v2401_v23, %v2942_v37 }
 0x138   : > { %1048 = vrot.lane.b32.xlu0 %v1045_v44, %s2495_s26  ;;  %1029 = vrot.lane.b32.xlu1 %v1024_v45, %s2495_s26  ;;  %v1088_v45 = vrot.slane %v1081_v8, 3  ;;  %v1108_v8 = vsel %vm275_vm9, %v1106_v53, %v1107_v34  ;;  %v265_v21 = vadd.f32 %v260_v6, %v247_v46  ;;  %v279_v52 = vrot.slane %v271_v31, 4 }
 0x139   : > { %v289_v53 = vmul.f32 %v2402_v32, %v2897_v9  ;;  %v296_v6 = vsel %vm293_vm10, %v294_v26, %v295_v33  ;;  %v1273_v9 = vstv %s3027_s28  ;;  %v307_v31 = vmul.f32 %v2402_v32, %v2900_v11  ;;  %s3281_s28 = sld [smem:[#allocation3 + $0x34]] }
 0x13a   : > { %v2969_v2 = vpop.permute.xlu1 %392  ;;  %v2971_v3 = vpop.permute.xlu0 %411  ;;  %v1089_v13 = vsel %vm257_vm8, %v1086_v20, %v1088_v45  ;;  %v244_v20 = vsel %vm239_vm7, %v241_v54, %v243_v49  ;;  %v3059_v45 = vmul.f32 %v2401_v23, %v2900_v11  ;;  %v1144_v54 = vmul.f32 %v2402_v32, %v2942_v37  ;;  %v3073_v49 = vld [vmem:[#allocation2 + $0x20] sm:$0xff] }
 0x13b   : > { %v248_v35 = vadd.f32 %v244_v20, %v230_v60  ;;  %v262_v37 = vsel %vm257_vm8, %v259_v24, %v261_v14  ;;  %v283_v46 = vadd.f32 %v278_v27, %v265_v21  ;;  %v297_v14 = vrot.slane %v289_v53, 5 }
 0x13c   : > { %1069 = vrot.lane.b32.xlu0 %v1066_v12, %s2495_s26  ;;  %1050 = vrot.lane.b32.xlu1 %v1047_v15, %s2495_s26  ;;  %v1128_v12 = vrot.slane %v3011_v10, 5  ;;  %v1109_v15 = vrot.slane %v1102_v59, 4  ;;  %v1149_v10 = vrot.slane %v3043_v28, 6  ;;  %v1130_v59 = vrot.slane %v1123_v56, 5  ;;  %v3096_v56 = vld [vmem:[#allocation2 + $0x28] sm:$0x3f] }
 0x13d   : > { %v266_v60 = vadd.f32 %v262_v37, %v248_v35  ;;  %v1151_v55 = vrot.slane %v1144_v54, 6  ;;  %v313_v26 = vrot.slane %v3059_v45, 6  ;;  %v280_v20 = vsel %vm275_vm9, %v277_v0, %v279_v52 }
 0x13e   : > { %v3002_v41 = vpop.permute.xlu1 %413  ;;  %v3004_v44 = vpop.permute.xlu0 %432  ;;  %v1150_v24 = vsel %vm311_vm11, %v1148_v57, %v1149_v10  ;;  %v1131_v23 = vsel %vm293_vm10, %v1128_v12, %v1130_v59  ;;  %v301_v21 = vadd.f32 %v296_v6, %v283_v46  ;;  %v1274_v45 = vmul.f32 %v1273_v9, %v3071_v38 }
 0x13f   : > { %v1152_v11 = vsel %vm311_vm11, %v1149_v10, %v1151_v55  ;;  %v315_v52 = vrot.slane %v307_v31, 6  ;;  %v298_v53 = vsel %vm293_vm10, %v295_v33, %v297_v14 }
 0x140   : > { %1090 = vrot.lane.b32.xlu0 %v1087_v47, %s2495_s26  ;;  %1071 = vrot.lane.b32.xlu1 %v1068_v48, %s2495_s26  ;;  %v1129_v47 = vsel %vm293_vm10, %v1127_v61, %v1128_v12  ;;  %v1110_v48 = vsel %vm275_vm9, %v1107_v34, %v1109_v15  ;;  %v1287_v34 = vstv %s3020_s24  ;;  %v1308_v15 = vstv %s3039_s29  ;;  %s3274_s24 = sld [smem:[#allocation3 + $0x3b]] }
 0x141   : > { %v1288_v28 = vmul.f32 %v1287_v34, %v3071_v38  ;;  %v1289_v22 = vmul.f32 %v1287_v34, %v3073_v49  ;;  %v284_v12 = vadd.f32 %v280_v20, %v266_v60  ;;  %v1309_v35 = vmul.f32 %v1308_v15, %v3071_v38  ;;  %s3288_s29 = sld [smem:[#allocation3 + $0x42]] }
 0x142   : > { %v3033_v1 = vpop.permute.xlu1 %434  ;;  %v3035_v5 = vpop.permute.xlu0 %453  ;;  %v312_v61 = vrot.slane %v305_v58, 6  ;;  %v1310_v32 = vmul.f32 %v1308_v15, %v3073_v49  ;;  %v1311_v10 = vmul.f32 %v1308_v15, %v3096_v56  ;;  %v1275_v58 = vmul.f32 %v1273_v9, %v3073_v49 }
 0x143   : > { %v1294_v0 = vrot.slane %v1288_v28, 1  ;;  %v1295_v54 = vrot.slane %v1289_v22, 1  ;;  %v302_v46 = vadd.f32 %v298_v53, %v284_v12  ;;  %v316_v9 = vsel %vm311_vm11, %v313_v26, %v315_v52 }
 0x144   : > { %1111 = vrot.lane.b32.xlu0 %v1108_v8, %s2495_s26  ;;  %1092 = vrot.lane.b32.xlu1 %v1089_v13, %s2495_s26  ;;  %v314_v59 = vsel %vm311_vm11, %v312_v61, %v313_v26  ;;  %v1316_v6 = vrot.slane %v1310_v32, 2  ;;  %v1318_v22 = vrot.slane %v1311_v10, 2 }
 0x145   : > { %v319_v37 = vadd.f32 %v314_v59, %v301_v21  ;;  %v1296_v28 = vsel %vm221_vm6, %v1294_v0, %v1295_v54  ;;  %v320_v14 = vadd.f32 %v316_v9, %v302_v46  ;;  %v1371_v0 = vstv %s3113_s4  ;;  %s3339_s4 = sld [smem:[#allocation3 + $0x57]] }
 0x146   : > { %v3061_v25 = vpop.permute.xlu1 %455  ;;  %v3063_v7 = vpop.permute.xlu0 %488  ;;  %v1373_v46 = vmul.f32 %v1371_v0, %v3073_v49 }
 0x148   : > { %1132 = vrot.lane.b32.xlu0 %v1129_v47, %s2495_s26  ;;  %1113 = vrot.lane.b32.xlu1 %v1110_v48, %s2495_s26  ;;  %v1290_v47 = vmul.f32 %v1287_v34, %v3096_v56  ;;  %v1329_v48 = vstv %s3069_s30  ;;  %v1315_v34 = vrot.slane %v1309_v35, 2  ;;  %s3308_s30 = sld [smem:[#allocation3 + $0x49]] }
 0x149   : > { %v1330_v55 = vmul.f32 %v1329_v48, %v3071_v38  ;;  %v1331_v33 = vmul.f32 %v1329_v48, %v3073_v49 }
 0x14a   : > { %v3084_v8 = vpop.permute.xlu1 %490  ;;  %v3086_v13 = vpop.permute.xlu0 %509  ;;  %v1297_v15 = vrot.slane %v1290_v47, 1  ;;  %v1317_v35 = vsel %vm239_vm7, %v1315_v34, %v1316_v6  ;;  %v1319_v47 = vsel %vm239_vm7, %v1316_v6, %v1318_v22  ;;  %v1379_v22 = vrot.slane %v1373_v46, 5 }
 0x14b   : > { %v1336_v26 = vrot.slane %v1330_v55, 3  ;;  %v1337_v61 = vrot.slane %v1331_v33, 3 }
 0x14c   : > { %1153 = vrot.lane.b32.xlu0 %v1150_v24, %s2495_s26  ;;  %1134 = vrot.lane.b32.xlu1 %v1131_v23, %s2495_s26  ;;  %v1350_v24 = vstv %s3090_s3  ;;  %v333_v23 = vadd.f32 %v2792_v4, %v319_v37  ;;  %v1372_v37 = vmul.f32 %v1371_v0, %v3071_v38  ;;  %s3324_s3 = sld [smem:[#allocation3 + $0x50]] }
 0x14d   : > { %v1351_v20 = vmul.f32 %v1350_v24, %v3071_v38  ;;  %v1352_v4 = vmul.f32 %v1350_v24, %v3073_v49 }
 0x14e   : > { %v3104_v36 = vpop.permute.xlu1 %511  ;;  %v3106_v27 = vpop.permute.xlu0 %530  ;;  %v354_v31 = vadd.f32 %v2879_v63, %v333_v23  ;;  %v1298_v63 = vsel %vm221_vm6, %v1295_v54, %v1297_v15  ;;  %v1374_v23 = vmul.f32 %v1371_v0, %v3096_v56 }
 0x14f   : > { %v1357_v53 = vrot.slane %v1351_v20, 4 }
 0x150   : > { %1278 = vrot.lane.b32.xlu0 %v1274_v45, %s2490_s14  ;;  %1155 = vrot.lane.b32.xlu1 %v1152_v11, %s2495_s26  ;;  %v1332_v45 = vmul.f32 %v1329_v48, %v3096_v56  ;;  %v334_v11 = vadd.f32 %v2801_v17, %v320_v14  ;;  %v375_v32 = vadd.f32 %v2909_v19, %v354_v31  ;;  %v1358_v48 = vrot.slane %v1352_v4, 4 }
 0x151   : > { %v1338_v19 = vsel %vm257_vm8, %v1336_v26, %v1337_v61 }
 0x152   : > { %v3121_v60 = vpop.permute.xlu1 %532  ;;  %v3123_v57 = vpop.permute.xlu0 %551  ;;  %v355_v59 = vadd.f32 %v2907_v16, %v334_v11  ;;  %v396_v52 = vadd.f32 %v2948_v43, %v375_v32  ;;  %v1339_v54 = vrot.slane %v1332_v45, 3  ;;  %v1353_v16 = vmul.f32 %v1350_v24, %v3096_v56 }
 0x153   : > { %v1392_v43 = vstv %s3130_s5  ;;  %v1359_v33 = vsel %vm275_vm9, %v1357_v53, %v1358_v48  ;;  %s3347_s5 = sld [smem:[#allocation3 + $0x5e]] }
 0x154   : > { %1299 = vrot.lane.b32.xlu0 %v1296_v28, %s2490_s14  ;;  %1280 = vrot.lane.b32.xlu1 %v1275_v58, %s2490_s14  ;;  %v376_v58 = vadd.f32 %v2946_v42, %v355_v59  ;;  %v417_v34 = vadd.f32 %v2971_v3, %v396_v52  ;;  %v1340_v24 = vsel %vm257_vm8, %v1337_v61, %v1339_v54  ;;  %v1378_v28 = vrot.slane %v1372_v37, 5 }
 0x155   : > { %v1393_v15 = vmul.f32 %v1392_v43, %v3071_v38  ;;  %v1394_v9 = vmul.f32 %v1392_v43, %v3073_v49  ;;  %v1360_v14 = vrot.slane %v1353_v16, 4 }
 0x156   : > { %v3138_v21 = vpop.permute.xlu1 %553  ;;  %v3140_v12 = vpop.permute.xlu0 %572  ;;  %v397_v6 = vadd.f32 %v2969_v2, %v376_v58  ;;  %v438_v55 = vadd.f32 %v3004_v44, %v417_v34  ;;  %v1380_v11 = vsel %vm293_vm10, %v1378_v28, %v1379_v22  ;;  %v1469_v58 = vstv %s2291_s16  ;;  %s3398_s16 = sld [smem:[#allocation3 + $0x51]] }
 0x157   : > { %v1400_v26 = vrot.slane %v1394_v9, 6  ;;  %v1361_v32 = vsel %vm275_vm9, %v1358_v48, %v1360_v14  ;;  %v1471_v14 = vmul.f32 %v1469_v58, %v3073_v49 }
 0x158   : > { %1320 = vrot.lane.b32.xlu0 %v1317_v35, %s2490_s14  ;;  %1301 = vrot.lane.b32.xlu1 %v1298_v63, %s2490_s14  ;;  %v418_v2 = vadd.f32 %v3002_v41, %v397_v6  ;;  %v459_v44 = vadd.f32 %v3035_v5, %v438_v55  ;;  %v1399_v35 = vrot.slane %v1393_v15, 6  ;;  %v1381_v41 = vrot.slane %v1374_v23, 5 }
 0x159   : > { %v1395_v5 = vmul.f32 %v1392_v43, %v3096_v56  ;;  %v1413_v63 = vstv %s3172_s7  ;;  %s3386_s7 = sld [smem:[#allocation3 + $0x43]] }
 0x15a   : > { %v3153_v10 = vpop.permute.xlu1 %574  ;;  %v3155_v17 = vpop.permute.xlu0 %593  ;;  %v439_v31 = vadd.f32 %v3033_v1, %v418_v2  ;;  %v473_v61 = vadd.f32 %v2803_v18, %v459_v44  ;;  %v1427_v1 = vstv %s3166_s6  ;;  %v1401_v59 = vsel %vm311_vm11, %v1399_v35, %v1400_v26  ;;  %s3380_s6 = sld [smem:[#allocation3 + $0x3c]] }
 0x15b   : > { %v1382_v18 = vsel %vm293_vm10, %v1379_v22, %v1381_v41  ;;  %v1402_v52 = vrot.slane %v1395_v5, 6  ;;  %v1429_v54 = vmul.f32 %v1427_v1, %v3073_v49  ;;  %v1414_v46 = vmul.f32 %v1413_v63, %v3071_v38 }
 0x15c   : > { %1341 = vrot.lane.b32.xlu0 %v1338_v19, %s2490_s14  ;;  %1322 = vrot.lane.b32.xlu1 %v1319_v47, %s2490_s14  ;;  %v460_v45 = vadd.f32 %v3061_v25, %v439_v31  ;;  %v1448_v25 = vstv %s2290_s8  ;;  %v494_v48 = vadd.f32 %v3063_v7, %v473_v61  ;;  %v1428_v19 = vmul.f32 %v1427_v1, %v3071_v38  ;;  %s3392_s8 = sld [smem:[#allocation3 + $0x4a]] }
 0x15d   : > { %v1403_v34 = vsel %vm311_vm11, %v1400_v26, %v1402_v52  ;;  %v1430_v16 = vmul.f32 %v1427_v1, %v3096_v56  ;;  %v1449_v43 = vmul.f32 %v1448_v25, %v3071_v38  ;;  %v1450_v6 = vmul.f32 %v1448_v25, %v3073_v49 }
 0x15e   : > { %v3174_v42 = vpop.permute.xlu1 %595  ;;  %v3176_v3 = vpop.permute.xlu0 %628  ;;  %v474_v53 = vadd.f32 %v2822_v29, %v460_v45  ;;  %v515_v37 = vadd.f32 %v3086_v13, %v494_v48  ;;  %v1435_v23 = vrot.slane %v1429_v54, 1  ;;  %v1415_v15 = vmul.f32 %v1413_v63, %v3073_v49 }
 0x15f   : > { %v1451_v9 = vmul.f32 %v1448_v25, %v3096_v56  ;;  %v1455_v44 = vrot.slane %v1449_v43, 2  ;;  %v1470_v22 = vmul.f32 %v1469_v58, %v3071_v38  ;;  %v1456_v35 = vrot.slane %v1450_v6, 2 }
 0x160   : > { %1362 = vrot.lane.b32.xlu0 %v1359_v33, %s2490_s14  ;;  %1343 = vrot.lane.b32.xlu1 %v1340_v24, %s2490_s14  ;;  %v495_v55 = vadd.f32 %v3084_v8, %v474_v53  ;;  %v536_v13 = vadd.f32 %v3106_v27, %v515_v37  ;;  %v1434_v33 = vrot.slane %v1428_v19, 1  ;;  %v1437_v27 = vrot.slane %v1430_v16, 1 }
 0x161   : > { %v1490_v26 = vstv %s3211_s17  ;;  %v1458_v61 = vrot.slane %v1451_v9, 2  ;;  %v1511_v45 = vstv %s3215_s22  ;;  %v1477_v1 = vrot.slane %v1471_v14, 3  ;;  %s3404_s17 = sld [smem:[#allocation3 + $0x58]] }
 0x162   : > { %v3186_v20 = vpop.permute.xlu1 %630  ;;  %v3188_v4 = vpop.permute.xlu0 %649  ;;  %v516_v24 = vadd.f32 %v3104_v36, %v495_v55  ;;  %v557_v28 = vadd.f32 %v3123_v57, %v536_v13  ;;  %v1436_v31 = vsel %vm221_vm6, %v1434_v33, %v1435_v23  ;;  %v1472_v63 = vmul.f32 %v1469_v58, %v3096_v56  ;;  %s3430_s22 = sld [smem:[#allocation3 + $0x5f]] }
 0x163   : > { %v1459_v53 = vsel %vm239_vm7, %v1456_v35, %v1458_v61  ;;  %v1493_v54 = vmul.f32 %v1490_v26, %v3096_v56  ;;  %v1512_v37 = vmul.f32 %v1511_v45, %v3071_v38  ;;  %v1514_v6 = vmul.f32 %v1511_v45, %v3096_v56 }
 0x164   : > { %1383 = vrot.lane.b32.xlu0 %v1380_v11, %s2490_s14  ;;  %1364 = vrot.lane.b32.xlu1 %v1361_v32, %s2490_s14  ;;  %v537_v36 = vadd.f32 %v3121_v60, %v516_v24  ;;  %v578_v57 = vadd.f32 %v3140_v12, %v557_v28  ;;  %v1438_v12 = vsel %vm221_vm6, %v1435_v23, %v1437_v27  ;;  %v1476_v32 = vrot.slane %v1470_v22, 3 }
 0x165   : > { %v1479_v58 = vrot.slane %v1472_v63, 3  ;;  %v1500_v33 = vrot.slane %v1493_v54, 4  ;;  %v1518_v23 = vrot.slane %v1512_v37, 5  ;;  %v1521_v22 = vrot.slane %v1514_v6, 5 }
 0x166   : > { %v3199_v0 = vpop.permute.xlu1 %651  ;;  %v3201_v47 = vpop.permute.xlu0 %670  ;;  %v558_v41 = vadd.f32 %v3138_v21, %v537_v36  ;;  %v599_v5 = vadd.f32 %v3155_v17, %v578_v57  ;;  %v1491_v21 = vmul.f32 %v1490_v26, %v3071_v38  ;;  %v1492_v17 = vmul.f32 %v1490_v26, %v3073_v49 }
 0x167   : > { %v1478_v19 = vsel %vm257_vm8, %v1476_v32, %v1477_v1  ;;  %v1588_v63 = vstv %s3288_s29  ;;  %s3455_s29 = sld [smem:[#allocation3 + $0x31]] }
 0x168   : > { %1404 = vrot.lane.b32.xlu0 %v1401_v59, %s2490_s14  ;;  %1385 = vrot.lane.b32.xlu1 %v1382_v18, %s2490_s14  ;;  %v579_v59 = vadd.f32 %v3153_v10, %v558_v41  ;;  %v1457_v18 = vsel %vm239_vm7, %v1455_v44, %v1456_v35  ;;  %v613_v52 = vadd.f32 %v2824_v30, %v599_v5  ;;  %v1498_v16 = vrot.slane %v1492_v17, 4 }
 0x169   : > { %v1590_v54 = vmul.f32 %v1588_v63, %v3073_v49 }
 0x16a   : > { %v3217_v29 = vpop.permute.xlu1 %672  ;;  %v3219_v7 = vpop.permute.xlu0 %691  ;;  %v600_v25 = vadd.f32 %v3174_v42, %v579_v59  ;;  %v634_v43 = vadd.f32 %v3176_v3, %v613_v52 }
 0x16c   : > { %1406 = vrot.lane.b32.xlu1 %v1403_v34, %s2490_s14  ;;  %1418 = vrot.lane.b32.xlu0 %v1414_v46, %s2491_s21  ;;  %s3242_s14 = sld [smem:[#allocation3 + $0x5d]]  ;;  %v1513_v46 = vmul.f32 %v1511_v45, %v3073_v49  ;;  %v1497_v34 = vrot.slane %v1491_v21, 4  ;;  %v614_v42 = vadd.f32 %v2839_v39, %v600_v25  ;;  %v1480_v39 = vsel %vm257_vm8, %v1477_v1, %v1479_v58 }
 0x16d   : > { %v1553_v1 = vstv %s3281_s28  ;;  %s3450_s28 = sld [smem:[#allocation3 + $0x4d]] }
 0x16e   : > { %v3233_v2 = vpop.permute.xlu1 %693  ;;  %v3235_v8 = vpop.permute.xlu0 %712  ;;  %v1519_v24 = vrot.slane %v1513_v46, 5  ;;  %v1499_v3 = vsel %vm275_vm9, %v1497_v34, %v1498_v16  ;;  %v635_v27 = vadd.f32 %v3186_v20, %v614_v42  ;;  %v1554_v17 = vmul.f32 %v1553_v1, %v3071_v38 }
 0x16f   : > { %v1591_v34 = vmul.f32 %v1588_v63, %v3096_v56 }
 0x170   : > { %1420 = vrot.lane.b32.xlu1 %v1415_v15, %s2491_s21  ;;  %1439 = vrot.lane.b32.xlu0 %v1436_v31, %s2491_s21  ;;  %v655_v15 = vadd.f32 %v3188_v4, %v634_v43  ;;  %v1501_v4 = vsel %vm275_vm9, %v1498_v16, %v1500_v33  ;;  %v1520_v57 = vsel %vm293_vm10, %v1518_v23, %v1519_v24 }
 0x171   : > { %v656_v26 = vadd.f32 %v3199_v0, %v635_v27  ;;  %v1522_v45 = vsel %vm293_vm10, %v1519_v24, %v1521_v22  ;;  %v1555_v16 = vmul.f32 %v1553_v1, %v3073_v49 }
 0x172   : > { %v3250_v11 = vpop.permute.xlu1 %714  ;;  %v3252_v60 = vpop.permute.xlu0 %733  ;;  %v1532_v30 = vstv %s3242_s14  ;;  %v676_v44 = vadd.f32 %v3201_v47, %v655_v15  ;;  %v1567_v47 = vstv %s3274_s24  ;;  %v1630_v15 = vstv %s3324_s3  ;;  %s3434_s14 = sld [smem:[#allocation3 + $0x38]] }
 0x173   : > { %v1533_v28 = vmul.f32 %v1532_v30, %v3071_v38  ;;  %v1534_v9 = vmul.f32 %v1532_v30, %v3073_v49  ;;  %v1535_v35 = vmul.f32 %v1532_v30, %v3096_v56  ;;  %v677_v5 = vadd.f32 %v3217_v29, %v656_v26  ;;  %s3443_s24 = sld [smem:[#allocation3 + $0x3f]] }
 0x174   : > { %1441 = vrot.lane.b32.xlu1 %v1438_v12, %s2491_s21  ;;  %1460 = vrot.lane.b32.xlu0 %v1457_v18, %s2491_s21  ;;  %v697_v20 = vadd.f32 %v3219_v7, %v676_v44  ;;  %v1568_v7 = vmul.f32 %v1567_v47, %v3071_v38  ;;  %v1569_v29 = vmul.f32 %v1567_v47, %v3073_v49  ;;  %v1651_v26 = vstv %s3339_s4  ;;  %s3462_s3 = sld [smem:[#allocation3 + $0x5b]] }
 0x175   : > { %v1539_v31 = vrot.slane %v1533_v28, 6  ;;  %v1540_v41 = vrot.slane %v1534_v9, 6  ;;  %v1542_v0 = vrot.slane %v1535_v35, 6  ;;  %v698_v59 = vadd.f32 %v3233_v2, %v677_v5  ;;  %s3494_s4 = sld [smem:[#allocation3 + $0x3d]] }
 0x176   : > { %v3265_v48 = vpop.permute.xlu1 %735  ;;  %v3267_v10 = vpop.permute.xlu0 %768  ;;  %v718_v61 = vadd.f32 %v3235_v8, %v697_v20  ;;  %v1570_v52 = vmul.f32 %v1567_v47, %v3096_v56  ;;  %v1575_v58 = vrot.slane %v1569_v29, 1  ;;  %v1652_v1 = vmul.f32 %v1651_v26, %v3071_v38 }
 0x177   : > { %v1541_v21 = vsel %vm311_vm11, %v1539_v31, %v1540_v41  ;;  %v719_v8 = vadd.f32 %v3250_v11, %v698_v59  ;;  %v1543_v25 = vsel %vm311_vm11, %v1540_v41, %v1542_v0  ;;  %v1609_v11 = vstv %s3308_s30  ;;  %s3458_s30 = sld [smem:[#allocation3 + $0x54]] }
 0x178   : > { %1462 = vrot.lane.b32.xlu1 %v1459_v53, %s2491_s21  ;;  %1481 = vrot.lane.b32.xlu0 %v1478_v19, %s2491_s21  ;;  %v739_v18 = vadd.f32 %v3252_v60, %v718_v61  ;;  %v1574_v53 = vrot.slane %v1568_v7, 1  ;;  %v1589_v19 = vmul.f32 %v1588_v63, %v3071_v38  ;;  %v1577_v30 = vrot.slane %v1570_v52, 1 }
 0x179   : > { %v740_v46 = vadd.f32 %v3265_v48, %v719_v8  ;;  %v1610_v48 = vmul.f32 %v1609_v11, %v3071_v38  ;;  %v1611_v33 = vmul.f32 %v1609_v11, %v3073_v49  ;;  %v1612_v27 = vmul.f32 %v1609_v11, %v3096_v56 }
 0x17a   : > { %v3283_v55 = vpop.permute.xlu1 %770  ;;  %v3285_v13 = vpop.permute.xlu0 %789  ;;  %v753_v37 = vadd.f32 %v2841_v40, %v739_v18  ;;  %v1595_v6 = vrot.slane %v1589_v19, 2  ;;  %v1596_v40 = vrot.slane %v1590_v54, 2  ;;  %v1576_v28 = vsel %vm221_vm6, %v1574_v53, %v1575_v58 }
 0x17b   : > { %v754_v23 = vadd.f32 %v2857_v50, %v740_v46  ;;  %v1578_v9 = vsel %vm221_vm6, %v1575_v58, %v1577_v30  ;;  %v1619_v5 = vrot.slane %v1612_v27, 3  ;;  %v1633_v61 = vmul.f32 %v1630_v15, %v3096_v56 }
 0x17c   : > { %1483 = vrot.lane.b32.xlu1 %v1480_v39, %s2491_s21  ;;  %1502 = vrot.lane.b32.xlu0 %v1499_v3, %s2491_s21  ;;  %v774_v24 = vadd.f32 %v3267_v10, %v753_v37  ;;  %v1598_v39 = vrot.slane %v1591_v34, 2  ;;  %v1597_v50 = vsel %vm239_vm7, %v1595_v6, %v1596_v40  ;;  %v1616_v10 = vrot.slane %v1610_v48, 3 }
 0x17d   : > { %v775_v31 = vadd.f32 %v3283_v55, %v754_v23  ;;  %v1672_v7 = vstv %s3347_s5  ;;  %v1654_v29 = vmul.f32 %v1651_v26, %v3096_v56  ;;  %v1640_v52 = vrot.slane %v1633_v61, 4  ;;  %s3517_s5 = sld [smem:[#allocation3 + $0x36]] }
 0x17e   : > { %v3298_v14 = vpop.permute.xlu1 %791  ;;  %v3300_v36 = vpop.permute.xlu0 %810  ;;  %v795_v3 = vadd.f32 %v3285_v13, %v774_v24  ;;  %v1632_v13 = vmul.f32 %v1630_v15, %v3073_v49  ;;  %v1599_v20 = vsel %vm239_vm7, %v1596_v40, %v1598_v39  ;;  %v1675_v37 = vmul.f32 %v1672_v7, %v3096_v56 }
 0x17f   : > { %v796_v41 = vadd.f32 %v3298_v14, %v775_v31  ;;  %v1653_v14 = vmul.f32 %v1651_v26, %v3073_v49  ;;  %v1661_v11 = vrot.slane %v1654_v29, 5  ;;  %v1707_v48 = vstv %s3380_s6  ;;  %s3566_s6 = sld [smem:[#allocation3 + $0x4b]] }
 0x180   : > { %1504 = vrot.lane.b32.xlu1 %v1501_v4, %s2491_s21  ;;  %1523 = vrot.lane.b32.xlu0 %v1520_v57, %s2491_s21  ;;  %v1617_v4 = vrot.slane %v1611_v33, 3  ;;  %v1631_v57 = vmul.f32 %v1630_v15, %v3071_v38  ;;  %v816_v35 = vadd.f32 %v3300_v36, %v795_v3  ;;  %v1638_v18 = vrot.slane %v1632_v13, 4 }
 0x181   : > { %v1659_v54 = vrot.slane %v1653_v14, 5  ;;  %v1709_v27 = vmul.f32 %v1707_v48, %v3073_v49 }
 0x182   : > { %v3315_v12 = vpop.permute.xlu1 %812  ;;  %v832_v32 = vpop.permute.xlu0 %831  ;;  %v1618_v36 = vsel %vm257_vm8, %v1616_v10, %v1617_v4  ;;  %v1637_v0 = vrot.slane %v1631_v57, 4  ;;  %v1641_v30 = vsel %vm275_vm9, %v1638_v18, %v1640_v52 }
 0x183   : > { %v837_v47 = vadd.f32 %v832_v32, %v816_v35  ;;  %v817_v63 = vadd.f32 %v3315_v12, %v796_v41  ;;  %v1620_v12 = vsel %vm257_vm8, %v1617_v4, %v1619_v5  ;;  %v1662_v24 = vsel %vm293_vm10, %v1659_v54, %v1661_v11 }
 0x184   : > { %1525 = vrot.lane.b32.xlu1 %v1522_v45, %s2491_s21  ;;  %1544 = vrot.lane.b32.xlu0 %v1541_v21, %s2491_s21  ;;  %v1639_v19 = vsel %vm275_vm9, %v1637_v0, %v1638_v18  ;;  %v1715_v61 = vrot.slane %v1709_v27, 1 }
 0x186   : > { %v3331_v2 = vpop.permute.xlu1 %833  ;;  %v853_v60 = vpop.permute.xlu0 %852 }
 0x187   : > { %v858_v59 = vadd.f32 %v853_v60, %v837_v47  ;;  %v838_v32 = vadd.f32 %v3331_v2, %v817_v63  ;;  %v1658_v60 = vrot.slane %v1652_v1, 5  ;;  %v1674_v2 = vmul.f32 %v1672_v7, %v3073_v49 }
 0x188   : > { %1546 = vrot.lane.b32.xlu1 %v1543_v25, %s2491_s21  ;;  %1558 = vrot.lane.b32.xlu0 %v1554_v17, %s2492_s23  ;;  %s3376_s21 = sld [smem:[#allocation3 + $0x35]]  ;;  %v1673_v25 = vmul.f32 %v1672_v7, %v3071_v38  ;;  %v1791_v63 = vstv %s3404_s17 }
 0x189   : > { %v1680_v6 = vrot.slane %v1674_v2, 6  ;;  %s3689_s17 = sld [smem:[#allocation3 + $0x37]] }
 0x18a   : > { %v855_v42 = vpop.permute.xlu1 %854  ;;  %v874_v43 = vpop.permute.xlu0 %873 }
 0x18b   : > { %v879_v21 = vadd.f32 %v874_v43, %v858_v59  ;;  %v859_v53 = vadd.f32 %v855_v42, %v838_v32  ;;  %v1679_v42 = vrot.slane %v1673_v25, 6  ;;  %v1660_v43 = vsel %vm293_vm10, %v1658_v60, %v1659_v54 }
 0x18c   : > { %1560 = vrot.lane.b32.xlu1 %v1555_v16, %s2492_s23  ;;  %1579 = vrot.lane.b32.xlu0 %v1576_v28, %s2492_s23  ;;  %v1728_v28 = vstv %s3386_s7  ;;  %v1792_v25 = vmul.f32 %v1791_v63, %v3071_v38  ;;  %s3582_s7 = sld [smem:[#allocation3 + $0x52]] }
 0x18d   : > { %v893_v46 = vadd.f32 %v2859_v51, %v879_v21  ;;  %v1682_v51 = vrot.slane %v1675_v37, 6  ;;  %v1681_v10 = vsel %vm311_vm11, %v1679_v42, %v1680_v6  ;;  %v1729_v57 = vmul.f32 %v1728_v28, %v3071_v38 }
 0x18e   : > { %v876_v44 = vpop.permute.xlu1 %875  ;;  %v3358_v22 = vpop.permute.xlu0 %908  ;;  %v1693_v40 = vstv %s3376_s21  ;;  %v3424_v31 = vmul.f32 %v1728_v28, %v3073_v49  ;;  %v1731_v26 = vmul.f32 %v1728_v28, %v3096_v56  ;;  %s3525_s21 = sld [smem:[#allocation3 + $0x44]] }
 0x18f   : > { %v880_v58 = vadd.f32 %v876_v44, %v859_v53  ;;  %v914_v23 = vadd.f32 %v3358_v22, %v893_v46  ;;  %v1694_v3 = vmul.f32 %v1693_v40, %v3071_v38  ;;  %v1710_v44 = vmul.f32 %v1707_v48, %v3096_v56 }
 0x190   : > { %1581 = vrot.lane.b32.xlu1 %v1578_v9, %s2492_s23  ;;  %1600 = vrot.lane.b32.xlu0 %v1597_v50, %s2492_s23  ;;  %v1708_v9 = vmul.f32 %v1707_v48, %v3071_v38  ;;  %v1749_v22 = vstv %s3392_s8  ;;  %v1683_v4 = vsel %vm311_vm11, %v1680_v6, %v1682_v51  ;;  %v1736_v29 = vrot.slane %v3424_v31, 2  ;;  %s3606_s8 = sld [smem:[#allocation3 + $0x59]] }
 0x191   : > { %v894_v33 = vadd.f32 %v2877_v62, %v880_v58  ;;  %v1695_v62 = vmul.f32 %v1693_v40, %v3073_v49  ;;  %v1751_v7 = vmul.f32 %v1749_v22, %v3073_v49  ;;  %v1752_v59 = vmul.f32 %v1749_v22, %v3096_v56 }
 0x192   : > { %v3371_v45 = vpop.permute.xlu1 %910  ;;  %v930_v55 = vpop.permute.xlu0 %929  ;;  %v1714_v5 = vrot.slane %v1708_v9, 1  ;;  %v1738_v60 = vrot.slane %v1731_v26, 2  ;;  %v1793_v53 = vmul.f32 %v1791_v63, %v3073_v49  ;;  %v1798_v51 = vrot.slane %v1792_v25, 5 }
 0x193   : > { %v935_v50 = vadd.f32 %v930_v55, %v914_v23  ;;  %v915_v35 = vadd.f32 %v3371_v45, %v894_v33  ;;  %v1717_v55 = vrot.slane %v1710_v44, 1  ;;  %v1735_v45 = vrot.slane %v1729_v57, 2 }
 0x194   : > { %1602 = vrot.lane.b32.xlu1 %v1599_v20, %s2492_s23  ;;  %1621 = vrot.lane.b32.xlu0 %v1618_v36, %s2492_s23  ;;  %v1770_v20 = vstv %s3398_s16  ;;  %v1750_v36 = vmul.f32 %v1749_v22, %v3071_v38  ;;  %v1716_v52 = vsel %vm221_vm6, %v1714_v5, %v1715_v61  ;;  %v1757_v37 = vrot.slane %v1751_v7, 3  ;;  %s3672_s16 = sld [smem:[#allocation3 + $0x3e]] }
 0x195   : > { %v1771_v18 = vmul.f32 %v1770_v20, %v3071_v38  ;;  %v1772_v14 = vmul.f32 %v1770_v20, %v3073_v49  ;;  %v1759_v46 = vrot.slane %v1752_v59, 3  ;;  %v1718_v42 = vsel %vm221_vm6, %v1715_v61, %v1717_v55 }
 0x196   : > { %v932_v8 = vpop.permute.xlu1 %931  ;;  %v951_v17 = vpop.permute.xlu0 %950  ;;  %v1756_v2 = vrot.slane %v1750_v36, 3  ;;  %v1737_v48 = vsel %vm239_vm7, %v1735_v45, %v1736_v29  ;;  %v1799_v33 = vrot.slane %v1793_v53, 5  ;;  %v1812_v23 = vstv %s3430_s22  ;;  %s3695_s22 = sld [smem:[#allocation3 + $0x45]] }
 0x197   : > { %v956_v13 = vadd.f32 %v951_v17, %v935_v50  ;;  %v936_v0 = vadd.f32 %v932_v8, %v915_v35  ;;  %v1773_v8 = vmul.f32 %v1770_v20, %v3096_v56  ;;  %v1777_v58 = vrot.slane %v1771_v18, 4 }
 0x198   : > { %1623 = vrot.lane.b32.xlu1 %v1620_v12, %s2492_s23  ;;  %1642 = vrot.lane.b32.xlu0 %v1639_v19, %s2492_s23  ;;  %v1778_v11 = vrot.slane %v1772_v14, 4  ;;  %v1760_v9 = vsel %vm257_vm8, %v1757_v37, %v1759_v46  ;;  %v3476_v22 = vstv %s3443_s24  ;;  %v1800_v31 = vsel %vm293_vm10, %v1798_v51, %v1799_v33  ;;  %s3717_s24 = sld [smem:[#allocation3 + $0x53]] }
 0x199   : > { %v3480_v35 = vmul.f32 %v1812_v23, %v3073_v49  ;;  %v3492_v5 = vstv %s3450_s28  ;;  %v1165_v55 = vstv %s3455_s29  ;;  %v1189_v36 = vmul.f32 %v3476_v22, %v3071_v38  ;;  %s2331_s29 = sshll.u32 %s2535_s13, 8  ;;  %s2496_s13 = smov [#allocation6]  }
 0x19a   : > { %v953_v34 = vpop.permute.xlu1 %952  ;;  %v972_v16 = vpop.permute.xlu0 %971  ;;  %v1779_v27 = vsel %vm275_vm9, %v1777_v58, %v1778_v11  ;;  %v3515_v45 = vstv %s3458_s30  ;;  %v1815_v46 = vmul.f32 %v1812_v23, %v3096_v56 }
 0x19b   : > { %v977_v1 = vadd.f32 %v972_v16, %v956_v13  ;;  %v957_v32 = vadd.f32 %v953_v34, %v936_v0  ;;  %v1794_v34 = vmul.f32 %v1791_v63, %v3096_v56  ;;  %v3506_v0 = vmul.f32 %v3476_v22, %v3073_v49 }
 0x19c   : > { %1644 = vrot.lane.b32.xlu1 %v1641_v30, %s2492_s23  ;;  %1663 = vrot.lane.b32.xlu0 %v1660_v43, %s2492_s23  ;;  %v1780_v43 = vrot.slane %v1773_v8, 4  ;;  %v1820_v14 = vrot.slane %v3480_v35, 6  ;;  %v1240_v53 = vmul.f32 %v3515_v45, %v3071_v38 }
 0x19d   : > { %v1801_v44 = vrot.slane %v1794_v34, 5  ;;  %v1196_v25 = vrot.slane %v3506_v0, 2 }
 0x19e   : > { %v974_v15 = vpop.permute.xlu1 %973  ;;  %v993_v39 = vpop.permute.xlu0 %992 }
 0x19f   : > { %v998_v21 = vadd.f32 %v993_v39, %v977_v1  ;;  %v978_v19 = vadd.f32 %v974_v15, %v957_v32  ;;  %v1739_v15 = vsel %vm239_vm7, %v1736_v29, %v1738_v60  ;;  %v3466_v39 = vstv %s3434_s14  ;;  %s3706_s14 = sld [smem:[#allocation3 + $0x4c]] }
 0x1a0   : > { %1665 = vrot.lane.b32.xlu1 %v1662_v24, %s2492_s23  ;;  %1684 = vrot.lane.b32.xlu0 %v1681_v10, %s2492_s23  ;;  %v1781_v10 = vsel %vm275_vm9, %v1778_v11, %v1780_v43  ;;  %v1172_v13 = vmul.f32 %v3466_v39, %v3071_v38  ;;  %v3499_v61 = vsel %vm293_vm10, %v1799_v33, %v1801_v44  ;;  %v3523_v29 = vstv %s3462_s3  ;;  %v3575_v44 = vld [vmem:[#allocation2 + $0x18] sm:$0xff] }
 0x1a1   : > { %v1195_v60 = vrot.slane %v1189_v36, 2  ;;  %v3602_v36 = vld [vmem:[#allocation2 + $0x28] sm:$0x3f] }
 0x1a2   : > { %v995_v41 = vpop.permute.xlu1 %994  ;;  %v1014_v47 = vpop.permute.xlu0 %1013  ;;  %v1178_v32 = vrot.slane %v1172_v13, 1 }
 0x1a3   : > { %v1019_v54 = vadd.f32 %v1014_v47, %v998_v21  ;;  %v999_v16 = vadd.f32 %v995_v41, %v978_v19  ;;  %v3489_v47 = vmul.f32 %v3466_v39, %v3073_v49  ;;  %v1223_v21 = vmul.f32 %v3492_v5, %v3071_v38 }
 0x1a4   : > { %1686 = vrot.lane.b32.xlu1 %v1683_v4, %s2492_s23  ;;  %1698 = vrot.lane.b32.xlu0 %v1694_v3, %s2493_s25  ;;  %s3448_s23 = sld [smem:[#allocation3 + $0x46]]  ;;  %v1758_v3 = vsel %vm257_vm8, %v1756_v2, %v1757_v37  ;;  %v3539_v19 = vmul.f32 %v3515_v45, %v3073_v49  ;;  %v1257_v37 = vmul.f32 %v3523_v29, %v3071_v38 }
 0x1a6   : > { %v1016_v17 = vpop.permute.xlu1 %1015  ;;  %v1028_v12 = vpop.permute.xlu0 %1027  ;;  %v1247_v33 = vrot.slane %v3539_v19, 5 }
 0x1a7   : > { %v1033_v30 = vadd.f32 %v1028_v12, %v1019_v54  ;;  %v1020_v24 = vadd.f32 %v1016_v17, %v999_v16  ;;  %v1179_v12 = vrot.slane %v3489_v47, 1  ;;  %v1166_v16 = vmul.f32 %v1165_v55, %v3071_v38 }
 0x1a8   : > { %1700 = vrot.lane.b32.xlu1 %v1695_v62, %s2493_s25  ;;  %1719 = vrot.lane.b32.xlu0 %v1716_v52, %s2493_s25  ;;  %v1813_v62 = vmul.f32 %v1812_v23, %v3071_v38  ;;  %v3530_v52 = vmul.f32 %v3492_v5, %v3073_v49 }
 0x1a9   : > { %v1180_v51 = vsel %vm221_vm6, %v1178_v32, %v1179_v12 }
 0x1aa   : > { %v1030_v6 = vpop.permute.xlu1 %1029  ;;  %v1049_v40 = vpop.permute.xlu0 %1048  ;;  %v3485_v26 = vstv %s3448_s23  ;;  %v1819_v1 = vrot.slane %v1813_v62, 6  ;;  %s3729_s23 = sld [smem:[#allocation3 + $0x5a]] }
 0x1ab   : > { %v1054_v28 = vadd.f32 %v1049_v40, %v1033_v30  ;;  %v1034_v50 = vadd.f32 %v1030_v6, %v1020_v24  ;;  %v1206_v7 = vmul.f32 %v3485_v26, %v3071_v38  ;;  %v3512_v63 = vmul.f32 %v3485_v26, %v3073_v49 }
 0x1ac   : > { %1721 = vrot.lane.b32.xlu1 %v1718_v42, %s2493_s25  ;;  %1740 = vrot.lane.b32.xlu0 %v1737_v48, %s2493_s25  ;;  %v1821_v34 = vsel %vm311_vm11, %v1819_v1, %v1820_v14  ;;  %v1229_v30 = vrot.slane %v1223_v21, 4  ;;  %v3551_v42 = vmul.f32 %v3523_v29, %v3073_v49  ;;  %v1230_v40 = vrot.slane %v3530_v52, 4 }
 0x1ad   : > { %v1212_v54 = vrot.slane %v1206_v7, 3  ;;  %v1213_v2 = vrot.slane %v3512_v63, 3  ;;  %v1847_v48 = vstv %s3494_s4  ;;  %v3563_v38 = vsel %vm239_vm7, %v1195_v60, %v1196_v25 }
 0x1ae   : > { %v1051_v4 = vpop.permute.xlu1 %1050  ;;  %v1070_v57 = vpop.permute.xlu0 %1069  ;;  %v1246_v49 = vrot.slane %v1240_v53, 5  ;;  %v1263_v24 = vrot.slane %v1257_v37, 6  ;;  %v3587_v35 = vsel %vm275_vm9, %v1229_v30, %v1230_v40  ;;  %v1191_v1 = vmul.f32 %v3602_v36, %v3476_v22 }
 0x1af   : > { %v1055_v20 = vadd.f32 %v1051_v4, %v1034_v50  ;;  %v1075_v41 = vadd.f32 %v1070_v57, %v1054_v28  ;;  %v3571_v23 = vsel %vm257_vm8, %v1212_v54, %v1213_v2  ;;  %v1822_v28 = vrot.slane %v1815_v46, 6 }
 0x1b0   : > { %1742 = vrot.lane.b32.xlu1 %v1739_v15, %s2493_s25  ;;  %1761 = vrot.lane.b32.xlu0 %v1758_v3, %s2493_s25  ;;  %v1833_v15 = vstv %s3517_s5  ;;  %v1848_v50 = vmul.f32 %v3575_v44, %v1847_v48  ;;  %v1868_v4 = vstv %s3525_s21  ;;  %v1850_v7 = vmul.f32 %v3602_v36, %v1847_v48  ;;  %s3780_s21 = scalar_lea.hbm %s3826_s2, %s2331_s29 }
 0x1b1   : > { %v3624_v60 = vmul.f32 %v3602_v36, %v3492_v5  ;;  %v1198_v54 = vrot.slane %v1191_v1, 2  ;;  %v1242_v37 = vmul.f32 %v3602_v36, %v3515_v45  ;;  %v1889_v46 = vstv %s3566_s6 }
 0x1b2   : > { %v1072_v59 = vpop.permute.xlu1 %1071  ;;  %v1091_v18 = vpop.permute.xlu0 %1090  ;;  %v1854_v32 = vrot.slane %v1848_v50, 1  ;;  %v1890_v45 = vmul.f32 %v3575_v44, %v1889_v46  ;;  %v1931_v50 = vstv %s3606_s8  ;;  %s2425_s8 = sshll.u32 %s2496_s13, 4  ;;  %s2426_s8 = int_to_ptr.vmem [resolvable:$false] %s2425_s8 }
 0x1b3   : > { %v1076_v8 = vadd.f32 %v1072_v59, %v1055_v20  ;;  %v1096_v17 = vadd.f32 %v1091_v18, %v1075_v41  ;;  %v3598_v20 = vsel %vm293_vm10, %v1246_v49, %v1247_v33  ;;  %v1174_v41 = vmul.f32 %v3466_v39, %v3096_v56 }
 0x1b4   : > { %1763 = vrot.lane.b32.xlu1 %v1760_v9, %s2493_s25  ;;  %1782 = vrot.lane.b32.xlu0 %v1779_v27, %s2493_s25  ;;  %v1264_v27 = vrot.slane %v3551_v42, 6  ;;  %v1869_v59 = vmul.f32 %v3575_v44, %v1868_v4  ;;  %v1910_v49 = vstv %s3582_s7 }
 0x1b5   : > { %v1181_v53 = vrot.slane %v1174_v41, 1  ;;  %v1911_v1 = vmul.f32 %v3575_v44, %v1910_v49  ;;  %v1913_v0 = vmul.f32 %v3602_v36, %v1910_v49 }
 0x1b6   : > { %v1093_v58 = vpop.permute.xlu1 %1092  ;;  %v1112_v11 = vpop.permute.xlu0 %1111  ;;  %v3615_v56 = vsel %vm311_vm11, %v1263_v24, %v1264_v27 }
 0x1b7   : > { %v1097_v43 = vadd.f32 %v1093_v58, %v1076_v8  ;;  %v1117_v6 = vadd.f32 %v1112_v11, %v1096_v17  ;;  %v1208_v17 = vmul.f32 %v3602_v36, %v3485_v26  ;;  %v1875_v26 = vrot.slane %v1869_v59, 2 }
 0x1b8   : > { %1784 = vrot.lane.b32.xlu1 %v1781_v10, %s2493_s25  ;;  %1803 = vrot.lane.b32.xlu0 %v1800_v31, %s2493_s25  ;;  %v3578_v10 = vld [vmem:[#allocation2 + $0x20] sm:$0xff]  ;;  %v1896_v59 = vrot.slane %v1890_v45, 3  ;;  %v1917_v63 = vrot.slane %v1911_v1, 4 }
 0x1b9   : > { %v1849_v62 = vmul.f32 %v3578_v10, %v1847_v48  ;;  %v1167_v13 = vmul.f32 %v3578_v10, %v1165_v55  ;;  %v1823_v55 = vsel %vm311_vm11, %v1820_v14, %v1822_v28  ;;  %v3618_v21 = vmul.f32 %v3578_v10, %v1868_v4 }
 0x1ba   : > { %v1114_v3 = vpop.permute.xlu1 %1113  ;;  %v1133_v9 = vpop.permute.xlu0 %1132  ;;  %v1835_v11 = vmul.f32 %v3578_v10, %v1833_v15  ;;  %v1871_v48 = vmul.f32 %v3602_v36, %v1868_v4 }
 0x1bb   : > { %v1118_v57 = vadd.f32 %v1114_v3, %v1097_v43  ;;  %v1138_v31 = vadd.f32 %v1133_v9, %v1117_v6  ;;  %v1855_v22 = vrot.slane %v1849_v62, 1  ;;  %v1876_v6 = vrot.slane %v3618_v21, 2 }
 0x1bc   : > { %1805 = vrot.lane.b32.xlu1 %v3499_v61, %s2493_s25  ;;  %1824 = vrot.lane.b32.xlu0 %v1821_v34, %s2493_s25  ;;  %v1834_v61 = vmul.f32 %v3575_v44, %v1833_v15  ;;  %v1857_v34 = vrot.slane %v1850_v7, 1  ;;  %v1182_v15 = vsel %vm221_vm6, %v1179_v12, %v1181_v53  ;;  %v1215_v3 = vrot.slane %v1208_v17, 3 }
 0x1bd   : > { %v1856_v43 = vsel %vm221_vm6, %v1854_v32, %v1855_v22  ;;  %v1232_v9 = vrot.slane %v3624_v60, 4  ;;  %v1878_v41 = vrot.slane %v1871_v48, 2  ;;  %v1259_v32 = vmul.f32 %v3602_v36, %v3523_v29 }
 0x1be   : > { %v1135_v18 = vpop.permute.xlu1 %1134  ;;  %v1154_v39 = vpop.permute.xlu0 %1153  ;;  %v1858_v4 = vsel %vm221_vm6, %v1855_v22, %v1857_v34  ;;  %v1933_v17 = vmul.f32 %v3578_v10, %v1931_v50 }
 0x1bf   : > { %v1139_v14 = vadd.f32 %v1135_v18, %v1118_v57  ;;  %v1159_v8 = vadd.f32 %v1154_v39, %v1138_v31  ;;  %v1892_v57 = vmul.f32 %v3602_v36, %v1889_v46  ;;  %v1877_v31 = vsel %vm239_vm7, %v1875_v26, %v1876_v6 }
 0x1c0   : > { %1826 = vrot.lane.b32.xlu1 %v1823_v55, %s2493_s25  ;;  %1838 = vrot.lane.b32.xlu0 %v1834_v61, %s2494_s27  ;;  %s3647_s25 = sld [smem:[#allocation3 + $0x60]]  ;;  %v1912_v55 = vmul.f32 %v3578_v10, %v1910_v49  ;;  %v1216_v18 = vsel %vm257_vm8, %v1213_v2, %v1215_v3  ;;  %v1249_v39 = vrot.slane %v1242_v37, 5  ;;  %v1932_v2 = vmul.f32 %v3575_v44, %v1931_v50 }
 0x1c1   : > { %v1168_v58 = vadd.f32 %v1166_v16, %v1159_v8  ;;  %v1891_v16 = vmul.f32 %v3578_v10, %v1889_v46  ;;  %v1899_v21 = vrot.slane %v1892_v57, 3  ;;  %v1266_v46 = vrot.slane %v1259_v32, 6 }
 0x1c2   : > { %v1156_v30 = vpop.permute.xlu1 %1155  ;;  %v3632_v5 = vpop.permute.xlu0 %1278  ;;  %v1918_v8 = vrot.slane %v1912_v55, 4  ;;  %v1250_v37 = vsel %vm293_vm10, %v1247_v33, %v1249_v39  ;;  %v1934_v26 = vmul.f32 %v3602_v36, %v1931_v50  ;;  %v1920_v33 = vrot.slane %v1913_v0, 4 }
 0x1c3   : > { %v1185_v24 = vadd.f32 %v1180_v51, %v1168_v58  ;;  %v1160_v28 = vadd.f32 %v1156_v30, %v1139_v14  ;;  %v1938_v30 = vrot.slane %v1932_v2, 5 }
 0x1c4   : > { %1840 = vrot.lane.b32.xlu1 %v1835_v11, %s2494_s27  ;;  %1859 = vrot.lane.b32.xlu0 %v1856_v43, %s2494_s27  ;;  %v1919_v19 = vsel %vm275_vm9, %v1917_v63, %v1918_v8  ;;  %v1939_v43 = vrot.slane %v1933_v17, 5  ;;  %v1921_v3 = vsel %vm275_vm9, %v1918_v8, %v1920_v33  ;;  %v2029_v8 = vstv %s3706_s14 }
 0x1c5   : > { %v1202_v51 = vadd.f32 %v3563_v38, %v1185_v24  ;;  %v1169_v62 = vadd.f32 %v1167_v13, %v1160_v28  ;;  %v1897_v38 = vrot.slane %v1891_v16, 3  ;;  %v1199_v13 = vsel %vm239_vm7, %v1196_v25, %v1198_v54 }
 0x1c6   : > { %v3652_v47 = vpop.permute.xlu1 %1280  ;;  %v1300_v12 = vpop.permute.xlu0 %1299  ;;  %v1233_v54 = vsel %vm275_vm9, %v1230_v40, %v1232_v9  ;;  %v1952_v58 = vstv %s3647_s25  ;;  %v1267_v24 = vsel %vm311_vm11, %v1264_v27, %v1266_v46  ;;  %v1941_v16 = vrot.slane %v1934_v26, 5  ;;  %s2427_s25 = scalar_lea.vmem %s2426_s8, 512 }
 0x1c7   : > { %v1219_v61 = vadd.f32 %v3571_v23, %v1202_v51  ;;  %v1186_v7 = vadd.f32 %v1182_v15, %v1169_v62  ;;  %v1898_v53 = vsel %vm257_vm8, %v1896_v59, %v1897_v38  ;;  %v1900_v34 = vsel %vm257_vm8, %v1897_v38, %v1899_v21 }
 0x1c8   : > { %1861 = vrot.lane.b32.xlu1 %v1858_v4, %s2494_s27  ;;  %1880 = vrot.lane.b32.xlu0 %v1877_v31, %s2494_s27  ;;  %v1954_v49 = vmul.f32 %v3578_v10, %v1952_v58  ;;  %v1940_v9 = vsel %vm293_vm10, %v1938_v30, %v1939_v43  ;;  %v1955_v50 = vmul.f32 %v3602_v36, %v1952_v58  ;;  %v1987_v51 = vstv %s3672_s16 }
 0x1c9   : > { %v1236_v23 = vadd.f32 %v3587_v35, %v1219_v61  ;;  %v1203_v22 = vadd.f32 %v1199_v13, %v1186_v7  ;;  %v1879_v35 = vsel %vm239_vm7, %v1876_v6, %v1878_v41  ;;  %v1973_v31 = vstv %s3689_s17 }
 0x1ca   : > { %v1302_v14 = vpop.permute.xlu1 %1301  ;;  %v1321_v25 = vpop.permute.xlu0 %1320  ;;  %v1960_v4 = vrot.slane %v1954_v49, 6  ;;  %v1942_v55 = vsel %vm293_vm10, %v1939_v43, %v1941_v16  ;;  %v1962_v61 = vrot.slane %v1955_v50, 6  ;;  %v1988_v7 = vmul.f32 %v3575_v44, %v1987_v51 }
 0x1cb   : > { %v1253_v29 = vadd.f32 %v3598_v20, %v1236_v23  ;;  %v1220_v60 = vadd.f32 %v1216_v18, %v1203_v22  ;;  %v2008_v18 = vstv %s3695_s22  ;;  %v1974_v23 = vmul.f32 %v3575_v44, %v1973_v31 }
 0x1cc   : > { %1882 = vrot.lane.b32.xlu1 %v1879_v35, %s2494_s27  ;;  %1901 = vrot.lane.b32.xlu0 %v1898_v53, %s2494_s27  ;;  %v1990_v22 = vmul.f32 %v3602_v36, %v1987_v51  ;;  %v2009_v63 = vmul.f32 %v3575_v44, %v2008_v18  ;;  %v1975_v53 = vmul.f32 %v3578_v10, %v1973_v31  ;;  %v2050_v33 = vstv %s3717_s24 }
 0x1cd   : > { %v1270_v20 = vadd.f32 %v3615_v56, %v1253_v29  ;;  %v1237_v11 = vadd.f32 %v1233_v54, %v1220_v60  ;;  %v1953_v56 = vmul.f32 %v3575_v44, %v1952_v58  ;;  %v1963_v29 = vsel %vm311_vm11, %v1960_v4, %v1962_v61 }
 0x1ce   : > { %v1323_v52 = vpop.permute.xlu1 %1322  ;;  %v1342_v40 = vpop.permute.xlu0 %1341  ;;  %v2010_v60 = vmul.f32 %v3578_v10, %v2008_v18  ;;  %v1997_v54 = vrot.slane %v1990_v22, 1  ;;  %v2031_v26 = vmul.f32 %v3578_v10, %v2029_v8  ;;  %v2032_v43 = vmul.f32 %v3602_v36, %v2029_v8 }
 0x1cf   : > { %v1254_v6 = vadd.f32 %v1250_v37, %v1237_v11  ;;  %v1284_v48 = vadd.f32 %v3632_v5, %v1270_v20  ;;  %v1959_v62 = vrot.slane %v1953_v56, 6  ;;  %v2011_v37 = vmul.f32 %v3602_v36, %v2008_v18 }
 0x1d0   : > { %1903 = vrot.lane.b32.xlu1 %v1900_v34, %s2494_s27  ;;  %1922 = vrot.lane.b32.xlu0 %v1919_v19, %s2494_s27  ;;  %v2015_v11 = vrot.slane %v2009_v63, 2  ;;  %v2030_v34 = vmul.f32 %v3575_v44, %v2029_v8  ;;  %v2016_v19 = vrot.slane %v2010_v60, 2  ;;  %v2037_v49 = vrot.slane %v2031_v26, 3 }
 0x1d1   : > { %v1271_v28 = vadd.f32 %v1267_v24, %v1254_v6  ;;  %v1305_v45 = vadd.f32 %v1300_v12, %v1284_v48  ;;  %v1961_v13 = vsel %vm311_vm11, %v1959_v62, %v1960_v4  ;;  %v2018_v30 = vrot.slane %v2011_v37, 2 }
 0x1d2   : > { %v1344_v15 = vpop.permute.xlu1 %1343  ;;  %v1363_v5 = vpop.permute.xlu0 %1362  ;;  %v2036_v56 = vrot.slane %v2030_v34, 3  ;;  %v2051_v24 = vmul.f32 %v3575_v44, %v2050_v33  ;;  %v2039_v50 = vrot.slane %v2032_v43, 3 }
 0x1d3   : > { %v1285_v42 = vadd.f32 %v3652_v47, %v1271_v28  ;;  %v1326_v27 = vadd.f32 %v1321_v25, %v1305_v45  ;;  %v1989_v47 = vmul.f32 %v3578_v10, %v1987_v51  ;;  %v2052_v28 = vmul.f32 %v3578_v10, %v2050_v33 }
 0x1d4   : > { %1924 = vrot.lane.b32.xlu1 %v1921_v3, %s2494_s27  ;;  %1943 = vrot.lane.b32.xlu0 %v1940_v9, %s2494_s27  ;;  %v2071_v3 = vstv %s3729_s23  ;;  %v2019_v9 = vsel %vm239_vm7, %v2016_v19, %v2018_v30  ;;  %v2053_v51 = vmul.f32 %v3602_v36, %v2050_v33  ;;  %v2038_v62 = vsel %vm257_vm8, %v2036_v56, %v2037_v49 }
 0x1d5   : > { %v1306_v57 = vadd.f32 %v1302_v14, %v1285_v42  ;;  %v1347_v12 = vadd.f32 %v1342_v40, %v1326_v27  ;;  %v1994_v14 = vrot.slane %v1988_v7, 1  ;;  %v1995_v25 = vrot.slane %v1989_v47, 1 }
 0x1d6   : > { %v1365_v41 = vpop.permute.xlu1 %1364  ;;  %v1384_v1 = vpop.permute.xlu0 %1383  ;;  %v2057_v4 = vrot.slane %v2051_v24, 4  ;;  %v2040_v61 = vsel %vm257_vm8, %v2037_v49, %v2039_v50 }
 0x1d7   : > { %v1327_v59 = vadd.f32 %v1323_v52, %v1306_v57  ;;  %v1368_v38 = vadd.f32 %v1363_v5, %v1347_v12  ;;  %v1996_v20 = vsel %vm221_vm6, %v1994_v14, %v1995_v25  ;;  %v2017_v5 = vsel %vm239_vm7, %v2015_v11, %v2016_v19 }
 0x1d8   : > { %1945 = vrot.lane.b32.xlu1 %v1942_v55, %s2494_s27  ;;  %1964 = vrot.lane.b32.xlu0 %v1961_v13, %s2494_s27  ;;  %v2058_v57 = vrot.slane %v2052_v28, 4  ;;  %v2073_v55 = vmul.f32 %v3578_v10, %v2071_v3  ;;  %v2074_v13 = vmul.f32 %v3602_v36, %v2071_v3 }
 0x1d9   : > { %v1348_v39 = vadd.f32 %v1344_v15, %v1327_v59  ;;  %v1389_v32 = vadd.f32 %v1384_v1, %v1368_v38  ;;  %v1998_v15 = vsel %vm221_vm6, %v1995_v25, %v1997_v54  ;;  %v2072_v1 = vmul.f32 %v3575_v44, %v2071_v3 }
 0x1da   : > { %v1386_v21 = vpop.permute.xlu1 %1385  ;;  %v1405_v0 = vpop.permute.xlu0 %1404  ;;  %v2059_v59 = vsel %vm275_vm9, %v2057_v4, %v2058_v57  ;;  %v2060_v38 = vrot.slane %v2053_v51, 4  ;;  %v2081_v8 = vrot.slane %v2074_v13, 5 }
 0x1db   : > { %v1369_v2 = vadd.f32 %v1365_v41, %v1348_v39  ;;  %v1410_v17 = vadd.f32 %v1405_v0, %v1389_v32  ;;  %v2078_v32 = vrot.slane %v2072_v1, 5 }
 0x1dc   : > { %1966 = vrot.lane.b32.xlu1 %v1963_v29, %s2494_s27  ;;  %1978 = vrot.lane.b32.xlu0 %v1974_v23, %s2495_s26  ;;  %s2322_s27 = sld [smem:[#allocation3 + $0x61]]  ;;  %v2079_v23 = vrot.slane %v2073_v55, 5  ;;  %v2061_v14 = vsel %vm275_vm9, %v2058_v57, %v2060_v38 }
 0x1dd   : > { %v1390_v35 = vadd.f32 %v1386_v21, %v1369_v2 }
 0x1de   : > { %v1407_v46 = vpop.permute.xlu1 %1406  ;;  %v1419_v58 = vpop.permute.xlu0 %1418  ;;  %v2080_v63 = vsel %vm293_vm10, %v2078_v32, %v2079_v23  ;;  %v2082_v29 = vsel %vm293_vm10, %v2079_v23, %v2081_v8 }
 0x1df   : > { %v1411_v52 = vadd.f32 %v1407_v46, %v1390_v35  ;;  %v1424_v40 = vadd.f32 %v1419_v58, %v1410_v17 }
 0x1e0   : > { %1980 = vrot.lane.b32.xlu1 %v1975_v53, %s2495_s26  ;;  %1999 = vrot.lane.b32.xlu0 %v1996_v20, %s2495_s26 }
 0x1e2   : > { %v1421_v6 = vpop.permute.xlu1 %1420  ;;  %v1440_v48 = vpop.permute.xlu0 %1439  ;;  %v2092_v12 = vstv %s2322_s27 }
 0x1e3   : > { %v1425_v45 = vadd.f32 %v1421_v6, %v1411_v52  ;;  %v1445_v16 = vadd.f32 %v1440_v48, %v1424_v40  ;;  %v2093_v18 = vmul.f32 %v3575_v44, %v2092_v12  ;;  %v2094_v22 = vmul.f32 %v3578_v10, %v2092_v12 }
 0x1e4   : > { %2001 = vrot.lane.b32.xlu1 %v1998_v15, %s2495_s26  ;;  %2020 = vrot.lane.b32.xlu0 %v2017_v5, %s2495_s26  ;;  %v2095_v25 = vmul.f32 %v3602_v36, %v2092_v12 }
 0x1e5   : > { %v2099_v2 = vrot.slane %v2093_v18, 6  ;;  %v2100_v44 = vrot.slane %v2094_v22, 6 }
 0x1e6   : > { %v1442_v42 = vpop.permute.xlu1 %1441  ;;  %v1461_v27 = vpop.permute.xlu0 %1460  ;;  %v2102_v35 = vrot.slane %v2095_v25, 6 }
 0x1e7   : > { %v1446_v31 = vadd.f32 %v1442_v42, %v1425_v45  ;;  %v3750_v41 = vadd.f32 %v1461_v27, %v1445_v16  ;;  %v2101_v60 = vsel %vm311_vm11, %v2099_v2, %v2100_v44 }
 0x1e8   : > { %2022 = vrot.lane.b32.xlu1 %v2019_v9, %s2495_s26  ;;  %2041 = vrot.lane.b32.xlu0 %v2038_v62, %s2495_s26  ;;  %v2103_v54 = vsel %vm311_vm11, %v2100_v44, %v2102_v35 }
 0x1ea   : > { %v1463_v7 = vpop.permute.xlu1 %1462  ;;  %v1482_v47 = vpop.permute.xlu0 %1481 }
 0x1eb   : > { %v1467_v39 = vadd.f32 %v1463_v7, %v1446_v31  ;;  %v1487_v9 = vadd.f32 %v1482_v47, %v3750_v41 }
 0x1ec   : > { %2043 = vrot.lane.b32.xlu1 %v2040_v61, %s2495_s26  ;;  %2062 = vrot.lane.b32.xlu0 %v2059_v59, %s2495_s26 }
 0x1ee   : > { %v1484_v21 = vpop.permute.xlu1 %1483  ;;  %v1503_v0 = vpop.permute.xlu0 %1502 }
 0x1ef   : > { %v1508_v42 = vadd.f32 %v1503_v0, %v1487_v9  ;;  %v1488_v27 = vadd.f32 %v1484_v21, %v1467_v39 }
 0x1f0   : > { %2064 = vrot.lane.b32.xlu1 %v2061_v14, %s2495_s26  ;;  %2083 = vrot.lane.b32.xlu0 %v2080_v63, %s2495_s26 }
 0x1f2   : > { %v1505_v10 = vpop.permute.xlu1 %1504  ;;  %v1524_v17 = vpop.permute.xlu0 %1523 }
 0x1f3   : > { %v1529_v62 = vadd.f32 %v1524_v17, %v1508_v42  ;;  %v1509_v12 = vadd.f32 %v1505_v10, %v1488_v27 }
 0x1f4   : > { %2085 = vrot.lane.b32.xlu1 %v2082_v29, %s2495_s26  ;;  %2104 = vrot.lane.b32.xlu0 %v2101_v60, %s2495_s26 }
 0x1f6   : > { %v1526_v36 = vpop.permute.xlu1 %1525  ;;  %v1545_v53 = vpop.permute.xlu0 %1544 }
 0x1f7   : > { %v1550_v31 = vadd.f32 %v1545_v53, %v1529_v62  ;;  %v1530_v1 = vadd.f32 %v1526_v36, %v1509_v12 }
 0x1f8   : > { %2106 = vrot.lane.b32.xlu1 %v2103_v54, %s2495_s26  ;;  %s148_s26 = sand.u32 1, %s2477_s10  }
 0x1f9   : > { %s2221_s28 = sshll.u32 %s148_s26, 4  ;;  %s3784_s6 = scalar_lea.sflag [#allocation4], %s148_s26 }
 0x1fa   : > { %v1547_v37 = vpop.permute.xlu1 %1546  ;;  %v1559_v46 = vpop.permute.xlu0 %1558  ;;  %s150_s30 = scalar_lea.vmem [#allocation6], %s2221_s28 }
 0x1fb   : > { %v1564_v55 = vadd.f32 %v1559_v46, %v1550_v31  ;;  %v1551_v59 = vadd.f32 %v1547_v37, %v1530_v1  ;;  %s2141_s3 = sshll.u32 %s150_s30, 4  ;;  %s3782_s3 = int_to_ptr.vmem [resolvable:$true] %s2141_s3 }
 0x1fc   : > { %s2421_s7 = scalar_lea.vmem %s3782_s3, 256  ;;  %p2428_p13 = scmp.lt.s32.totalorder %s3782_s3, %s2426_s8 }
 0x1fd   : > { %p2422_p9 = scmp.ne.s32.totalorder %s3782_s3, %s2421_s7  ;;  %p2429_p0 = scmp.lt.s32.totalorder %s2427_s25, %s2421_s7 }
 0x1fe   : > { %v1561_v58 = vpop.permute.xlu1 %1560  ;;  %v1580_v20 = vpop.permute.xlu0 %1579 }
 0x1ff   : > { %v1585_v38 = vadd.f32 %v1580_v20, %v1564_v55  ;;  %v1565_v13 = vadd.f32 %v1561_v58, %v1551_v59  ;;  %p2423_p10 = pnand %p2422_p9, %p2552_p5  ;;  %p2430_p1 = por %p2429_p0, %p2428_p13 }
 0x201   : > { %p2424_p12 = pneg %p2423_p10 }
 0x202   : > { %v1582_v11 = vpop.permute.xlu1 %1581  ;;  %v1601_v34 = vpop.permute.xlu0 %1600 }
 0x203   : > { %v1606_v18 = vadd.f32 %v1601_v34, %v1585_v38  ;;  %v1586_v41 = vadd.f32 %v1582_v11, %v1565_v13  ;;  %p2431_p2 = pnand %p2430_p1, %p2424_p12 }
 0x206   : > { %v1603_v26 = vpop.permute.xlu1 %1602  ;;  %v1622_v52 = vpop.permute.xlu0 %1621 }
 0x207   : > { %v1627_v47 = vadd.f32 %v1622_v52, %v1606_v18  ;;  %v1607_v22 = vadd.f32 %v1603_v26, %v1586_v41 }
 0x20a   : > { %v1624_v40 = vpop.permute.xlu1 %1623  ;;  %v1643_v19 = vpop.permute.xlu0 %1642 }
 0x20b   : > { %v1648_v0 = vadd.f32 %v1643_v19, %v1627_v47  ;;  %v1628_v14 = vadd.f32 %v1624_v40, %v1607_v22 }
 0x20e   : > { %v1645_v33 = vpop.permute.xlu1 %1644  ;;  %v1664_v30 = vpop.permute.xlu0 %1663 }
 0x20f   : > { %v1669_v25 = vadd.f32 %v1664_v30, %v1648_v0  ;;  %v1649_v63 = vadd.f32 %v1645_v33, %v1628_v14 }
 0x212   : > { %v1666_v43 = vpop.permute.xlu1 %1665  ;;  %v1685_v6 = vpop.permute.xlu0 %1684 }
 0x213   : > { %v1690_v8 = vadd.f32 %v1685_v6, %v1669_v25  ;;  %v1670_v10 = vadd.f32 %v1666_v43, %v1649_v63 }
 0x216   : > { %v1687_v48 = vpop.permute.xlu1 %1686  ;;  %v1699_v56 = vpop.permute.xlu0 %1698 }
 0x217   : > { %v1704_v17 = vadd.f32 %v1699_v56, %v1690_v8  ;;  %v1691_v29 = vadd.f32 %v1687_v48, %v1670_v10 }
 0x21a   : > { %v1701_v49 = vpop.permute.xlu1 %1700  ;;  %v1720_v24 = vpop.permute.xlu0 %1719 }
 0x21b   : > { %v1725_v60 = vadd.f32 %v1720_v24, %v1704_v17  ;;  %v1705_v53 = vadd.f32 %v1701_v49, %v1691_v29 }
 0x21e   : > { %v1722_v28 = vpop.permute.xlu1 %1721  ;;  %v1741_v45 = vpop.permute.xlu0 %1740 }
 0x21f   : > { %v1746_v54 = vadd.f32 %v1741_v45, %v1725_v60  ;;  %v1726_v37 = vadd.f32 %v1722_v28, %v1705_v53 }
 0x222   : > { %v1743_v16 = vpop.permute.xlu1 %1742  ;;  %v1762_v15 = vpop.permute.xlu0 %1761 }
 0x223   : > { %v1767_v46 = vadd.f32 %v1762_v15, %v1746_v54  ;;  %v1747_v11 = vadd.f32 %v1743_v16, %v1726_v37 }
 0x226   : > { %v1764_v5 = vpop.permute.xlu1 %1763  ;;  %v1783_v3 = vpop.permute.xlu0 %1782 }
 0x227   : > { %v1788_v34 = vadd.f32 %v1783_v3, %v1767_v46  ;;  %v1768_v26 = vadd.f32 %v1764_v5, %v1747_v11 }
 0x22a   : > { %v1785_v50 = vpop.permute.xlu1 %1784  ;;  %v1804_v51 = vpop.permute.xlu0 %1803 }
 0x22b   : > { %v1809_v52 = vadd.f32 %v1804_v51, %v1788_v34  ;;  %v1789_v33 = vadd.f32 %v1785_v50, %v1768_v26 }
 0x22e   : > { %v1806_v4 = vpop.permute.xlu1 %1805  ;;  %v1825_v57 = vpop.permute.xlu0 %1824 }
 0x22f   : > { %v1830_v30 = vadd.f32 %v1825_v57, %v1809_v52  ;;  %v1810_v43 = vadd.f32 %v1806_v4, %v1789_v33 }
 0x232   : > { %v1827_v61 = vpop.permute.xlu1 %1826  ;;  %v1839_v7 = vpop.permute.xlu0 %1838 }
 0x233   : > { %v1844_v6 = vadd.f32 %v1839_v7, %v1830_v30  ;;  %v1831_v24 = vadd.f32 %v1827_v61, %v1810_v43 }
 0x236   : > { %v1841_v32 = vpop.permute.xlu1 %1840  ;;  %v1860_v23 = vpop.permute.xlu0 %1859 }
 0x237   : > { %v1865_v9 = vadd.f32 %v1860_v23, %v1844_v6  ;;  %v1845_v49 = vadd.f32 %v1841_v32, %v1831_v24 }
 0x23a   : > { %v1862_v39 = vpop.permute.xlu1 %1861  ;;  %v1881_v21 = vpop.permute.xlu0 %1880 }
 0x23b   : > { %v1886_v45 = vadd.f32 %v1881_v21, %v1865_v9  ;;  %v1866_v42 = vadd.f32 %v1862_v39, %v1845_v49 }
 0x23e   : > { %v1883_v2 = vpop.permute.xlu1 %1882  ;;  %v1902_v44 = vpop.permute.xlu0 %1901 }
 0x23f   : > { %v1907_v27 = vadd.f32 %v1902_v44, %v1886_v45  ;;  %v1887_v16 = vadd.f32 %v1883_v2, %v1866_v42 }
 0x242   : > { %v1904_v35 = vpop.permute.xlu1 %1903  ;;  %v1923_v36 = vpop.permute.xlu0 %1922 }
 0x243   : > { %v1928_v3 = vadd.f32 %v1923_v36, %v1907_v27  ;;  %v1908_v62 = vadd.f32 %v1904_v35, %v1887_v16 }
 0x246   : > { %v1925_v58 = vpop.permute.xlu1 %1924  ;;  %v1944_v20 = vpop.permute.xlu0 %1943 }
 0x247   : > { %v1949_v12 = vadd.f32 %v1944_v20, %v1928_v3  ;;  %v1929_v50 = vadd.f32 %v1925_v58, %v1908_v62 }
 0x24a   : > { %v1946_v40 = vpop.permute.xlu1 %1945  ;;  %v1965_v19 = vpop.permute.xlu0 %1964 }
 0x24b   : > { %v1970_v57 = vadd.f32 %v1965_v19, %v1949_v12  ;;  %v1950_v1 = vadd.f32 %v1946_v40, %v1929_v50 }
 0x24e   : > { %v1967_v48 = vpop.permute.xlu1 %1966  ;;  %v1979_v56 = vpop.permute.xlu0 %1978 }
 0x24f   : > { %v1984_v55 = vadd.f32 %v1979_v56, %v1970_v57  ;;  %v1971_v61 = vadd.f32 %v1967_v48, %v1950_v1 }
 0x252   : > { %v1981_v28 = vpop.permute.xlu1 %1980  ;;  %v2000_v15 = vpop.permute.xlu0 %1999 }
 0x253   : > { %v2005_v7 = vadd.f32 %v2000_v15, %v1984_v55  ;;  %v1985_v13 = vadd.f32 %v1981_v28, %v1971_v61 }
 0x256   : > { %v2002_v5 = vpop.permute.xlu1 %2001  ;;  %v2021_v51 = vpop.permute.xlu0 %2020 }
 0x257   : > { %v2026_v18 = vadd.f32 %v2021_v51, %v2005_v7  ;;  %v2006_v32 = vadd.f32 %v2002_v5, %v1985_v13 }
 0x25a   : > { %v2023_v4 = vpop.permute.xlu1 %2022  ;;  %v2042_v31 = vpop.permute.xlu0 %2041 }
 0x25b   : > { %v2047_v23 = vadd.f32 %v2042_v31, %v2026_v18  ;;  %v2027_v22 = vadd.f32 %v2023_v4, %v2006_v32 }
 0x25e   : > { %v2044_v59 = vpop.permute.xlu1 %2043  ;;  %v2063_v38 = vpop.permute.xlu0 %2062 }
 0x25f   : > { %v2068_v0 = vadd.f32 %v2063_v38, %v2047_v23  ;;  %v2048_v39 = vadd.f32 %v2044_v59, %v2027_v22 }
 0x262   : > { %v2065_v41 = vpop.permute.xlu1 %2064  ;;  %v2084_v47 = vpop.permute.xlu0 %2083 }
 0x263   : > { %v2089_v21 = vadd.f32 %v2084_v47, %v2068_v0  ;;  %v2069_v63 = vadd.f32 %v2065_v41, %v2048_v39 }
 0x266   : > { %v2086_v14 = vpop.permute.xlu1 %2085  ;;  %v2105_v25 = vpop.permute.xlu0 %2104 }
 0x267   : > { %v2110_v8 = vadd.f32 %v2105_v25, %v2089_v21  ;;  %v2090_v2 = vadd.f32 %v2086_v14, %v2069_v63 }
 0x269   : > { %v2323_v44 = vmul.f32 -1.442695, %v2110_v8 }
 0x26a   : > { %v2107_v10 = vpop.permute.xlu1 %2106 }
 0x26b   : > { %2392 = vpow2.f32 %v2323_v44  ;;  %v2111_v17 = vadd.f32 %v2107_v10, %v2090_v2 }
 0x26d   : > { %v2324_v29 = vmul.f32 -1.442695, %v2111_v17 }
 0x26f   : > { %2394 = vpow2.f32 %v2324_v29 }
 0x278   : > { %v2393_v60 = vpop.eup %2392 }
 0x279   : > { %v2118_v35 = vadd.f32 1.0, %v2393_v60 }
 0x27b   : > { %2396 = vrcp.f32 %v2118_v35 }
 0x27c   : > { %v2395_v36 = vpop.eup %2394 }
 0x27d   : > { %v2119_v53 = vadd.f32 1.0, %v2395_v36 }
 0x27f   : > { %2398 = vrcp.f32 %v2119_v53 }
 0x288   : > { %v2397_v54 = vpop.eup %2396 }
 0x289   : > { %2125 = vst.msk [vmem:[%s150_s30] sm:$0xff] %vm2124_vm12, %v2397_v54 }
 0x28c   : > { %v2399_v37 = vpop.eup %2398 }
 0x28d   : > { %2126 = vst.msk [vmem:[%s150_s30 + $0x8] sm:$0xff] %vm2124_vm12, %v2399_v37 }
 0x28e   : > { %2434 = shalt.err (!%p2431_p2)
}
 0x28f   : > { %s2435_s16 = scalar_lea.hbm %s3780_s21, 256  ;;  %s2439_s14 = scalar_lea.hbm %s3826_s2, 512 }
 0x290   : > { %p2436_p3 = scmp.ne.s32.totalorder %s3780_s21, %s2435_s16  ;;  %p2440_p8 = scmp.lt.s32.totalorder %s3780_s21, %s3826_s2 }
 0x291   : > { %p2441_p11 = scmp.lt.s32.totalorder %s2439_s14, %s2435_s16 }
 0x292   : > { %p2437_p4 = pnand %p2436_p3, %p2552_p5 }
 0x293   : > { %p2442_p9 = por %p2441_p11, %p2440_p8 }
 0x294   : > { %p2438_p7 = pneg %p2437_p4 }
 0x296   : > { %p2443_p10 = pnand %p2442_p9, %p2438_p7 }
 0x298   : > { %2446 = shalt.err (!%p2443_p10)
}
 0x299   : > { %s2497_s27 = smov 128   ;;  %s2498_s26 = smov 8  }
 0x29a   : > { %2336 = dma.vmem_to_hbm [thread:$0]  (%p2552_p5), %s3782_s3, 256, %s3780_s21, %s3784_s6, %s2497_s27, %s2497_s27, %s2498_s26  }
 0x29b PF: > { %p2348_p12 = scmp.ge.s32.totalorder %s2485_s12, 2  ;;  %s2156_s28 = sand.u32 1, %s2473_s9  }
 0x29c   : > { %s2157_s29 = scalar_lea.sflag [#allocation4], %s2156_s28 }
 0x29d   : > { %p2343_p13 = pnand %p2348_p12, %p2556_p6 }
 0x29f   : > { %p2344_p0 = pneg %p2343_p13 }
 0x2a1   : > { %2468 = dma.done.wait (%p2344_p0), %s2157_s29, 256  }
 0x2a2   : > { %2470 = vsyncadd (%p2344_p0), %s2157_s29, 4294967040  ;;  %p13_p1 = scmp.ge.s32.totalorder %s2539_s15, 4   ;;  %s3830_s9 = smov %s2477_s10 }
 0x2a3   : > { %s3831_s10 = smov %s2481_s11  ;;  %s3832_s11 = smov %s2550_s18 }
 0x2a4   : > { %s3833_s12 = smov %s2539_s15  ;;  %15 = sbr.rel (!%p13_p1) target bundleno = 4 (0x4), region = 70 }
 0x2a9   :  { %2162 = vsyncpa [#allocation4], 1 }
 0x2aa   :  { %2164 = vsyncpa [#allocation4 + $0x1], 1 }
 0x2ab   :  { %2165 = vsyncpa [#allocation5], 1 }
 0x2ac   :  { %2167 = vsyncpa [#allocation5 + $0x1], 1 }

</bundles_post_ra>
